<compile_context>
chip_gen: v7x
topology: tpu7x:2x2x1
jax: 0.10.0
libtpu: 0.0.40
codegen_flags: <defaults>
</compile_context>

<pallas_src>
import math
import functools

import jax
import jax.numpy as jnp
from jax.experimental import pallas as pl
from jax.experimental.pallas import tpu as pltpu


# MXU operand dtype (accumulation is always f32; softmax/GELU/LayerNorm stay f32,
# which is also the fast path on v5e where the VPU/EUP have no native bf16).
MATMUL_DTYPE = jnp.bfloat16

# Tile targets chosen to fit comfortably inside the default scoped-VMEM budget
# with double-buffering on every generation, including v7x's 64 MiB VMEM.
_TM_TARGET = 256   # rows      (multiple of 8)
_TN_TARGET = 512   # out cols  (multiple of 128)
_TK_TARGET = 512   # reduction (multiple of 128)


def _tile_m(m, target=_TM_TARGET):
    return m if m <= target else target


def _tile_n(n, target=_TN_TARGET):
    return n if n <= target else target


def _tile_k(k, target=_TK_TARGET):
    # Only tile the reduction axis when it divides evenly (padding a reduction
    # tile would corrupt the accumulator); otherwise keep full K.
    if k <= target:
        return k
    return target if k % target == 0 else k


def _gelu(x):
    # BERT tanh-approx GELU (f32 math).
    c = math.sqrt(2.0 / math.pi)
    return 0.5 * x * (1.0 + jnp.tanh(c * (x + 0.044715 * x * x * x)))


# ----------------------------- Linear kernel --------------------------------
def _linear_kernel(x_ref, w_ref, b_ref, o_ref, acc_ref, *, activation):
    @pl.when(pl.program_id(2) == 0)
    def _init():
        acc_ref[...] = jnp.zeros_like(acc_ref)

    acc_ref[...] += jnp.dot(
        x_ref[...].astype(MATMUL_DTYPE),
        w_ref[...].astype(MATMUL_DTYPE),
        preferred_element_type=jnp.float32)

    @pl.when(pl.program_id(2) == pl.num_programs(2) - 1)
    def _finalize():
        y = acc_ref[...] + b_ref[...].astype(jnp.float32)
        if activation == "gelu":
            y = _gelu(y)
        o_ref[...] = y.astype(o_ref.dtype)


def linear(x, w, b, activation=None):
    """x: [..., Din] @ w: [Din, Dout] + b: [Dout] (optional fused GELU)."""
    orig_shape = x.shape
    din, dout = w.shape
    x2 = x.reshape(-1, din)
    m = x2.shape[0]
    bm, bn, bk = _tile_m(m), _tile_n(dout), _tile_k(din)
    grid = (pl.cdiv(m, bm), pl.cdiv(dout, bn), pl.cdiv(din, bk))
    out = pl.pallas_call(
        functools.partial(_linear_kernel, activation=activation),
        out_shape=jax.ShapeDtypeStruct((m, dout), x.dtype),
        grid=grid,
        in_specs=[
            pl.BlockSpec((bm, bk), lambda i, j, k: (i, k)),
            pl.BlockSpec((bk, bn), lambda i, j, k: (k, j)),
            pl.BlockSpec((1, bn), lambda i, j, k: (0, j)),
        ],
        out_specs=pl.BlockSpec((bm, bn), lambda i, j, k: (i, j)),
        scratch_shapes=[pltpu.VMEM((bm, bn), jnp.float32)],
        compiler_params=pltpu.CompilerParams(
            dimension_semantics=("parallel", "parallel", "arbitrary")),
    )(x2, w, b.reshape(1, dout))
    return out.reshape(orig_shape[:-1] + (dout,))


# ---------------- Fused Linear + residual add + LayerNorm kernel -------------
def _linear_add_ln_kernel(x_ref, w_ref, b_ref, r_ref, g_ref, bb_ref, o_ref,
                          acc_ref, *, eps):
    @pl.when(pl.program_id(1) == 0)
    def _init():
        acc_ref[...] = jnp.zeros_like(acc_ref)

    acc_ref[...] += jnp.dot(
        x_ref[...].astype(MATMUL_DTYPE),
        w_ref[...].astype(MATMUL_DTYPE),
        preferred_element_type=jnp.float32)

    @pl.when(pl.program_id(1) == pl.num_programs(1) - 1)
    def _finalize():
        y = (acc_ref[...] + b_ref[...].astype(jnp.float32)
             + r_ref[...].astype(jnp.float32))
        mean = jnp.mean(y, axis=-1, keepdims=True)
        var = jnp.mean((y - mean) ** 2, axis=-1, keepdims=True)
        y = (y - mean) * jax.lax.rsqrt(var + eps)
        y = y * g_ref[...].astype(jnp.float32) + bb_ref[...].astype(jnp.float32)
        o_ref[...] = y.astype(o_ref.dtype)


def linear_add_layernorm(x, w, b, residual, gamma, beta, eps=1e-12):
    """LayerNorm(x @ w + b + residual) — dense, add and LN fused in one pass."""
    orig_shape = residual.shape
    din, dout = w.shape
    x2 = x.reshape(-1, din)
    r2 = residual.reshape(-1, dout)
    m = x2.shape[0]
    bm, bk = _tile_m(m), _tile_k(din)
    grid = (pl.cdiv(m, bm), pl.cdiv(din, bk))
    out = pl.pallas_call(
        functools.partial(_linear_add_ln_kernel, eps=eps),
        out_shape=jax.ShapeDtypeStruct((m, dout), residual.dtype),
        grid=grid,
        in_specs=[
            pl.BlockSpec((bm, bk), lambda i, k: (i, k)),
            pl.BlockSpec((bk, dout), lambda i, k: (k, 0)),
            pl.BlockSpec((1, dout), lambda i, k: (0, 0)),
            pl.BlockSpec((bm, dout), lambda i, k: (i, 0)),
            pl.BlockSpec((1, dout), lambda i, k: (0, 0)),
            pl.BlockSpec((1, dout), lambda i, k: (0, 0)),
        ],
        out_specs=pl.BlockSpec((bm, dout), lambda i, k: (i, 0)),
        scratch_shapes=[pltpu.VMEM((bm, dout), jnp.float32)],
        compiler_params=pltpu.CompilerParams(
            dimension_semantics=("parallel", "arbitrary")),
    )(x2, w, b.reshape(1, dout), r2, gamma.reshape(1, dout), beta.reshape(1, dout))
    return out.reshape(orig_shape)


# ------------------------ Cross-attention kernel -----------------------------
def _cross_attn_kernel(q_ref, k_ref, v_ref, m_ref, ctx_ref, *maybe_probs,
                       scale, num_heads, head_dim, with_probs):
    probs_ref = maybe_probs[0] if with_probs else None

    # Un-split projections: heads are contiguous lane-slices of the last dim.
    q = q_ref[0].astype(MATMUL_DTYPE)          # [Lq, H*dh]
    k = k_ref[0].astype(MATMUL_DTYPE)          # [Lk, H*dh]
    v = v_ref[0].astype(MATMUL_DTYPE)          # [Lk, H*dh]
    m = m_ref[0, 0].astype(jnp.float32)        # [1, Lk] additive mask

    for h in range(num_heads):                 # static loop; H back-to-back MXU ops
        lo = h * head_dim
        hi = lo + head_dim
        qh = q[:, lo:hi]
        kh = k[:, lo:hi]
        vh = v[:, lo:hi]

        # scores = (qh @ kh^T) * scale + mask
        s = jax.lax.dot_general(qh, kh, (((1,), (1,)), ((), ())),
                                preferred_element_type=jnp.float32)
        s = s * scale + m                      # [Lq, Lk]

        # softmax along keys (f32 math, EUP reciprocal)
        s = s - jnp.max(s, axis=-1, keepdims=True)
        e = jnp.exp(s)
        p = e * pl.reciprocal(jnp.sum(e, axis=-1, keepdims=True), approx=True)

        ctx_h = jnp.dot(p.astype(MATMUL_DTYPE), vh,
                        preferred_element_type=jnp.float32)   # [Lq, dh]

        # lane-dense merged-head output: write into the [Lq, H*dh] slab directly
        ctx_ref[0, :, lo:hi] = ctx_h.astype(ctx_ref.dtype)
        if with_probs:
            probs_ref[0, h] = p.astype(probs_ref.dtype)


def cross_attention(q, k, v, mask, scale, num_heads, head_dim, return_probs):
    """q: [B,Lq,H*dh], k/v: [B,Lk,H*dh], mask: [B,1,1,Lk].

    Returns (ctx [B,Lq,H*dh] merged over heads, probs [B,H,Lq,Lk] or None).
    """
    B, Lq, D = q.shape
    Lk = k.shape[1]
    out_shape = [jax.ShapeDtypeStruct((B, Lq, D), q.dtype)]
    out_specs = [pl.BlockSpec((1, Lq, D), lambda b: (b, 0, 0))]
    if return_probs:
        out_shape.append(jax.ShapeDtypeStruct((B, num_heads, Lq, Lk), q.dtype))
        out_specs.append(pl.BlockSpec((1, num_heads, Lq, Lk),
                                      lambda b: (b, 0, 0, 0)))
    outs = pl.pallas_call(
        functools.partial(_cross_attn_kernel, scale=scale,
                          num_heads=num_heads, head_dim=head_dim,
                          with_probs=return_probs),
        out_shape=tuple(out_shape),
        grid=(B,),
        in_specs=[
            pl.BlockSpec((1, Lq, D), lambda b: (b, 0, 0)),
            pl.BlockSpec((1, Lk, D), lambda b: (b, 0, 0)),
            pl.BlockSpec((1, Lk, D), lambda b: (b, 0, 0)),
            pl.BlockSpec((1, 1, 1, Lk), lambda b: (b, 0, 0, 0)),
        ],
        out_specs=tuple(out_specs),
        compiler_params=pltpu.CompilerParams(
            dimension_semantics=("parallel",)),
    )(q, k, v, mask)
    if return_probs:
        return outs[0], outs[1]
    ctx = outs[0] if isinstance(outs, (tuple, list)) else outs
    return ctx, None


# ------------------------------ Model forward --------------------------------
def bert_bi_attention(p, vis, vis_mask, lang, lang_mask, num_heads, head_dim,
                      return_probs=True):
    bi = num_heads * head_dim
    # fused Q/K/V projection: one [Din, 3*bi_hidden] matmul per stream
    qkv1 = linear(vis, p["qkv1_w"], p["qkv1_b"])     # [B, L_vis,  3*bi]
    qkv2 = linear(lang, p["qkv2_w"], p["qkv2_b"])    # [B, L_lang, 3*bi]
    q1, k1, v1 = qkv1[..., :bi], qkv1[..., bi:2 * bi], qkv1[..., 2 * bi:]
    q2, k2, v2 = qkv2[..., :bi], qkv2[..., bi:2 * bi], qkv2[..., 2 * bi:]

    scale = 1.0 / math.sqrt(head_dim)

    # stream 1: language queries attend over visual keys/values (vis mask)
    ctx1, probs1 = cross_attention(q2, k1, v1, vis_mask, scale,
                                   num_heads, head_dim, return_probs)

    # stream 2: visual queries attend over language keys/values (lang mask);
    # matches the module's max-collapse when the mask is per-query.
    if lang_mask.shape[2] == 1:
        m2 = lang_mask
    else:
        m2 = jnp.max(lang_mask, axis=-2, keepdims=True)
    ctx2, probs2 = cross_attention(q1, k2, v2, m2, scale,
                                   num_heads, head_dim, return_probs)

    attn_b4_dropout = ({"attn1": probs1, "attn2": probs2}
                       if return_probs else None)
    attn_data = None  # config.visualization != 'True'
    return ctx1, ctx2, attn_data, attn_b4_dropout


def bert_bi_output(p, context_v, vis_embedding, context_l, lang_embedding):
    # dense + residual + LayerNorm fused per stream
    hidden_states1 = linear_add_layernorm(context_v, p["dense1_w"], p["dense1_b"],
                                          vis_embedding, p["ln1_g"], p["ln1_b"])
    hidden_states2 = linear_add_layernorm(context_l, p["dense2_w"], p["dense2_b"],
                                          lang_embedding, p["ln2_g"], p["ln2_b"])
    return hidden_states1, hidden_states2


def bert_connect_layer(p, vis_embedding, vis_attention_mask,
                       lang_embedding, lang_attention_mask,
                       num_heads, head_dim, return_probs=True):
    bi_out1, bi_out2, co_probs, co_probs_b4 = bert_bi_attention(
        p, vis_embedding, vis_attention_mask,
        lang_embedding, lang_attention_mask, num_heads, head_dim, return_probs)

    # argument ordering matches the PyTorch module:
    # biOutput(bi_output2, vis_embedding, bi_output1, lang_embedding)
    attn_out1, attn_out2 = bert_bi_output(p, bi_out2, vis_embedding,
                                          bi_out1, lang_embedding)

    # visual FFN block (intermediate GELU fused into the matmul; output dense
    # fused with the residual add + LayerNorm)
    inter1 = linear(attn_out1, p["v_inter_w"], p["v_inter_b"], activation="gelu")
    layer_out1 = linear_add_layernorm(inter1, p["v_out_w"], p["v_out_b"],
                                      attn_out1, p["v_out_ln_g"], p["v_out_ln_b"])
    # language FFN block
    inter2 = linear(attn_out2, p["l_inter_w"], p["l_inter_b"], activation="gelu")
    layer_out2 = linear_add_layernorm(inter2, p["l_out_w"], p["l_out_b"],
                                      attn_out2, p["l_out_ln_g"], p["l_out_ln_b"])

    return layer_out1, layer_out2, co_probs, co_probs_b4


# ------------------------------ Parameter init --------------------------------
def init_params(key, v_hidden, l_hidden, bi_hidden, v_inter, l_inter):
    names_shapes = [
        ("query1_w", (v_hidden, bi_hidden)), ("key1_w", (v_hidden, bi_hidden)),
        ("value1_w", (v_hidden, bi_hidden)),
        ("query2_w", (l_hidden, bi_hidden)), ("key2_w", (l_hidden, bi_hidden)),
        ("value2_w", (l_hidden, bi_hidden)),
        ("dense1_w", (bi_hidden, v_hidden)), ("dense2_w", (bi_hidden, l_hidden)),
        ("v_inter_w", (v_hidden, v_inter)), ("v_out_w", (v_inter, v_hidden)),
        ("l_inter_w", (l_hidden, l_inter)), ("l_out_w", (l_inter, l_hidden)),
    ]
    keys = jax.random.split(key, len(names_shapes))
    p = {}
    for (name, shape), k in zip(names_shapes, keys):
        p[name] = (jax.random.normal(k, shape, jnp.float32) * 0.02)
    for name, dim in [("query1_b", bi_hidden), ("key1_b", bi_hidden),
                      ("value1_b", bi_hidden), ("query2_b", bi_hidden),
                      ("key2_b", bi_hidden), ("value2_b", bi_hidden),
                      ("dense1_b", v_hidden), ("dense2_b", l_hidden),
                      ("v_inter_b", v_inter), ("v_out_b", v_hidden),
                      ("l_inter_b", l_inter), ("l_out_b", l_hidden)]:
        p[name] = jnp.zeros((dim,), jnp.float32)
    for name, dim in [("ln1", v_hidden), ("ln2", l_hidden),
                      ("v_out_ln", v_hidden), ("l_out_ln", l_hidden)]:
        p[name + "_g"] = jnp.ones((dim,), jnp.float32)
        p[name + "_b"] = jnp.zeros((dim,), jnp.float32)
    return p


def prepare_params(p):
    """One-time setup: fuse Q/K/V weights and store matmul weights in bf16
    (kernels accumulate in f32; biases / LayerNorm params stay f32)."""
    q = dict(p)
    q["qkv1_w"] = jnp.concatenate([p["query1_w"], p["key1_w"], p["value1_w"]], axis=1)
    q["qkv1_b"] = jnp.concatenate([p["query1_b"], p["key1_b"], p["value1_b"]], axis=0)
    q["qkv2_w"] = jnp.concatenate([p["query2_w"], p["key2_w"], p["value2_w"]], axis=1)
    q["qkv2_b"] = jnp.concatenate([p["query2_b"], p["key2_b"], p["value2_b"]], axis=0)
    for name in ["query1_w", "key1_w", "value1_w", "query2_w", "key2_w", "value2_w",
                 "query1_b", "key1_b", "value1_b", "query2_b", "key2_b", "value2_b"]:
        q.pop(name)
    for name in list(q.keys()):
        if name.endswith("_w"):
            q[name] = q[name].astype(MATMUL_DTYPE)
    return q


# ---------------------------------- Main --------------------------------------
if __name__ == "__main__":
    B = 2
    L_VIS, L_LANG = 16, 8
    V_HIDDEN = L_HIDDEN = BI_HIDDEN = 32
    NUM_HEADS = 4
    HEAD_DIM = BI_HIDDEN // NUM_HEADS
    V_INTER = L_INTER = 64

    key = jax.random.PRNGKey(0)
    k_param, k_vis, k_lang = jax.random.split(key, 3)

    params = prepare_params(
        init_params(k_param, V_HIDDEN, L_HIDDEN, BI_HIDDEN, V_INTER, L_INTER))

    vis_embedding = jax.random.normal(k_vis, (B, L_VIS, V_HIDDEN), jnp.float32)
    lang_embedding = jax.random.normal(k_lang, (B, L_LANG, L_HIDDEN), jnp.float32)

    # additive attention masks: 0 = attend, -10000 = masked
    vis_attention_mask = jnp.zeros((B, 1, 1, L_VIS), jnp.float32)
    lang_valid = jnp.array([[1] * L_LANG, [1] * 6 + [0] * 2], jnp.float32)
    lang_attention_mask = ((1.0 - lang_valid) * -10000.0).reshape(B, 1, 1, L_LANG)

    fwd = jax.jit(functools.partial(bert_connect_layer,
                                    num_heads=NUM_HEADS, head_dim=HEAD_DIM,
                                    return_probs=True))
    layer_out1, layer_out2, co_probs, co_probs_b4 = fwd(
        params, vis_embedding, vis_attention_mask,
        lang_embedding, lang_attention_mask)

    jax.block_until_ready((layer_out1, layer_out2,
                           co_probs_b4["attn1"], co_probs_b4["attn2"]))

    assert layer_out1.shape == (B, L_VIS, V_HIDDEN)
    assert layer_out2.shape == (B, L_LANG, L_HIDDEN)
    assert co_probs_b4["attn1"].shape == (B, NUM_HEADS, L_LANG, L_VIS)
    assert co_probs_b4["attn2"].shape == (B, NUM_HEADS, L_VIS, L_LANG)
    assert co_probs is None

    print("KERNEL_OK")
</pallas_src>

<mosaic_0001>
module attributes {stable_mosaic.version = 11 : i64} {
  func.func @_linear_kernel(%arg0: i32, %arg1: i32, %arg2: i32, %arg3: memref<16x32xf32, #tpu.memory_space<vmem>>, %arg4: memref<32x96xbf16, #tpu.memory_space<vmem>>, %arg5: memref<1x96xf32, #tpu.memory_space<vmem>>, %arg6: memref<16x96xf32, #tpu.memory_space<vmem>>, %arg7: memref<16x96xf32, #tpu.memory_space<vmem>>) attributes {dimension_semantics = [#tpu.dimension_semantics<parallel>, #tpu.dimension_semantics<parallel>, #tpu.dimension_semantics<arbitrary>], iteration_bounds = array<i64: 1, 1, 1>, scalar_prefetch = 0 : i64, scratch_operands = 1 : i64, tpu.core_type = #tpu.core_type<tc>, window_params = [{transform_indices = @transform_0, window_bounds = array<i64: 16, 32>}, {transform_indices = @transform_1, window_bounds = array<i64: 32, 96>}, {transform_indices = @transform_2, window_bounds = array<i64: 1, 96>}, {transform_indices = @transform_3, window_bounds = array<i64: 16, 96>}]} {
    %c0_i32 = arith.constant 0 : i32
    %0 = arith.cmpi eq, %arg2, %c0_i32 : i32
    %1 = arith.extui %0 : i1 to i32
    %c0_i32_0 = arith.constant 0 : i32
    %2 = arith.cmpi ne, %1, %c0_i32_0 : i32
    scf.if %2 {
      %cst_10 = arith.constant 0.000000e+00 : f32
      %13 = vector.broadcast %cst_10 : f32 to vector<16x96xf32>
      %c0_11 = arith.constant 0 : index
      %c0_12 = arith.constant 0 : index
      %14 = vector.load %arg7[%c0_11, %c0_12] : memref<16x96xf32, #tpu.memory_space<vmem>>, vector<16x96xf32>
      tpu.vector_store %arg7[%c0_11, %c0_12], %13 {strides = array<i32>} : memref<16x96xf32, #tpu.memory_space<vmem>>, vector<16x96xf32>,
    } else {
    }
    %c0 = arith.constant 0 : index
    %c0_1 = arith.constant 0 : index
    %3 = vector.load %arg7[%c0, %c0_1] : memref<16x96xf32, #tpu.memory_space<vmem>>, vector<16x96xf32>
    %c0_2 = arith.constant 0 : index
    %c0_3 = arith.constant 0 : index
    %4 = vector.load %arg3[%c0_2, %c0_3] : memref<16x32xf32, #tpu.memory_space<vmem>>, vector<16x32xf32>
    %5 = arith.truncf %4 : vector<16x32xf32> to vector<16x32xbf16>
    %c0_4 = arith.constant 0 : index
    %c0_5 = arith.constant 0 : index
    %6 = vector.load %arg4[%c0_4, %c0_5] : memref<32x96xbf16, #tpu.memory_space<vmem>>, vector<32x96xbf16>
    %cst = arith.constant dense<0.000000e+00> : vector<16x96xf32>
    %7 = tpu.matmul %5, %6, %cst {dimension_numbers = #tpu.dot_dimension_numbers<[1], [0], [0], [1], [0, 0, 1, 1], [], []>} : vector<16x32xbf16>, vector<32x96xbf16>, vector<16x96xf32> -> vector<16x96xf32>
    %8 = arith.addf %3, %7 : vector<16x96xf32>
    %c0_6 = arith.constant 0 : index
    %c0_7 = arith.constant 0 : index
    %9 = vector.load %arg7[%c0_6, %c0_7] : memref<16x96xf32, #tpu.memory_space<vmem>>, vector<16x96xf32>
    tpu.vector_store %arg7[%c0_6, %c0_7], %8 {strides = array<i32>} : memref<16x96xf32, #tpu.memory_space<vmem>>, vector<16x96xf32>,
    %c0_i32_8 = arith.constant 0 : i32
    %10 = arith.cmpi eq, %arg2, %c0_i32_8 : i32
    %11 = arith.extui %10 : i1 to i32
    %c0_i32_9 = arith.constant 0 : i32
    %12 = arith.cmpi ne, %11, %c0_i32_9 : i32
    scf.if %12 {
      %c0_10 = arith.constant 0 : index
      %c0_11 = arith.constant 0 : index
      %13 = vector.load %arg7[%c0_10, %c0_11] : memref<16x96xf32, #tpu.memory_space<vmem>>, vector<16x96xf32>
      %c0_12 = arith.constant 0 : index
      %c0_13 = arith.constant 0 : index
      %14 = vector.load %arg5[%c0_12, %c0_13] : memref<1x96xf32, #tpu.memory_space<vmem>>, vector<1x96xf32>
      %15 = vector.broadcast %14 : vector<1x96xf32> to vector<16x96xf32>
      %16 = arith.addf %13, %15 : vector<16x96xf32>
      %c0_14 = arith.constant 0 : index
      %c0_15 = arith.constant 0 : index
      %17 = vector.load %arg6[%c0_14, %c0_15] : memref<16x96xf32, #tpu.memory_space<vmem>>, vector<16x96xf32>
      tpu.vector_store %arg6[%c0_14, %c0_15], %16 {strides = array<i32>} : memref<16x96xf32, #tpu.memory_space<vmem>>, vector<16x96xf32>,
    } else {
    }
    return
  }
  func.func @transform_0(%arg0: i32, %arg1: i32, %arg2: i32) -> (i32, i32) {
    %c0_i32 = arith.constant 0 : i32
    return %arg0, %arg2 : i32, i32
  }
  func.func @transform_1(%arg0: i32, %arg1: i32, %arg2: i32) -> (i32, i32) {
    %c0_i32 = arith.constant 0 : i32
    return %arg2, %arg1 : i32, i32
  }
  func.func @transform_2(%arg0: i32, %arg1: i32, %arg2: i32) -> (i32, i32) {
    %c0_i32 = arith.constant 0 : i32
    %c0_i32_0 = arith.constant 0 : i32
    return %c0_i32, %arg1 : i32, i32
  }
  func.func @transform_3(%arg0: i32, %arg1: i32, %arg2: i32) -> (i32, i32) {
    %c0_i32 = arith.constant 0 : i32
    return %arg0, %arg1 : i32, i32
  }
}

module attributes {stable_mosaic.version = 11 : i64} {
  func.func @_linear_kernel(%arg0: i32, %arg1: i32, %arg2: i32, %arg3: memref<32x32xf32, #tpu.memory_space<vmem>>, %arg4: memref<32x96xbf16, #tpu.memory_space<vmem>>, %arg5: memref<1x96xf32, #tpu.memory_space<vmem>>, %arg6: memref<32x96xf32, #tpu.memory_space<vmem>>, %arg7: memref<32x96xf32, #tpu.memory_space<vmem>>) attributes {dimension_semantics = [#tpu.dimension_semantics<parallel>, #tpu.dimension_semantics<parallel>, #tpu.dimension_semantics<arbitrary>], iteration_bounds = array<i64: 1, 1, 1>, scalar_prefetch = 0 : i64, scratch_operands = 1 : i64, tpu.core_type = #tpu.core_type<tc>, window_params = [{transform_indices = @transform_0, window_bounds = array<i64: 32, 32>}, {transform_indices = @transform_1, window_bounds = array<i64: 32, 96>}, {transform_indices = @transform_2, window_bounds = array<i64: 1, 96>}, {transform_indices = @transform_3, window_bounds = array<i64: 32, 96>}]} {
    %c0_i32 = arith.constant 0 : i32
    %0 = arith.cmpi eq, %arg2, %c0_i32 : i32
    %1 = arith.extui %0 : i1 to i32
    %c0_i32_0 = arith.constant 0 : i32
    %2 = arith.cmpi ne, %1, %c0_i32_0 : i32
    scf.if %2 {
      %cst_10 = arith.constant 0.000000e+00 : f32
      %13 = vector.broadcast %cst_10 : f32 to vector<32x96xf32>
      %c0_11 = arith.constant 0 : index
      %c0_12 = arith.constant 0 : index
      %14 = vector.load %arg7[%c0_11, %c0_12] : memref<32x96xf32, #tpu.memory_space<vmem>>, vector<32x96xf32>
      tpu.vector_store %arg7[%c0_11, %c0_12], %13 {strides = array<i32>} : memref<32x96xf32, #tpu.memory_space<vmem>>, vector<32x96xf32>,
    } else {
    }
    %c0 = arith.constant 0 : index
    %c0_1 = arith.constant 0 : index
    %3 = vector.load %arg7[%c0, %c0_1] : memref<32x96xf32, #tpu.memory_space<vmem>>, vector<32x96xf32>
    %c0_2 = arith.constant 0 : index
    %c0_3 = arith.constant 0 : index
    %4 = vector.load %arg3[%c0_2, %c0_3] : memref<32x32xf32, #tpu.memory_space<vmem>>, vector<32x32xf32>
    %5 = arith.truncf %4 : vector<32x32xf32> to vector<32x32xbf16>
    %c0_4 = arith.constant 0 : index
    %c0_5 = arith.constant 0 : index
    %6 = vector.load %arg4[%c0_4, %c0_5] : memref<32x96xbf16, #tpu.memory_space<vmem>>, vector<32x96xbf16>
    %cst = arith.constant dense<0.000000e+00> : vector<32x96xf32>
    %7 = tpu.matmul %5, %6, %cst {dimension_numbers = #tpu.dot_dimension_numbers<[1], [0], [0], [1], [0, 0, 1, 1], [], []>} : vector<32x32xbf16>, vector<32x96xbf16>, vector<32x96xf32> -> vector<32x96xf32>
    %8 = arith.addf %3, %7 : vector<32x96xf32>
    %c0_6 = arith.constant 0 : index
    %c0_7 = arith.constant 0 : index
    %9 = vector.load %arg7[%c0_6, %c0_7] : memref<32x96xf32, #tpu.memory_space<vmem>>, vector<32x96xf32>
    tpu.vector_store %arg7[%c0_6, %c0_7], %8 {strides = array<i32>} : memref<32x96xf32, #tpu.memory_space<vmem>>, vector<32x96xf32>,
    %c0_i32_8 = arith.constant 0 : i32
    %10 = arith.cmpi eq, %arg2, %c0_i32_8 : i32
    %11 = arith.extui %10 : i1 to i32
    %c0_i32_9 = arith.constant 0 : i32
    %12 = arith.cmpi ne, %11, %c0_i32_9 : i32
    scf.if %12 {
      %c0_10 = arith.constant 0 : index
      %c0_11 = arith.constant 0 : index
      %13 = vector.load %arg7[%c0_10, %c0_11] : memref<32x96xf32, #tpu.memory_space<vmem>>, vector<32x96xf32>
      %c0_12 = arith.constant 0 : index
      %c0_13 = arith.constant 0 : index
      %14 = vector.load %arg5[%c0_12, %c0_13] : memref<1x96xf32, #tpu.memory_space<vmem>>, vector<1x96xf32>
      %15 = vector.broadcast %14 : vector<1x96xf32> to vector<32x96xf32>
      %16 = arith.addf %13, %15 : vector<32x96xf32>
      %c0_14 = arith.constant 0 : index
      %c0_15 = arith.constant 0 : index
      %17 = vector.load %arg6[%c0_14, %c0_15] : memref<32x96xf32, #tpu.memory_space<vmem>>, vector<32x96xf32>
      tpu.vector_store %arg6[%c0_14, %c0_15], %16 {strides = array<i32>} : memref<32x96xf32, #tpu.memory_space<vmem>>, vector<32x96xf32>,
    } else {
    }
    return
  }
  func.func @transform_0(%arg0: i32, %arg1: i32, %arg2: i32) -> (i32, i32) {
    %c0_i32 = arith.constant 0 : i32
    return %arg0, %arg2 : i32, i32
  }
  func.func @transform_1(%arg0: i32, %arg1: i32, %arg2: i32) -> (i32, i32) {
    %c0_i32 = arith.constant 0 : i32
    return %arg2, %arg1 : i32, i32
  }
  func.func @transform_2(%arg0: i32, %arg1: i32, %arg2: i32) -> (i32, i32) {
    %c0_i32 = arith.constant 0 : i32
    %c0_i32_0 = arith.constant 0 : i32
    return %c0_i32, %arg1 : i32, i32
  }
  func.func @transform_3(%arg0: i32, %arg1: i32, %arg2: i32) -> (i32, i32) {
    %c0_i32 = arith.constant 0 : i32
    return %arg0, %arg1 : i32, i32
  }
}

module attributes {stable_mosaic.version = 11 : i64} {
  func.func @_cross_attn_kernel(%arg0: i32, %arg1: memref<1x8x32xf32, #tpu.memory_space<vmem>>, %arg2: memref<1x16x32xf32, #tpu.memory_space<vmem>>, %arg3: memref<1x16x32xf32, #tpu.memory_space<vmem>>, %arg4: memref<1x1x1x16xf32, #tpu.memory_space<vmem>>, %arg5: memref<1x8x32xf32, #tpu.memory_space<vmem>>, %arg6: memref<1x4x8x16xf32, #tpu.memory_space<vmem>>) attributes {dimension_semantics = [#tpu.dimension_semantics<parallel>], iteration_bounds = array<i64: 2>, scalar_prefetch = 0 : i64, scratch_operands = 0 : i64, tpu.core_type = #tpu.core_type<tc>, window_params = [{transform_indices = @transform_0, window_bounds = array<i64: 1, 8, 32>}, {transform_indices = @transform_1, window_bounds = array<i64: 1, 16, 32>}, {transform_indices = @transform_2, window_bounds = array<i64: 1, 16, 32>}, {transform_indices = @transform_3, window_bounds = array<i64: 1, 1, 1, 16>}, {transform_indices = @transform_4, window_bounds = array<i64: 1, 8, 32>}, {transform_indices = @transform_5, window_bounds = array<i64: 1, 4, 8, 16>}]} {
    %c0 = arith.constant 0 : index
    %c0_0 = arith.constant 0 : index
    %c0_1 = arith.constant 0 : index
    %0 = vector.load %arg1[%c0, %c0_0, %c0_1] : memref<1x8x32xf32, #tpu.memory_space<vmem>>, vector<1x8x32xf32>
    %1 = vector.shape_cast %0 : vector<1x8x32xf32> to vector<8x32xf32>
    %2 = arith.truncf %1 : vector<8x32xf32> to vector<8x32xbf16>
    %c0_2 = arith.constant 0 : index
    %c0_3 = arith.constant 0 : index
    %c0_4 = arith.constant 0 : index
    %3 = vector.load %arg2[%c0_2, %c0_3, %c0_4] : memref<1x16x32xf32, #tpu.memory_space<vmem>>, vector<1x16x32xf32>
    %4 = vector.shape_cast %3 : vector<1x16x32xf32> to vector<16x32xf32>
    %5 = arith.truncf %4 : vector<16x32xf32> to vector<16x32xbf16>
    %c0_5 = arith.constant 0 : index
    %c0_6 = arith.constant 0 : index
    %c0_7 = arith.constant 0 : index
    %6 = vector.load %arg3[%c0_5, %c0_6, %c0_7] : memref<1x16x32xf32, #tpu.memory_space<vmem>>, vector<1x16x32xf32>
    %7 = vector.shape_cast %6 : vector<1x16x32xf32> to vector<16x32xf32>
    %8 = arith.truncf %7 : vector<16x32xf32> to vector<16x32xbf16>
    %c0_8 = arith.constant 0 : index
    %c0_9 = arith.constant 0 : index
    %c0_10 = arith.constant 0 : index
    %c0_11 = arith.constant 0 : index
    %9 = vector.load %arg4[%c0_8, %c0_9, %c0_10, %c0_11] : memref<1x1x1x16xf32, #tpu.memory_space<vmem>>, vector<1x1x1x16xf32>
    %10 = vector.shape_cast %9 : vector<1x1x1x16xf32> to vector<1x16xf32>
    %11 = vector.extract_strided_slice %2 {offsets = [0, 0], sizes = [8, 8], strides = [1, 1]} : vector<8x32xbf16> to vector<8x8xbf16>
    %12 = vector.extract_strided_slice %5 {offsets = [0, 0], sizes = [16, 8], strides = [1, 1]} : vector<16x32xbf16> to vector<16x8xbf16>
    %13 = vector.extract_strided_slice %8 {offsets = [0, 0], sizes = [16, 8], strides = [1, 1]} : vector<16x32xbf16> to vector<16x8xbf16>
    %cst = arith.constant dense<0.000000e+00> : vector<8x16xf32>
    %14 = tpu.matmul %11, %12, %cst {dimension_numbers = #tpu.dot_dimension_numbers<[1], [1], [0], [0], [0, 0, 1, 0], [], []>} : vector<8x8xbf16>, vector<16x8xbf16>, vector<8x16xf32> -> vector<8x16xf32>
    %cst_12 = arith.constant 0.353553385 : f32
    %15 = vector.broadcast %cst_12 : f32 to vector<8x16xf32>
    %16 = arith.mulf %14, %15 : vector<8x16xf32>
    %17 = vector.broadcast %10 : vector<1x16xf32> to vector<8x16xf32>
    %18 = arith.addf %16, %17 : vector<8x16xf32>
    %cst_13 = arith.constant dense<0xFF800000> : vector<8xf32>
    %19 = vector.multi_reduction <maximumf>, %18, %cst_13 [1] : vector<8x16xf32> to vector<8xf32>
    %20 = vector.shape_cast %19 : vector<8xf32> to vector<8x1xf32>
    %21 = vector.broadcast %20 : vector<8x1xf32> to vector<8x16xf32>
    %22 = arith.subf %18, %21 : vector<8x16xf32>
    %23 = math.exp %22 : vector<8x16xf32>
    %cst_14 = arith.constant dense<0.000000e+00> : vector<8xf32>
    %24 = vector.multi_reduction <add>, %23, %cst_14 [1] : vector<8x16xf32> to vector<8xf32>
    %25 = vector.shape_cast %24 : vector<8xf32> to vector<8x1xf32>
    %26 = tpu.reciprocal %25 {approx = true} : vector<8x1xf32> -> vector<8x1xf32>
    %27 = vector.broadcast %26 : vector<8x1xf32> to vector<8x16xf32>
    %28 = arith.mulf %23, %27 : vector<8x16xf32>
    %29 = arith.truncf %28 : vector<8x16xf32> to vector<8x16xbf16>
    %cst_15 = arith.constant dense<0.000000e+00> : vector<8x8xf32>
    %30 = tpu.matmul %29, %13, %cst_15 {dimension_numbers = #tpu.dot_dimension_numbers<[1], [0], [0], [1], [0, 0, 1, 1], [], []>} : vector<8x16xbf16>, vector<16x8xbf16>, vector<8x8xf32> -> vector<8x8xf32>
    %c0_16 = arith.constant 0 : index
    %c0_17 = arith.constant 0 : index
    %c0_18 = arith.constant 0 : index
    %31 = vector.load %arg5[%c0_16, %c0_17, %c0_18] : memref<1x8x32xf32, #tpu.memory_space<vmem>>, vector<1x8x8xf32>
    %32 = vector.shape_cast %31 : vector<1x8x8xf32> to vector<8x8xf32>
    %33 = vector.shape_cast %30 : vector<8x8xf32> to vector<1x8x8xf32>
    tpu.vector_store %arg5[%c0_16, %c0_17, %c0_18], %33 {strides = array<i32>} : memref<1x8x32xf32, #tpu.memory_space<vmem>>, vector<1x8x8xf32>,
    %c0_19 = arith.constant 0 : index
    %c0_20 = arith.constant 0 : index
    %c0_21 = arith.constant 0 : index
    %c0_22 = arith.constant 0 : index
    %34 = vector.load %arg6[%c0_19, %c0_20, %c0_21, %c0_22] : memref<1x4x8x16xf32, #tpu.memory_space<vmem>>, vector<1x1x8x16xf32>
    %35 = vector.shape_cast %34 : vector<1x1x8x16xf32> to vector<8x16xf32>
    %36 = vector.shape_cast %28 : vector<8x16xf32> to vector<1x1x8x16xf32>
    tpu.vector_store %arg6[%c0_19, %c0_20, %c0_21, %c0_22], %36 {strides = array<i32>} : memref<1x4x8x16xf32, #tpu.memory_space<vmem>>, vector<1x1x8x16xf32>,
    %37 = vector.extract_strided_slice %2 {offsets = [0, 8], sizes = [8, 8], strides = [1, 1]} : vector<8x32xbf16> to vector<8x8xbf16>
    %38 = vector.extract_strided_slice %5 {offsets = [0, 8], sizes = [16, 8], strides = [1, 1]} : vector<16x32xbf16> to vector<16x8xbf16>
    %39 = vector.extract_strided_slice %8 {offsets = [0, 8], sizes = [16, 8], strides = [1, 1]} : vector<16x32xbf16> to vector<16x8xbf16>
    %cst_23 = arith.constant dense<0.000000e+00> : vector<8x16xf32>
    %40 = tpu.matmul %37, %38, %cst_23 {dimension_numbers = #tpu.dot_dimension_numbers<[1], [1], [0], [0], [0, 0, 1, 0], [], []>} : vector<8x8xbf16>, vector<16x8xbf16>, vector<8x16xf32> -> vector<8x16xf32>
    %cst_24 = arith.constant 0.353553385 : f32
    %41 = vector.broadcast %cst_24 : f32 to vector<8x16xf32>
    %42 = arith.mulf %40, %41 : vector<8x16xf32>
    %43 = vector.broadcast %10 : vector<1x16xf32> to vector<8x16xf32>
    %44 = arith.addf %42, %43 : vector<8x16xf32>
    %cst_25 = arith.constant dense<0xFF800000> : vector<8xf32>
    %45 = vector.multi_reduction <maximumf>, %44, %cst_25 [1] : vector<8x16xf32> to vector<8xf32>
    %46 = vector.shape_cast %45 : vector<8xf32> to vector<8x1xf32>
    %47 = vector.broadcast %46 : vector<8x1xf32> to vector<8x16xf32>
    %48 = arith.subf %44, %47 : vector<8x16xf32>
    %49 = math.exp %48 : vector<8x16xf32>
    %cst_26 = arith.constant dense<0.000000e+00> : vector<8xf32>
    %50 = vector.multi_reduction <add>, %49, %cst_26 [1] : vector<8x16xf32> to vector<8xf32>
    %51 = vector.shape_cast %50 : vector<8xf32> to vector<8x1xf32>
    %52 = tpu.reciprocal %51 {approx = true} : vector<8x1xf32> -> vector<8x1xf32>
    %53 = vector.broadcast %52 : vector<8x1xf32> to vector<8x16xf32>
    %54 = arith.mulf %49, %53 : vector<8x16xf32>
    %55 = arith.truncf %54 : vector<8x16xf32> to vector<8x16xbf16>
    %cst_27 = arith.constant dense<0.000000e+00> : vector<8x8xf32>
    %56 = tpu.matmul %55, %39, %cst_27 {dimension_numbers = #tpu.dot_dimension_numbers<[1], [0], [0], [1], [0, 0, 1, 1], [], []>} : vector<8x16xbf16>, vector<16x8xbf16>, vector<8x8xf32> -> vector<8x8xf32>
    %c0_28 = arith.constant 0 : index
    %c0_29 = arith.constant 0 : index
    %c8 = arith.constant 8 : index
    %57 = vector.load %arg5[%c0_28, %c0_29, %c8] : memref<1x8x32xf32, #tpu.memory_space<vmem>>, vector<1x8x8xf32>
    %58 = vector.shape_cast %57 : vector<1x8x8xf32> to vector<8x8xf32>
    %59 = vector.shape_cast %56 : vector<8x8xf32> to vector<1x8x8xf32>
    tpu.vector_store %arg5[%c0_28, %c0_29, %c8], %59 {strides = array<i32>} : memref<1x8x32xf32, #tpu.memory_space<vmem>>, vector<1x8x8xf32>,
    %c0_30 = arith.constant 0 : index
    %c1 = arith.constant 1 : index
    %c0_31 = arith.constant 0 : index
    %c0_32 = arith.constant 0 : index
    %60 = vector.load %arg6[%c0_30, %c1, %c0_31, %c0_32] : memref<1x4x8x16xf32, #tpu.memory_space<vmem>>, vector<1x1x8x16xf32>
    %61 = vector.shape_cast %60 : vector<1x1x8x16xf32> to vector<8x16xf32>
    %62 = vector.shape_cast %54 : vector<8x16xf32> to vector<1x1x8x16xf32>
    tpu.vector_store %arg6[%c0_30, %c1, %c0_31, %c0_32], %62 {strides = array<i32>} : memref<1x4x8x16xf32, #tpu.memory_space<vmem>>, vector<1x1x8x16xf32>,
    %63 = vector.extract_strided_slice %2 {offsets = [0, 16], sizes = [8, 8], strides = [1, 1]} : vector<8x32xbf16> to vector<8x8xbf16>
    %64 = vector.extract_strided_slice %5 {offsets = [0, 16], sizes = [16, 8], strides = [1, 1]} : vector<16x32xbf16> to vector<16x8xbf16>
    %65 = vector.extract_strided_slice %8 {offsets = [0, 16], sizes = [16, 8], strides = [1, 1]} : vector<16x32xbf16> to vector<16x8xbf16>
    %cst_33 = arith.constant dense<0.000000e+00> : vector<8x16xf32>
    %66 = tpu.matmul %63, %64, %cst_33 {dimension_numbers = #tpu.dot_dimension_numbers<[1], [1], [0], [0], [0, 0, 1, 0], [], []>} : vector<8x8xbf16>, vector<16x8xbf16>, vector<8x16xf32> -> vector<8x16xf32>
    %cst_34 = arith.constant 0.353553385 : f32
    %67 = vector.broadcast %cst_34 : f32 to vector<8x16xf32>
    %68 = arith.mulf %66, %67 : vector<8x16xf32>
    %69 = vector.broadcast %10 : vector<1x16xf32> to vector<8x16xf32>
    %70 = arith.addf %68, %69 : vector<8x16xf32>
    %cst_35 = arith.constant dense<0xFF800000> : vector<8xf32>
    %71 = vector.multi_reduction <maximumf>, %70, %cst_35 [1] : vector<8x16xf32> to vector<8xf32>
    %72 = vector.shape_cast %71 : vector<8xf32> to vector<8x1xf32>
    %73 = vector.broadcast %72 : vector<8x1xf32> to vector<8x16xf32>
    %74 = arith.subf %70, %73 : vector<8x16xf32>
    %75 = math.exp %74 : vector<8x16xf32>
    %cst_36 = arith.constant dense<0.000000e+00> : vector<8xf32>
    %76 = vector.multi_reduction <add>, %75, %cst_36 [1] : vector<8x16xf32> to vector<8xf32>
    %77 = vector.shape_cast %76 : vector<8xf32> to vector<8x1xf32>
    %78 = tpu.reciprocal %77 {approx = true} : vector<8x1xf32> -> vector<8x1xf32>
    %79 = vector.broadcast %78 : vector<8x1xf32> to vector<8x16xf32>
    %80 = arith.mulf %75, %79 : vector<8x16xf32>
    %81 = arith.truncf %80 : vector<8x16xf32> to vector<8x16xbf16>
    %cst_37 = arith.constant dense<0.000000e+00> : vector<8x8xf32>
    %82 = tpu.matmul %81, %65, %cst_37 {dimension_numbers = #tpu.dot_dimension_numbers<[1], [0], [0], [1], [0, 0, 1, 1], [], []>} : vector<8x16xbf16>, vector<16x8xbf16>, vector<8x8xf32> -> vector<8x8xf32>
    %c0_38 = arith.constant 0 : index
    %c0_39 = arith.constant 0 : index
    %c16 = arith.constant 16 : index
    %83 = vector.load %arg5[%c0_38, %c0_39, %c16] : memref<1x8x32xf32, #tpu.memory_space<vmem>>, vector<1x8x8xf32>
    %84 = vector.shape_cast %83 : vector<1x8x8xf32> to vector<8x8xf32>
    %85 = vector.shape_cast %82 : vector<8x8xf32> to vector<1x8x8xf32>
    tpu.vector_store %arg5[%c0_38, %c0_39, %c16], %85 {strides = array<i32>} : memref<1x8x32xf32, #tpu.memory_space<vmem>>, vector<1x8x8xf32>,
    %c0_40 = arith.constant 0 : index
    %c2 = arith.constant 2 : index
    %c0_41 = arith.constant 0 : index
    %c0_42 = arith.constant 0 : index
    %86 = vector.load %arg6[%c0_40, %c2, %c0_41, %c0_42] : memref<1x4x8x16xf32, #tpu.memory_space<vmem>>, vector<1x1x8x16xf32>
    %87 = vector.shape_cast %86 : vector<1x1x8x16xf32> to vector<8x16xf32>
    %88 = vector.shape_cast %80 : vector<8x16xf32> to vector<1x1x8x16xf32>
    tpu.vector_store %arg6[%c0_40, %c2, %c0_41, %c0_42], %88 {strides = array<i32>} : memref<1x4x8x16xf32, #tpu.memory_space<vmem>>, vector<1x1x8x16xf32>,
    %89 = vector.extract_strided_slice %2 {offsets = [0, 24], sizes = [8, 8], strides = [1, 1]} : vector<8x32xbf16> to vector<8x8xbf16>
    %90 = vector.extract_strided_slice %5 {offsets = [0, 24], sizes = [16, 8], strides = [1, 1]} : vector<16x32xbf16> to vector<16x8xbf16>
    %91 = vector.extract_strided_slice %8 {offsets = [0, 24], sizes = [16, 8], strides = [1, 1]} : vector<16x32xbf16> to vector<16x8xbf16>
    %cst_43 = arith.constant dense<0.000000e+00> : vector<8x16xf32>
    %92 = tpu.matmul %89, %90, %cst_43 {dimension_numbers = #tpu.dot_dimension_numbers<[1], [1], [0], [0], [0, 0, 1, 0], [], []>} : vector<8x8xbf16>, vector<16x8xbf16>, vector<8x16xf32> -> vector<8x16xf32>
    %cst_44 = arith.constant 0.353553385 : f32
    %93 = vector.broadcast %cst_44 : f32 to vector<8x16xf32>
    %94 = arith.mulf %92, %93 : vector<8x16xf32>
    %95 = vector.broadcast %10 : vector<1x16xf32> to vector<8x16xf32>
    %96 = arith.addf %94, %95 : vector<8x16xf32>
    %cst_45 = arith.constant dense<0xFF800000> : vector<8xf32>
    %97 = vector.multi_reduction <maximumf>, %96, %cst_45 [1] : vector<8x16xf32> to vector<8xf32>
    %98 = vector.shape_cast %97 : vector<8xf32> to vector<8x1xf32>
    %99 = vector.broadcast %98 : vector<8x1xf32> to vector<8x16xf32>
    %100 = arith.subf %96, %99 : vector<8x16xf32>
    %101 = math.exp %100 : vector<8x16xf32>
    %cst_46 = arith.constant dense<0.000000e+00> : vector<8xf32>
    %102 = vector.multi_reduction <add>, %101, %cst_46 [1] : vector<8x16xf32> to vector<8xf32>
    %103 = vector.shape_cast %102 : vector<8xf32> to vector<8x1xf32>
    %104 = tpu.reciprocal %103 {approx = true} : vector<8x1xf32> -> vector<8x1xf32>
    %105 = vector.broadcast %104 : vector<8x1xf32> to vector<8x16xf32>
    %106 = arith.mulf %101, %105 : vector<8x16xf32>
    %107 = arith.truncf %106 : vector<8x16xf32> to vector<8x16xbf16>
    %cst_47 = arith.constant dense<0.000000e+00> : vector<8x8xf32>
    %108 = tpu.matmul %107, %91, %cst_47 {dimension_numbers = #tpu.dot_dimension_numbers<[1], [0], [0], [1], [0, 0, 1, 1], [], []>} : vector<8x16xbf16>, vector<16x8xbf16>, vector<8x8xf32> -> vector<8x8xf32>
    %c0_48 = arith.constant 0 : index
    %c0_49 = arith.constant 0 : index
    %c24 = arith.constant 24 : index
    %109 = vector.load %arg5[%c0_48, %c0_49, %c24] : memref<1x8x32xf32, #tpu.memory_space<vmem>>, vector<1x8x8xf32>
    %110 = vector.shape_cast %109 : vector<1x8x8xf32> to vector<8x8xf32>
    %111 = vector.shape_cast %108 : vector<8x8xf32> to vector<1x8x8xf32>
    tpu.vector_store %arg5[%c0_48, %c0_49, %c24], %111 {strides = array<i32>} : memref<1x8x32xf32, #tpu.memory_space<vmem>>, vector<1x8x8xf32>,
    %c0_50 = arith.constant 0 : index
    %c3 = arith.constant 3 : index
    %c0_51 = arith.constant 0 : index
    %c0_52 = arith.constant 0 : index
    %112 = vector.load %arg6[%c0_50, %c3, %c0_51, %c0_52] : memref<1x4x8x16xf32, #tpu.memory_space<vmem>>, vector<1x1x8x16xf32>
    %113 = vector.shape_cast %112 : vector<1x1x8x16xf32> to vector<8x16xf32>
    %114 = vector.shape_cast %106 : vector<8x16xf32> to vector<1x1x8x16xf32>
    tpu.vector_store %arg6[%c0_50, %c3, %c0_51, %c0_52], %114 {strides = array<i32>} : memref<1x4x8x16xf32, #tpu.memory_space<vmem>>, vector<1x1x8x16xf32>,
    return
  }
  func.func @transform_0(%arg0: i32) -> (i32, i32, i32) {
    %c0_i32 = arith.constant 0 : i32
    %c0_i32_0 = arith.constant 0 : i32
    %c0_i32_1 = arith.constant 0 : i32
    return %arg0, %c0_i32, %c0_i32_0 : i32, i32, i32
  }
  func.func @transform_1(%arg0: i32) -> (i32, i32, i32) {
    %c0_i32 = arith.constant 0 : i32
    %c0_i32_0 = arith.constant 0 : i32
    %c0_i32_1 = arith.constant 0 : i32
    return %arg0, %c0_i32, %c0_i32_0 : i32, i32, i32
  }
  func.func @transform_2(%arg0: i32) -> (i32, i32, i32) {
    %c0_i32 = arith.constant 0 : i32
    %c0_i32_0 = arith.constant 0 : i32
    %c0_i32_1 = arith.constant 0 : i32
    return %arg0, %c0_i32, %c0_i32_0 : i32, i32, i32
  }
  func.func @transform_3(%arg0: i32) -> (i32, i32, i32, i32) {
    %c0_i32 = arith.constant 0 : i32
    %c0_i32_0 = arith.constant 0 : i32
    %c0_i32_1 = arith.constant 0 : i32
    %c0_i32_2 = arith.constant 0 : i32
    return %arg0, %c0_i32, %c0_i32_0, %c0_i32_1 : i32, i32, i32, i32
  }
  func.func @transform_4(%arg0: i32) -> (i32, i32, i32) {
    %c0_i32 = arith.constant 0 : i32
    %c0_i32_0 = arith.constant 0 : i32
    %c0_i32_1 = arith.constant 0 : i32
    return %arg0, %c0_i32, %c0_i32_0 : i32, i32, i32
  }
  func.func @transform_5(%arg0: i32) -> (i32, i32, i32, i32) {
    %c0_i32 = arith.constant 0 : i32
    %c0_i32_0 = arith.constant 0 : i32
    %c0_i32_1 = arith.constant 0 : i32
    %c0_i32_2 = arith.constant 0 : i32
    return %arg0, %c0_i32, %c0_i32_0, %c0_i32_1 : i32, i32, i32, i32
  }
}

module attributes {stable_mosaic.version = 11 : i64} {
  func.func @_linear_add_ln_kernel(%arg0: i32, %arg1: i32, %arg2: memref<16x32xf32, #tpu.memory_space<vmem>>, %arg3: memref<32x32xbf16, #tpu.memory_space<vmem>>, %arg4: memref<1x32xf32, #tpu.memory_space<vmem>>, %arg5: memref<16x32xf32, #tpu.memory_space<vmem>>, %arg6: memref<1x32xf32, #tpu.memory_space<vmem>>, %arg7: memref<1x32xf32, #tpu.memory_space<vmem>>, %arg8: memref<16x32xf32, #tpu.memory_space<vmem>>, %arg9: memref<16x32xf32, #tpu.memory_space<vmem>>) attributes {dimension_semantics = [#tpu.dimension_semantics<parallel>, #tpu.dimension_semantics<arbitrary>], iteration_bounds = array<i64: 1, 1>, scalar_prefetch = 0 : i64, scratch_operands = 1 : i64, tpu.core_type = #tpu.core_type<tc>, window_params = [{transform_indices = @transform_0, window_bounds = array<i64: 16, 32>}, {transform_indices = @transform_1, window_bounds = array<i64: 32, 32>}, {pipeline_mode = #tpu.pipeline_mode<synchronous>, transform_indices = @transform_2, window_bounds = array<i64: 1, 32>}, {transform_indices = @transform_3, window_bounds = array<i64: 16, 32>}, {pipeline_mode = #tpu.pipeline_mode<synchronous>, transform_indices = @transform_4, window_bounds = array<i64: 1, 32>}, {pipeline_mode = #tpu.pipeline_mode<synchronous>, transform_indices = @transform_5, window_bounds = array<i64: 1, 32>}, {transform_indices = @transform_6, window_bounds = array<i64: 16, 32>}]} {
    %c0_i32 = arith.constant 0 : i32
    %0 = arith.cmpi eq, %arg1, %c0_i32 : i32
    %1 = arith.extui %0 : i1 to i32
    %c0_i32_0 = arith.constant 0 : i32
    %2 = arith.cmpi ne, %1, %c0_i32_0 : i32
    scf.if %2 {
      %cst_10 = arith.constant 0.000000e+00 : f32
      %13 = vector.broadcast %cst_10 : f32 to vector<16x32xf32>
      %c0_11 = arith.constant 0 : index
      %c0_12 = arith.constant 0 : index
      %14 = vector.load %arg9[%c0_11, %c0_12] : memref<16x32xf32, #tpu.memory_space<vmem>>, vector<16x32xf32>
      tpu.vector_store %arg9[%c0_11, %c0_12], %13 {strides = array<i32>} : memref<16x32xf32, #tpu.memory_space<vmem>>, vector<16x32xf32>,
    } else {
    }
    %c0 = arith.constant 0 : index
    %c0_1 = arith.constant 0 : index
    %3 = vector.load %arg9[%c0, %c0_1] : memref<16x32xf32, #tpu.memory_space<vmem>>, vector<16x32xf32>
    %c0_2 = arith.constant 0 : index
    %c0_3 = arith.constant 0 : index
    %4 = vector.load %arg2[%c0_2, %c0_3] : memref<16x32xf32, #tpu.memory_space<vmem>>, vector<16x32xf32>
    %5 = arith.truncf %4 : vector<16x32xf32> to vector<16x32xbf16>
    %c0_4 = arith.constant 0 : index
    %c0_5 = arith.constant 0 : index
    %6 = vector.load %arg3[%c0_4, %c0_5] : memref<32x32xbf16, #tpu.memory_space<vmem>>, vector<32x32xbf16>
    %cst = arith.constant dense<0.000000e+00> : vector<16x32xf32>
    %7 = tpu.matmul %5, %6, %cst {dimension_numbers = #tpu.dot_dimension_numbers<[1], [0], [0], [1], [0, 0, 1, 1], [], []>} : vector<16x32xbf16>, vector<32x32xbf16>, vector<16x32xf32> -> vector<16x32xf32>
    %8 = arith.addf %3, %7 : vector<16x32xf32>
    %c0_6 = arith.constant 0 : index
    %c0_7 = arith.constant 0 : index
    %9 = vector.load %arg9[%c0_6, %c0_7] : memref<16x32xf32, #tpu.memory_space<vmem>>, vector<16x32xf32>
    tpu.vector_store %arg9[%c0_6, %c0_7], %8 {strides = array<i32>} : memref<16x32xf32, #tpu.memory_space<vmem>>, vector<16x32xf32>,
    %c0_i32_8 = arith.constant 0 : i32
    %10 = arith.cmpi eq, %arg1, %c0_i32_8 : i32
    %11 = arith.extui %10 : i1 to i32
    %c0_i32_9 = arith.constant 0 : i32
    %12 = arith.cmpi ne, %11, %c0_i32_9 : i32
    scf.if %12 {
      %c0_10 = arith.constant 0 : index
      %c0_11 = arith.constant 0 : index
      %13 = vector.load %arg9[%c0_10, %c0_11] : memref<16x32xf32, #tpu.memory_space<vmem>>, vector<16x32xf32>
      %c0_12 = arith.constant 0 : index
      %c0_13 = arith.constant 0 : index
      %14 = vector.load %arg4[%c0_12, %c0_13] : memref<1x32xf32, #tpu.memory_space<vmem>>, vector<1x32xf32>
      %15 = vector.broadcast %14 : vector<1x32xf32> to vector<16x32xf32>
      %16 = arith.addf %13, %15 : vector<16x32xf32>
      %c0_14 = arith.constant 0 : index
      %c0_15 = arith.constant 0 : index
      %17 = vector.load %arg5[%c0_14, %c0_15] : memref<16x32xf32, #tpu.memory_space<vmem>>, vector<16x32xf32>
      %18 = arith.addf %16, %17 : vector<16x32xf32>
      %cst_16 = arith.constant dense<0.000000e+00> : vector<16xf32>
      %19 = vector.multi_reduction <add>, %18, %cst_16 [1] : vector<16x32xf32> to vector<16xf32>
      %20 = vector.shape_cast %19 : vector<16xf32> to vector<16x1xf32>
      %cst_17 = arith.constant 3.200000e+01 : f32
      %21 = vector.broadcast %cst_17 : f32 to vector<16x1xf32>
      %22 = arith.divf %20, %21 : vector<16x1xf32>
      %23 = vector.broadcast %22 : vector<16x1xf32> to vector<16x32xf32>
      %24 = arith.subf %18, %23 : vector<16x32xf32>
      %25 = arith.mulf %24, %24 : vector<16x32xf32>
      %cst_18 = arith.constant dense<0.000000e+00> : vector<16xf32>
      %26 = vector.multi_reduction <add>, %25, %cst_18 [1] : vector<16x32xf32> to vector<16xf32>
      %27 = vector.shape_cast %26 : vector<16xf32> to vector<16x1xf32>
      %cst_19 = arith.constant 3.200000e+01 : f32
      %28 = vector.broadcast %cst_19 : f32 to vector<16x1xf32>
      %29 = arith.divf %27, %28 : vector<16x1xf32>
      %30 = vector.broadcast %22 : vector<16x1xf32> to vector<16x32xf32>
      %31 = arith.subf %18, %30 : vector<16x32xf32>
      %cst_20 = arith.constant 9.99999996E-13 : f32
      %32 = vector.broadcast %cst_20 : f32 to vector<16x1xf32>
      %33 = arith.addf %29, %32 : vector<16x1xf32>
      %34 = math.rsqrt %33 : vector<16x1xf32>
      %35 = vector.broadcast %34 : vector<16x1xf32> to vector<16x32xf32>
      %36 = arith.mulf %31, %35 : vector<16x32xf32>
      %c0_21 = arith.constant 0 : index
      %c0_22 = arith.constant 0 : index
      %37 = vector.load %arg6[%c0_21, %c0_22] : memref<1x32xf32, #tpu.memory_space<vmem>>, vector<1x32xf32>
      %38 = vector.broadcast %37 : vector<1x32xf32> to vector<16x32xf32>
      %39 = arith.mulf %36, %38 : vector<16x32xf32>
      %c0_23 = arith.constant 0 : index
      %c0_24 = arith.constant 0 : index
      %40 = vector.load %arg7[%c0_23, %c0_24] : memref<1x32xf32, #tpu.memory_space<vmem>>, vector<1x32xf32>
      %41 = vector.broadcast %40 : vector<1x32xf32> to vector<16x32xf32>
      %42 = arith.addf %39, %41 : vector<16x32xf32>
      %c0_25 = arith.constant 0 : index
      %c0_26 = arith.constant 0 : index
      %43 = vector.load %arg8[%c0_25, %c0_26] : memref<16x32xf32, #tpu.memory_space<vmem>>, vector<16x32xf32>
      tpu.vector_store %arg8[%c0_25, %c0_26], %42 {strides = array<i32>} : memref<16x32xf32, #tpu.memory_space<vmem>>, vector<16x32xf32>,
    } else {
    }
    return
  }
  func.func @transform_0(%arg0: i32, %arg1: i32) -> (i32, i32) {
    %c0_i32 = arith.constant 0 : i32
    return %arg0, %arg1 : i32, i32
  }
  func.func @transform_1(%arg0: i32, %arg1: i32) -> (i32, i32) {
    %c0_i32 = arith.constant 0 : i32
    %c0_i32_0 = arith.constant 0 : i32
    return %arg1, %c0_i32 : i32, i32
  }
  func.func @transform_2(%arg0: i32, %arg1: i32) -> (i32, i32) {
    %c0_i32 = arith.constant 0 : i32
    %c0_i32_0 = arith.constant 0 : i32
    %c0_i32_1 = arith.constant 0 : i32
    return %c0_i32, %c0_i32_0 : i32, i32
  }
  func.func @transform_3(%arg0: i32, %arg1: i32) -> (i32, i32) {
    %c0_i32 = arith.constant 0 : i32
    %c0_i32_0 = arith.constant 0 : i32
    return %arg0, %c0_i32 : i32, i32
  }
  func.func @transform_4(%arg0: i32, %arg1: i32) -> (i32, i32) {
    %c0_i32 = arith.constant 0 : i32
    %c0_i32_0 = arith.constant 0 : i32
    %c0_i32_1 = arith.constant 0 : i32
    return %c0_i32, %c0_i32_0 : i32, i32
  }
  func.func @transform_5(%arg0: i32, %arg1: i32) -> (i32, i32) {
    %c0_i32 = arith.constant 0 : i32
    %c0_i32_0 = arith.constant 0 : i32
    %c0_i32_1 = arith.constant 0 : i32
    return %c0_i32, %c0_i32_0 : i32, i32
  }
  func.func @transform_6(%arg0: i32, %arg1: i32) -> (i32, i32) {
    %c0_i32 = arith.constant 0 : i32
    %c0_i32_0 = arith.constant 0 : i32
    return %arg0, %c0_i32 : i32, i32
  }
}

module attributes {stable_mosaic.version = 11 : i64} {
  func.func @_linear_add_ln_kernel(%arg0: i32, %arg1: i32, %arg2: memref<16x64xf32, #tpu.memory_space<vmem>>, %arg3: memref<64x32xbf16, #tpu.memory_space<vmem>>, %arg4: memref<1x32xf32, #tpu.memory_space<vmem>>, %arg5: memref<16x32xf32, #tpu.memory_space<vmem>>, %arg6: memref<1x32xf32, #tpu.memory_space<vmem>>, %arg7: memref<1x32xf32, #tpu.memory_space<vmem>>, %arg8: memref<16x32xf32, #tpu.memory_space<vmem>>, %arg9: memref<16x32xf32, #tpu.memory_space<vmem>>) attributes {dimension_semantics = [#tpu.dimension_semantics<parallel>, #tpu.dimension_semantics<arbitrary>], iteration_bounds = array<i64: 1, 1>, scalar_prefetch = 0 : i64, scratch_operands = 1 : i64, tpu.core_type = #tpu.core_type<tc>, window_params = [{transform_indices = @transform_0, window_bounds = array<i64: 16, 64>}, {transform_indices = @transform_1, window_bounds = array<i64: 64, 32>}, {pipeline_mode = #tpu.pipeline_mode<synchronous>, transform_indices = @transform_2, window_bounds = array<i64: 1, 32>}, {transform_indices = @transform_3, window_bounds = array<i64: 16, 32>}, {pipeline_mode = #tpu.pipeline_mode<synchronous>, transform_indices = @transform_4, window_bounds = array<i64: 1, 32>}, {pipeline_mode = #tpu.pipeline_mode<synchronous>, transform_indices = @transform_5, window_bounds = array<i64: 1, 32>}, {transform_indices = @transform_6, window_bounds = array<i64: 16, 32>}]} {
    %c0_i32 = arith.constant 0 : i32
    %0 = arith.cmpi eq, %arg1, %c0_i32 : i32
    %1 = arith.extui %0 : i1 to i32
    %c0_i32_0 = arith.constant 0 : i32
    %2 = arith.cmpi ne, %1, %c0_i32_0 : i32
    scf.if %2 {
      %cst_10 = arith.constant 0.000000e+00 : f32
      %13 = vector.broadcast %cst_10 : f32 to vector<16x32xf32>
      %c0_11 = arith.constant 0 : index
      %c0_12 = arith.constant 0 : index
      %14 = vector.load %arg9[%c0_11, %c0_12] : memref<16x32xf32, #tpu.memory_space<vmem>>, vector<16x32xf32>
      tpu.vector_store %arg9[%c0_11, %c0_12], %13 {strides = array<i32>} : memref<16x32xf32, #tpu.memory_space<vmem>>, vector<16x32xf32>,
    } else {
    }
    %c0 = arith.constant 0 : index
    %c0_1 = arith.constant 0 : index
    %3 = vector.load %arg9[%c0, %c0_1] : memref<16x32xf32, #tpu.memory_space<vmem>>, vector<16x32xf32>
    %c0_2 = arith.constant 0 : index
    %c0_3 = arith.constant 0 : index
    %4 = vector.load %arg2[%c0_2, %c0_3] : memref<16x64xf32, #tpu.memory_space<vmem>>, vector<16x64xf32>
    %5 = arith.truncf %4 : vector<16x64xf32> to vector<16x64xbf16>
    %c0_4 = arith.constant 0 : index
    %c0_5 = arith.constant 0 : index
    %6 = vector.load %arg3[%c0_4, %c0_5] : memref<64x32xbf16, #tpu.memory_space<vmem>>, vector<64x32xbf16>
    %cst = arith.constant dense<0.000000e+00> : vector<16x32xf32>
    %7 = tpu.matmul %5, %6, %cst {dimension_numbers = #tpu.dot_dimension_numbers<[1], [0], [0], [1], [0, 0, 1, 1], [], []>} : vector<16x64xbf16>, vector<64x32xbf16>, vector<16x32xf32> -> vector<16x32xf32>
    %8 = arith.addf %3, %7 : vector<16x32xf32>
    %c0_6 = arith.constant 0 : index
    %c0_7 = arith.constant 0 : index
    %9 = vector.load %arg9[%c0_6, %c0_7] : memref<16x32xf32, #tpu.memory_space<vmem>>, vector<16x32xf32>
    tpu.vector_store %arg9[%c0_6, %c0_7], %8 {strides = array<i32>} : memref<16x32xf32, #tpu.memory_space<vmem>>, vector<16x32xf32>,
    %c0_i32_8 = arith.constant 0 : i32
    %10 = arith.cmpi eq, %arg1, %c0_i32_8 : i32
    %11 = arith.extui %10 : i1 to i32
    %c0_i32_9 = arith.constant 0 : i32
    %12 = arith.cmpi ne, %11, %c0_i32_9 : i32
    scf.if %12 {
      %c0_10 = arith.constant 0 : index
      %c0_11 = arith.constant 0 : index
      %13 = vector.load %arg9[%c0_10, %c0_11] : memref<16x32xf32, #tpu.memory_space<vmem>>, vector<16x32xf32>
      %c0_12 = arith.constant 0 : index
      %c0_13 = arith.constant 0 : index
      %14 = vector.load %arg4[%c0_12, %c0_13] : memref<1x32xf32, #tpu.memory_space<vmem>>, vector<1x32xf32>
      %15 = vector.broadcast %14 : vector<1x32xf32> to vector<16x32xf32>
      %16 = arith.addf %13, %15 : vector<16x32xf32>
      %c0_14 = arith.constant 0 : index
      %c0_15 = arith.constant 0 : index
      %17 = vector.load %arg5[%c0_14, %c0_15] : memref<16x32xf32, #tpu.memory_space<vmem>>, vector<16x32xf32>
      %18 = arith.addf %16, %17 : vector<16x32xf32>
      %cst_16 = arith.constant dense<0.000000e+00> : vector<16xf32>
      %19 = vector.multi_reduction <add>, %18, %cst_16 [1] : vector<16x32xf32> to vector<16xf32>
      %20 = vector.shape_cast %19 : vector<16xf32> to vector<16x1xf32>
      %cst_17 = arith.constant 3.200000e+01 : f32
      %21 = vector.broadcast %cst_17 : f32 to vector<16x1xf32>
      %22 = arith.divf %20, %21 : vector<16x1xf32>
      %23 = vector.broadcast %22 : vector<16x1xf32> to vector<16x32xf32>
      %24 = arith.subf %18, %23 : vector<16x32xf32>
      %25 = arith.mulf %24, %24 : vector<16x32xf32>
      %cst_18 = arith.constant dense<0.000000e+00> : vector<16xf32>
      %26 = vector.multi_reduction <add>, %25, %cst_18 [1] : vector<16x32xf32> to vector<16xf32>
      %27 = vector.shape_cast %26 : vector<16xf32> to vector<16x1xf32>
      %cst_19 = arith.constant 3.200000e+01 : f32
      %28 = vector.broadcast %cst_19 : f32 to vector<16x1xf32>
      %29 = arith.divf %27, %28 : vector<16x1xf32>
      %30 = vector.broadcast %22 : vector<16x1xf32> to vector<16x32xf32>
      %31 = arith.subf %18, %30 : vector<16x32xf32>
      %cst_20 = arith.constant 9.99999996E-13 : f32
      %32 = vector.broadcast %cst_20 : f32 to vector<16x1xf32>
      %33 = arith.addf %29, %32 : vector<16x1xf32>
      %34 = math.rsqrt %33 : vector<16x1xf32>
      %35 = vector.broadcast %34 : vector<16x1xf32> to vector<16x32xf32>
      %36 = arith.mulf %31, %35 : vector<16x32xf32>
      %c0_21 = arith.constant 0 : index
      %c0_22 = arith.constant 0 : index
      %37 = vector.load %arg6[%c0_21, %c0_22] : memref<1x32xf32, #tpu.memory_space<vmem>>, vector<1x32xf32>
      %38 = vector.broadcast %37 : vector<1x32xf32> to vector<16x32xf32>
      %39 = arith.mulf %36, %38 : vector<16x32xf32>
      %c0_23 = arith.constant 0 : index
      %c0_24 = arith.constant 0 : index
      %40 = vector.load %arg7[%c0_23, %c0_24] : memref<1x32xf32, #tpu.memory_space<vmem>>, vector<1x32xf32>
      %41 = vector.broadcast %40 : vector<1x32xf32> to vector<16x32xf32>
      %42 = arith.addf %39, %41 : vector<16x32xf32>
      %c0_25 = arith.constant 0 : index
      %c0_26 = arith.constant 0 : index
      %43 = vector.load %arg8[%c0_25, %c0_26] : memref<16x32xf32, #tpu.memory_space<vmem>>, vector<16x32xf32>
      tpu.vector_store %arg8[%c0_25, %c0_26], %42 {strides = array<i32>} : memref<16x32xf32, #tpu.memory_space<vmem>>, vector<16x32xf32>,
    } else {
    }
    return
  }
  func.func @transform_0(%arg0: i32, %arg1: i32) -> (i32, i32) {
    %c0_i32 = arith.constant 0 : i32
    return %arg0, %arg1 : i32, i32
  }
  func.func @transform_1(%arg0: i32, %arg1: i32) -> (i32, i32) {
    %c0_i32 = arith.constant 0 : i32
    %c0_i32_0 = arith.constant 0 : i32
    return %arg1, %c0_i32 : i32, i32
  }
  func.func @transform_2(%arg0: i32, %arg1: i32) -> (i32, i32) {
    %c0_i32 = arith.constant 0 : i32
    %c0_i32_0 = arith.constant 0 : i32
    %c0_i32_1 = arith.constant 0 : i32
    return %c0_i32, %c0_i32_0 : i32, i32
  }
  func.func @transform_3(%arg0: i32, %arg1: i32) -> (i32, i32) {
    %c0_i32 = arith.constant 0 : i32
    %c0_i32_0 = arith.constant 0 : i32
    return %arg0, %c0_i32 : i32, i32
  }
  func.func @transform_4(%arg0: i32, %arg1: i32) -> (i32, i32) {
    %c0_i32 = arith.constant 0 : i32
    %c0_i32_0 = arith.constant 0 : i32
    %c0_i32_1 = arith.constant 0 : i32
    return %c0_i32, %c0_i32_0 : i32, i32
  }
  func.func @transform_5(%arg0: i32, %arg1: i32) -> (i32, i32) {
    %c0_i32 = arith.constant 0 : i32
    %c0_i32_0 = arith.constant 0 : i32
    %c0_i32_1 = arith.constant 0 : i32
    return %c0_i32, %c0_i32_0 : i32, i32
  }
  func.func @transform_6(%arg0: i32, %arg1: i32) -> (i32, i32) {
    %c0_i32 = arith.constant 0 : i32
    %c0_i32_0 = arith.constant 0 : i32
    return %arg0, %c0_i32 : i32, i32
  }
}

module attributes {stable_mosaic.version = 11 : i64} {
  func.func @_linear_kernel(%arg0: i32, %arg1: i32, %arg2: i32, %arg3: memref<16x32xf32, #tpu.memory_space<vmem>>, %arg4: memref<32x64xbf16, #tpu.memory_space<vmem>>, %arg5: memref<1x64xf32, #tpu.memory_space<vmem>>, %arg6: memref<16x64xf32, #tpu.memory_space<vmem>>, %arg7: memref<16x64xf32, #tpu.memory_space<vmem>>) attributes {dimension_semantics = [#tpu.dimension_semantics<parallel>, #tpu.dimension_semantics<parallel>, #tpu.dimension_semantics<arbitrary>], iteration_bounds = array<i64: 1, 1, 1>, scalar_prefetch = 0 : i64, scratch_operands = 1 : i64, tpu.core_type = #tpu.core_type<tc>, window_params = [{transform_indices = @transform_0, window_bounds = array<i64: 16, 32>}, {transform_indices = @transform_1, window_bounds = array<i64: 32, 64>}, {transform_indices = @transform_2, window_bounds = array<i64: 1, 64>}, {transform_indices = @transform_3, window_bounds = array<i64: 16, 64>}]} {
    %c0_i32 = arith.constant 0 : i32
    %0 = arith.cmpi eq, %arg2, %c0_i32 : i32
    %1 = arith.extui %0 : i1 to i32
    %c0_i32_0 = arith.constant 0 : i32
    %2 = arith.cmpi ne, %1, %c0_i32_0 : i32
    scf.if %2 {
      %cst_10 = arith.constant 0.000000e+00 : f32
      %13 = vector.broadcast %cst_10 : f32 to vector<16x64xf32>
      %c0_11 = arith.constant 0 : index
      %c0_12 = arith.constant 0 : index
      %14 = vector.load %arg7[%c0_11, %c0_12] : memref<16x64xf32, #tpu.memory_space<vmem>>, vector<16x64xf32>
      tpu.vector_store %arg7[%c0_11, %c0_12], %13 {strides = array<i32>} : memref<16x64xf32, #tpu.memory_space<vmem>>, vector<16x64xf32>,
    } else {
    }
    %c0 = arith.constant 0 : index
    %c0_1 = arith.constant 0 : index
    %3 = vector.load %arg7[%c0, %c0_1] : memref<16x64xf32, #tpu.memory_space<vmem>>, vector<16x64xf32>
    %c0_2 = arith.constant 0 : index
    %c0_3 = arith.constant 0 : index
    %4 = vector.load %arg3[%c0_2, %c0_3] : memref<16x32xf32, #tpu.memory_space<vmem>>, vector<16x32xf32>
    %5 = arith.truncf %4 : vector<16x32xf32> to vector<16x32xbf16>
    %c0_4 = arith.constant 0 : index
    %c0_5 = arith.constant 0 : index
    %6 = vector.load %arg4[%c0_4, %c0_5] : memref<32x64xbf16, #tpu.memory_space<vmem>>, vector<32x64xbf16>
    %cst = arith.constant dense<0.000000e+00> : vector<16x64xf32>
    %7 = tpu.matmul %5, %6, %cst {dimension_numbers = #tpu.dot_dimension_numbers<[1], [0], [0], [1], [0, 0, 1, 1], [], []>} : vector<16x32xbf16>, vector<32x64xbf16>, vector<16x64xf32> -> vector<16x64xf32>
    %8 = arith.addf %3, %7 : vector<16x64xf32>
    %c0_6 = arith.constant 0 : index
    %c0_7 = arith.constant 0 : index
    %9 = vector.load %arg7[%c0_6, %c0_7] : memref<16x64xf32, #tpu.memory_space<vmem>>, vector<16x64xf32>
    tpu.vector_store %arg7[%c0_6, %c0_7], %8 {strides = array<i32>} : memref<16x64xf32, #tpu.memory_space<vmem>>, vector<16x64xf32>,
    %c0_i32_8 = arith.constant 0 : i32
    %10 = arith.cmpi eq, %arg2, %c0_i32_8 : i32
    %11 = arith.extui %10 : i1 to i32
    %c0_i32_9 = arith.constant 0 : i32
    %12 = arith.cmpi ne, %11, %c0_i32_9 : i32
    scf.if %12 {
      %c0_10 = arith.constant 0 : index
      %c0_11 = arith.constant 0 : index
      %13 = vector.load %arg7[%c0_10, %c0_11] : memref<16x64xf32, #tpu.memory_space<vmem>>, vector<16x64xf32>
      %c0_12 = arith.constant 0 : index
      %c0_13 = arith.constant 0 : index
      %14 = vector.load %arg5[%c0_12, %c0_13] : memref<1x64xf32, #tpu.memory_space<vmem>>, vector<1x64xf32>
      %15 = vector.broadcast %14 : vector<1x64xf32> to vector<16x64xf32>
      %16 = arith.addf %13, %15 : vector<16x64xf32>
      %cst_14 = arith.constant 5.000000e-01 : f32
      %17 = vector.broadcast %cst_14 : f32 to vector<16x64xf32>
      %18 = arith.mulf %17, %16 : vector<16x64xf32>
      %cst_15 = arith.constant 4.471500e-02 : f32
      %19 = vector.broadcast %cst_15 : f32 to vector<16x64xf32>
      %20 = arith.mulf %19, %16 : vector<16x64xf32>
      %21 = arith.mulf %20, %16 : vector<16x64xf32>
      %22 = arith.mulf %21, %16 : vector<16x64xf32>
      %23 = arith.addf %16, %22 : vector<16x64xf32>
      %cst_16 = arith.constant 0.797884583 : f32
      %24 = vector.broadcast %cst_16 : f32 to vector<16x64xf32>
      %25 = arith.mulf %24, %23 : vector<16x64xf32>
      %26 = math.tanh %25 : vector<16x64xf32>
      %cst_17 = arith.constant 1.000000e+00 : f32
      %27 = vector.broadcast %cst_17 : f32 to vector<16x64xf32>
      %28 = arith.addf %27, %26 : vector<16x64xf32>
      %29 = arith.mulf %18, %28 : vector<16x64xf32>
      %c0_18 = arith.constant 0 : index
      %c0_19 = arith.constant 0 : index
      %30 = vector.load %arg6[%c0_18, %c0_19] : memref<16x64xf32, #tpu.memory_space<vmem>>, vector<16x64xf32>
      tpu.vector_store %arg6[%c0_18, %c0_19], %29 {strides = array<i32>} : memref<16x64xf32, #tpu.memory_space<vmem>>, vector<16x64xf32>,
    } else {
    }
    return
  }
  func.func @transform_0(%arg0: i32, %arg1: i32, %arg2: i32) -> (i32, i32) {
    %c0_i32 = arith.constant 0 : i32
    return %arg0, %arg2 : i32, i32
  }
  func.func @transform_1(%arg0: i32, %arg1: i32, %arg2: i32) -> (i32, i32) {
    %c0_i32 = arith.constant 0 : i32
    return %arg2, %arg1 : i32, i32
  }
  func.func @transform_2(%arg0: i32, %arg1: i32, %arg2: i32) -> (i32, i32) {
    %c0_i32 = arith.constant 0 : i32
    %c0_i32_0 = arith.constant 0 : i32
    return %c0_i32, %arg1 : i32, i32
  }
  func.func @transform_3(%arg0: i32, %arg1: i32, %arg2: i32) -> (i32, i32) {
    %c0_i32 = arith.constant 0 : i32
    return %arg0, %arg1 : i32, i32
  }
}

module attributes {stable_mosaic.version = 11 : i64} {
  func.func @_cross_attn_kernel(%arg0: i32, %arg1: memref<1x16x32xf32, #tpu.memory_space<vmem>>, %arg2: memref<1x8x32xf32, #tpu.memory_space<vmem>>, %arg3: memref<1x8x32xf32, #tpu.memory_space<vmem>>, %arg4: memref<1x1x1x8xf32, #tpu.memory_space<vmem>>, %arg5: memref<1x16x32xf32, #tpu.memory_space<vmem>>, %arg6: memref<1x4x16x8xf32, #tpu.memory_space<vmem>>) attributes {dimension_semantics = [#tpu.dimension_semantics<parallel>], iteration_bounds = array<i64: 2>, scalar_prefetch = 0 : i64, scratch_operands = 0 : i64, tpu.core_type = #tpu.core_type<tc>, window_params = [{transform_indices = @transform_0, window_bounds = array<i64: 1, 16, 32>}, {transform_indices = @transform_1, window_bounds = array<i64: 1, 8, 32>}, {transform_indices = @transform_2, window_bounds = array<i64: 1, 8, 32>}, {transform_indices = @transform_3, window_bounds = array<i64: 1, 1, 1, 8>}, {transform_indices = @transform_4, window_bounds = array<i64: 1, 16, 32>}, {transform_indices = @transform_5, window_bounds = array<i64: 1, 4, 16, 8>}]} {
    %c0 = arith.constant 0 : index
    %c0_0 = arith.constant 0 : index
    %c0_1 = arith.constant 0 : index
    %0 = vector.load %arg1[%c0, %c0_0, %c0_1] : memref<1x16x32xf32, #tpu.memory_space<vmem>>, vector<1x16x32xf32>
    %1 = vector.shape_cast %0 : vector<1x16x32xf32> to vector<16x32xf32>
    %2 = arith.truncf %1 : vector<16x32xf32> to vector<16x32xbf16>
    %c0_2 = arith.constant 0 : index
    %c0_3 = arith.constant 0 : index
    %c0_4 = arith.constant 0 : index
    %3 = vector.load %arg2[%c0_2, %c0_3, %c0_4] : memref<1x8x32xf32, #tpu.memory_space<vmem>>, vector<1x8x32xf32>
    %4 = vector.shape_cast %3 : vector<1x8x32xf32> to vector<8x32xf32>
    %5 = arith.truncf %4 : vector<8x32xf32> to vector<8x32xbf16>
    %c0_5 = arith.constant 0 : index
    %c0_6 = arith.constant 0 : index
    %c0_7 = arith.constant 0 : index
    %6 = vector.load %arg3[%c0_5, %c0_6, %c0_7] : memref<1x8x32xf32, #tpu.memory_space<vmem>>, vector<1x8x32xf32>
    %7 = vector.shape_cast %6 : vector<1x8x32xf32> to vector<8x32xf32>
    %8 = arith.truncf %7 : vector<8x32xf32> to vector<8x32xbf16>
    %c0_8 = arith.constant 0 : index
    %c0_9 = arith.constant 0 : index
    %c0_10 = arith.constant 0 : index
    %c0_11 = arith.constant 0 : index
    %9 = vector.load %arg4[%c0_8, %c0_9, %c0_10, %c0_11] : memref<1x1x1x8xf32, #tpu.memory_space<vmem>>, vector<1x1x1x8xf32>
    %10 = vector.shape_cast %9 : vector<1x1x1x8xf32> to vector<1x8xf32>
    %11 = vector.extract_strided_slice %2 {offsets = [0, 0], sizes = [16, 8], strides = [1, 1]} : vector<16x32xbf16> to vector<16x8xbf16>
    %12 = vector.extract_strided_slice %5 {offsets = [0, 0], sizes = [8, 8], strides = [1, 1]} : vector<8x32xbf16> to vector<8x8xbf16>
    %13 = vector.extract_strided_slice %8 {offsets = [0, 0], sizes = [8, 8], strides = [1, 1]} : vector<8x32xbf16> to vector<8x8xbf16>
    %cst = arith.constant dense<0.000000e+00> : vector<16x8xf32>
    %14 = tpu.matmul %11, %12, %cst {dimension_numbers = #tpu.dot_dimension_numbers<[1], [1], [0], [0], [0, 0, 1, 0], [], []>} : vector<16x8xbf16>, vector<8x8xbf16>, vector<16x8xf32> -> vector<16x8xf32>
    %cst_12 = arith.constant 0.353553385 : f32
    %15 = vector.broadcast %cst_12 : f32 to vector<16x8xf32>
    %16 = arith.mulf %14, %15 : vector<16x8xf32>
    %17 = vector.broadcast %10 : vector<1x8xf32> to vector<16x8xf32>
    %18 = arith.addf %16, %17 : vector<16x8xf32>
    %cst_13 = arith.constant dense<0xFF800000> : vector<16xf32>
    %19 = vector.multi_reduction <maximumf>, %18, %cst_13 [1] : vector<16x8xf32> to vector<16xf32>
    %20 = vector.shape_cast %19 : vector<16xf32> to vector<16x1xf32>
    %21 = vector.broadcast %20 : vector<16x1xf32> to vector<16x8xf32>
    %22 = arith.subf %18, %21 : vector<16x8xf32>
    %23 = math.exp %22 : vector<16x8xf32>
    %cst_14 = arith.constant dense<0.000000e+00> : vector<16xf32>
    %24 = vector.multi_reduction <add>, %23, %cst_14 [1] : vector<16x8xf32> to vector<16xf32>
    %25 = vector.shape_cast %24 : vector<16xf32> to vector<16x1xf32>
    %26 = tpu.reciprocal %25 {approx = true} : vector<16x1xf32> -> vector<16x1xf32>
    %27 = vector.broadcast %26 : vector<16x1xf32> to vector<16x8xf32>
    %28 = arith.mulf %23, %27 : vector<16x8xf32>
    %29 = arith.truncf %28 : vector<16x8xf32> to vector<16x8xbf16>
    %cst_15 = arith.constant dense<0.000000e+00> : vector<16x8xf32>
    %30 = tpu.matmul %29, %13, %cst_15 {dimension_numbers = #tpu.dot_dimension_numbers<[1], [0], [0], [1], [0, 0, 1, 1], [], []>} : vector<16x8xbf16>, vector<8x8xbf16>, vector<16x8xf32> -> vector<16x8xf32>
    %c0_16 = arith.constant 0 : index
    %c0_17 = arith.constant 0 : index
    %c0_18 = arith.constant 0 : index
    %31 = vector.load %arg5[%c0_16, %c0_17, %c0_18] : memref<1x16x32xf32, #tpu.memory_space<vmem>>, vector<1x16x8xf32>
    %32 = vector.shape_cast %31 : vector<1x16x8xf32> to vector<16x8xf32>
    %33 = vector.shape_cast %30 : vector<16x8xf32> to vector<1x16x8xf32>
    tpu.vector_store %arg5[%c0_16, %c0_17, %c0_18], %33 {strides = array<i32>} : memref<1x16x32xf32, #tpu.memory_space<vmem>>, vector<1x16x8xf32>,
    %c0_19 = arith.constant 0 : index
    %c0_20 = arith.constant 0 : index
    %c0_21 = arith.constant 0 : index
    %c0_22 = arith.constant 0 : index
    %34 = vector.load %arg6[%c0_19, %c0_20, %c0_21, %c0_22] : memref<1x4x16x8xf32, #tpu.memory_space<vmem>>, vector<1x1x16x8xf32>
    %35 = vector.shape_cast %34 : vector<1x1x16x8xf32> to vector<16x8xf32>
    %36 = vector.shape_cast %28 : vector<16x8xf32> to vector<1x1x16x8xf32>
    tpu.vector_store %arg6[%c0_19, %c0_20, %c0_21, %c0_22], %36 {strides = array<i32>} : memref<1x4x16x8xf32, #tpu.memory_space<vmem>>, vector<1x1x16x8xf32>,
    %37 = vector.extract_strided_slice %2 {offsets = [0, 8], sizes = [16, 8], strides = [1, 1]} : vector<16x32xbf16> to vector<16x8xbf16>
    %38 = vector.extract_strided_slice %5 {offsets = [0, 8], sizes = [8, 8], strides = [1, 1]} : vector<8x32xbf16> to vector<8x8xbf16>
    %39 = vector.extract_strided_slice %8 {offsets = [0, 8], sizes = [8, 8], strides = [1, 1]} : vector<8x32xbf16> to vector<8x8xbf16>
    %cst_23 = arith.constant dense<0.000000e+00> : vector<16x8xf32>
    %40 = tpu.matmul %37, %38, %cst_23 {dimension_numbers = #tpu.dot_dimension_numbers<[1], [1], [0], [0], [0, 0, 1, 0], [], []>} : vector<16x8xbf16>, vector<8x8xbf16>, vector<16x8xf32> -> vector<16x8xf32>
    %cst_24 = arith.constant 0.353553385 : f32
    %41 = vector.broadcast %cst_24 : f32 to vector<16x8xf32>
    %42 = arith.mulf %40, %41 : vector<16x8xf32>
    %43 = vector.broadcast %10 : vector<1x8xf32> to vector<16x8xf32>
    %44 = arith.addf %42, %43 : vector<16x8xf32>
    %cst_25 = arith.constant dense<0xFF800000> : vector<16xf32>
    %45 = vector.multi_reduction <maximumf>, %44, %cst_25 [1] : vector<16x8xf32> to vector<16xf32>
    %46 = vector.shape_cast %45 : vector<16xf32> to vector<16x1xf32>
    %47 = vector.broadcast %46 : vector<16x1xf32> to vector<16x8xf32>
    %48 = arith.subf %44, %47 : vector<16x8xf32>
    %49 = math.exp %48 : vector<16x8xf32>
    %cst_26 = arith.constant dense<0.000000e+00> : vector<16xf32>
    %50 = vector.multi_reduction <add>, %49, %cst_26 [1] : vector<16x8xf32> to vector<16xf32>
    %51 = vector.shape_cast %50 : vector<16xf32> to vector<16x1xf32>
    %52 = tpu.reciprocal %51 {approx = true} : vector<16x1xf32> -> vector<16x1xf32>
    %53 = vector.broadcast %52 : vector<16x1xf32> to vector<16x8xf32>
    %54 = arith.mulf %49, %53 : vector<16x8xf32>
    %55 = arith.truncf %54 : vector<16x8xf32> to vector<16x8xbf16>
    %cst_27 = arith.constant dense<0.000000e+00> : vector<16x8xf32>
    %56 = tpu.matmul %55, %39, %cst_27 {dimension_numbers = #tpu.dot_dimension_numbers<[1], [0], [0], [1], [0, 0, 1, 1], [], []>} : vector<16x8xbf16>, vector<8x8xbf16>, vector<16x8xf32> -> vector<16x8xf32>
    %c0_28 = arith.constant 0 : index
    %c0_29 = arith.constant 0 : index
    %c8 = arith.constant 8 : index
    %57 = vector.load %arg5[%c0_28, %c0_29, %c8] : memref<1x16x32xf32, #tpu.memory_space<vmem>>, vector<1x16x8xf32>
    %58 = vector.shape_cast %57 : vector<1x16x8xf32> to vector<16x8xf32>
    %59 = vector.shape_cast %56 : vector<16x8xf32> to vector<1x16x8xf32>
    tpu.vector_store %arg5[%c0_28, %c0_29, %c8], %59 {strides = array<i32>} : memref<1x16x32xf32, #tpu.memory_space<vmem>>, vector<1x16x8xf32>,
    %c0_30 = arith.constant 0 : index
    %c1 = arith.constant 1 : index
    %c0_31 = arith.constant 0 : index
    %c0_32 = arith.constant 0 : index
    %60 = vector.load %arg6[%c0_30, %c1, %c0_31, %c0_32] : memref<1x4x16x8xf32, #tpu.memory_space<vmem>>, vector<1x1x16x8xf32>
    %61 = vector.shape_cast %60 : vector<1x1x16x8xf32> to vector<16x8xf32>
    %62 = vector.shape_cast %54 : vector<16x8xf32> to vector<1x1x16x8xf32>
    tpu.vector_store %arg6[%c0_30, %c1, %c0_31, %c0_32], %62 {strides = array<i32>} : memref<1x4x16x8xf32, #tpu.memory_space<vmem>>, vector<1x1x16x8xf32>,
    %63 = vector.extract_strided_slice %2 {offsets = [0, 16], sizes = [16, 8], strides = [1, 1]} : vector<16x32xbf16> to vector<16x8xbf16>
    %64 = vector.extract_strided_slice %5 {offsets = [0, 16], sizes = [8, 8], strides = [1, 1]} : vector<8x32xbf16> to vector<8x8xbf16>
    %65 = vector.extract_strided_slice %8 {offsets = [0, 16], sizes = [8, 8], strides = [1, 1]} : vector<8x32xbf16> to vector<8x8xbf16>
    %cst_33 = arith.constant dense<0.000000e+00> : vector<16x8xf32>
    %66 = tpu.matmul %63, %64, %cst_33 {dimension_numbers = #tpu.dot_dimension_numbers<[1], [1], [0], [0], [0, 0, 1, 0], [], []>} : vector<16x8xbf16>, vector<8x8xbf16>, vector<16x8xf32> -> vector<16x8xf32>
    %cst_34 = arith.constant 0.353553385 : f32
    %67 = vector.broadcast %cst_34 : f32 to vector<16x8xf32>
    %68 = arith.mulf %66, %67 : vector<16x8xf32>
    %69 = vector.broadcast %10 : vector<1x8xf32> to vector<16x8xf32>
    %70 = arith.addf %68, %69 : vector<16x8xf32>
    %cst_35 = arith.constant dense<0xFF800000> : vector<16xf32>
    %71 = vector.multi_reduction <maximumf>, %70, %cst_35 [1] : vector<16x8xf32> to vector<16xf32>
    %72 = vector.shape_cast %71 : vector<16xf32> to vector<16x1xf32>
    %73 = vector.broadcast %72 : vector<16x1xf32> to vector<16x8xf32>
    %74 = arith.subf %70, %73 : vector<16x8xf32>
    %75 = math.exp %74 : vector<16x8xf32>
    %cst_36 = arith.constant dense<0.000000e+00> : vector<16xf32>
    %76 = vector.multi_reduction <add>, %75, %cst_36 [1] : vector<16x8xf32> to vector<16xf32>
    %77 = vector.shape_cast %76 : vector<16xf32> to vector<16x1xf32>
    %78 = tpu.reciprocal %77 {approx = true} : vector<16x1xf32> -> vector<16x1xf32>
    %79 = vector.broadcast %78 : vector<16x1xf32> to vector<16x8xf32>
    %80 = arith.mulf %75, %79 : vector<16x8xf32>
    %81 = arith.truncf %80 : vector<16x8xf32> to vector<16x8xbf16>
    %cst_37 = arith.constant dense<0.000000e+00> : vector<16x8xf32>
    %82 = tpu.matmul %81, %65, %cst_37 {dimension_numbers = #tpu.dot_dimension_numbers<[1], [0], [0], [1], [0, 0, 1, 1], [], []>} : vector<16x8xbf16>, vector<8x8xbf16>, vector<16x8xf32> -> vector<16x8xf32>
    %c0_38 = arith.constant 0 : index
    %c0_39 = arith.constant 0 : index
    %c16 = arith.constant 16 : index
    %83 = vector.load %arg5[%c0_38, %c0_39, %c16] : memref<1x16x32xf32, #tpu.memory_space<vmem>>, vector<1x16x8xf32>
    %84 = vector.shape_cast %83 : vector<1x16x8xf32> to vector<16x8xf32>
    %85 = vector.shape_cast %82 : vector<16x8xf32> to vector<1x16x8xf32>
    tpu.vector_store %arg5[%c0_38, %c0_39, %c16], %85 {strides = array<i32>} : memref<1x16x32xf32, #tpu.memory_space<vmem>>, vector<1x16x8xf32>,
    %c0_40 = arith.constant 0 : index
    %c2 = arith.constant 2 : index
    %c0_41 = arith.constant 0 : index
    %c0_42 = arith.constant 0 : index
    %86 = vector.load %arg6[%c0_40, %c2, %c0_41, %c0_42] : memref<1x4x16x8xf32, #tpu.memory_space<vmem>>, vector<1x1x16x8xf32>
    %87 = vector.shape_cast %86 : vector<1x1x16x8xf32> to vector<16x8xf32>
    %88 = vector.shape_cast %80 : vector<16x8xf32> to vector<1x1x16x8xf32>
    tpu.vector_store %arg6[%c0_40, %c2, %c0_41, %c0_42], %88 {strides = array<i32>} : memref<1x4x16x8xf32, #tpu.memory_space<vmem>>, vector<1x1x16x8xf32>,
    %89 = vector.extract_strided_slice %2 {offsets = [0, 24], sizes = [16, 8], strides = [1, 1]} : vector<16x32xbf16> to vector<16x8xbf16>
    %90 = vector.extract_strided_slice %5 {offsets = [0, 24], sizes = [8, 8], strides = [1, 1]} : vector<8x32xbf16> to vector<8x8xbf16>
    %91 = vector.extract_strided_slice %8 {offsets = [0, 24], sizes = [8, 8], strides = [1, 1]} : vector<8x32xbf16> to vector<8x8xbf16>
    %cst_43 = arith.constant dense<0.000000e+00> : vector<16x8xf32>
    %92 = tpu.matmul %89, %90, %cst_43 {dimension_numbers = #tpu.dot_dimension_numbers<[1], [1], [0], [0], [0, 0, 1, 0], [], []>} : vector<16x8xbf16>, vector<8x8xbf16>, vector<16x8xf32> -> vector<16x8xf32>
    %cst_44 = arith.constant 0.353553385 : f32
    %93 = vector.broadcast %cst_44 : f32 to vector<16x8xf32>
    %94 = arith.mulf %92, %93 : vector<16x8xf32>
    %95 = vector.broadcast %10 : vector<1x8xf32> to vector<16x8xf32>
    %96 = arith.addf %94, %95 : vector<16x8xf32>
    %cst_45 = arith.constant dense<0xFF800000> : vector<16xf32>
    %97 = vector.multi_reduction <maximumf>, %96, %cst_45 [1] : vector<16x8xf32> to vector<16xf32>
    %98 = vector.shape_cast %97 : vector<16xf32> to vector<16x1xf32>
    %99 = vector.broadcast %98 : vector<16x1xf32> to vector<16x8xf32>
    %100 = arith.subf %96, %99 : vector<16x8xf32>
    %101 = math.exp %100 : vector<16x8xf32>
    %cst_46 = arith.constant dense<0.000000e+00> : vector<16xf32>
    %102 = vector.multi_reduction <add>, %101, %cst_46 [1] : vector<16x8xf32> to vector<16xf32>
    %103 = vector.shape_cast %102 : vector<16xf32> to vector<16x1xf32>
    %104 = tpu.reciprocal %103 {approx = true} : vector<16x1xf32> -> vector<16x1xf32>
    %105 = vector.broadcast %104 : vector<16x1xf32> to vector<16x8xf32>
    %106 = arith.mulf %101, %105 : vector<16x8xf32>
    %107 = arith.truncf %106 : vector<16x8xf32> to vector<16x8xbf16>
    %cst_47 = arith.constant dense<0.000000e+00> : vector<16x8xf32>
    %108 = tpu.matmul %107, %91, %cst_47 {dimension_numbers = #tpu.dot_dimension_numbers<[1], [0], [0], [1], [0, 0, 1, 1], [], []>} : vector<16x8xbf16>, vector<8x8xbf16>, vector<16x8xf32> -> vector<16x8xf32>
    %c0_48 = arith.constant 0 : index
    %c0_49 = arith.constant 0 : index
    %c24 = arith.constant 24 : index
    %109 = vector.load %arg5[%c0_48, %c0_49, %c24] : memref<1x16x32xf32, #tpu.memory_space<vmem>>, vector<1x16x8xf32>
    %110 = vector.shape_cast %109 : vector<1x16x8xf32> to vector<16x8xf32>
    %111 = vector.shape_cast %108 : vector<16x8xf32> to vector<1x16x8xf32>
    tpu.vector_store %arg5[%c0_48, %c0_49, %c24], %111 {strides = array<i32>} : memref<1x16x32xf32, #tpu.memory_space<vmem>>, vector<1x16x8xf32>,
    %c0_50 = arith.constant 0 : index
    %c3 = arith.constant 3 : index
    %c0_51 = arith.constant 0 : index
    %c0_52 = arith.constant 0 : index
    %112 = vector.load %arg6[%c0_50, %c3, %c0_51, %c0_52] : memref<1x4x16x8xf32, #tpu.memory_space<vmem>>, vector<1x1x16x8xf32>
    %113 = vector.shape_cast %112 : vector<1x1x16x8xf32> to vector<16x8xf32>
    %114 = vector.shape_cast %106 : vector<16x8xf32> to vector<1x1x16x8xf32>
    tpu.vector_store %arg6[%c0_50, %c3, %c0_51, %c0_52], %114 {strides = array<i32>} : memref<1x4x16x8xf32, #tpu.memory_space<vmem>>, vector<1x1x16x8xf32>,
    return
  }
  func.func @transform_0(%arg0: i32) -> (i32, i32, i32) {
    %c0_i32 = arith.constant 0 : i32
    %c0_i32_0 = arith.constant 0 : i32
    %c0_i32_1 = arith.constant 0 : i32
    return %arg0, %c0_i32, %c0_i32_0 : i32, i32, i32
  }
  func.func @transform_1(%arg0: i32) -> (i32, i32, i32) {
    %c0_i32 = arith.constant 0 : i32
    %c0_i32_0 = arith.constant 0 : i32
    %c0_i32_1 = arith.constant 0 : i32
    return %arg0, %c0_i32, %c0_i32_0 : i32, i32, i32
  }
  func.func @transform_2(%arg0: i32) -> (i32, i32, i32) {
    %c0_i32 = arith.constant 0 : i32
    %c0_i32_0 = arith.constant 0 : i32
    %c0_i32_1 = arith.constant 0 : i32
    return %arg0, %c0_i32, %c0_i32_0 : i32, i32, i32
  }
  func.func @transform_3(%arg0: i32) -> (i32, i32, i32, i32) {
    %c0_i32 = arith.constant 0 : i32
    %c0_i32_0 = arith.constant 0 : i32
    %c0_i32_1 = arith.constant 0 : i32
    %c0_i32_2 = arith.constant 0 : i32
    return %arg0, %c0_i32, %c0_i32_0, %c0_i32_1 : i32, i32, i32, i32
  }
  func.func @transform_4(%arg0: i32) -> (i32, i32, i32) {
    %c0_i32 = arith.constant 0 : i32
    %c0_i32_0 = arith.constant 0 : i32
    %c0_i32_1 = arith.constant 0 : i32
    return %arg0, %c0_i32, %c0_i32_0 : i32, i32, i32
  }
  func.func @transform_5(%arg0: i32) -> (i32, i32, i32, i32) {
    %c0_i32 = arith.constant 0 : i32
    %c0_i32_0 = arith.constant 0 : i32
    %c0_i32_1 = arith.constant 0 : i32
    %c0_i32_2 = arith.constant 0 : i32
    return %arg0, %c0_i32, %c0_i32_0, %c0_i32_1 : i32, i32, i32, i32
  }
}

module attributes {stable_mosaic.version = 11 : i64} {
  func.func @_linear_add_ln_kernel(%arg0: i32, %arg1: i32, %arg2: memref<32x32xf32, #tpu.memory_space<vmem>>, %arg3: memref<32x32xbf16, #tpu.memory_space<vmem>>, %arg4: memref<1x32xf32, #tpu.memory_space<vmem>>, %arg5: memref<32x32xf32, #tpu.memory_space<vmem>>, %arg6: memref<1x32xf32, #tpu.memory_space<vmem>>, %arg7: memref<1x32xf32, #tpu.memory_space<vmem>>, %arg8: memref<32x32xf32, #tpu.memory_space<vmem>>, %arg9: memref<32x32xf32, #tpu.memory_space<vmem>>) attributes {dimension_semantics = [#tpu.dimension_semantics<parallel>, #tpu.dimension_semantics<arbitrary>], iteration_bounds = array<i64: 1, 1>, scalar_prefetch = 0 : i64, scratch_operands = 1 : i64, tpu.core_type = #tpu.core_type<tc>, window_params = [{transform_indices = @transform_0, window_bounds = array<i64: 32, 32>}, {transform_indices = @transform_1, window_bounds = array<i64: 32, 32>}, {pipeline_mode = #tpu.pipeline_mode<synchronous>, transform_indices = @transform_2, window_bounds = array<i64: 1, 32>}, {transform_indices = @transform_3, window_bounds = array<i64: 32, 32>}, {pipeline_mode = #tpu.pipeline_mode<synchronous>, transform_indices = @transform_4, window_bounds = array<i64: 1, 32>}, {pipeline_mode = #tpu.pipeline_mode<synchronous>, transform_indices = @transform_5, window_bounds = array<i64: 1, 32>}, {transform_indices = @transform_6, window_bounds = array<i64: 32, 32>}]} {
    %c0_i32 = arith.constant 0 : i32
    %0 = arith.cmpi eq, %arg1, %c0_i32 : i32
    %1 = arith.extui %0 : i1 to i32
    %c0_i32_0 = arith.constant 0 : i32
    %2 = arith.cmpi ne, %1, %c0_i32_0 : i32
    scf.if %2 {
      %cst_10 = arith.constant 0.000000e+00 : f32
      %13 = vector.broadcast %cst_10 : f32 to vector<32x32xf32>
      %c0_11 = arith.constant 0 : index
      %c0_12 = arith.constant 0 : index
      %14 = vector.load %arg9[%c0_11, %c0_12] : memref<32x32xf32, #tpu.memory_space<vmem>>, vector<32x32xf32>
      tpu.vector_store %arg9[%c0_11, %c0_12], %13 {strides = array<i32>} : memref<32x32xf32, #tpu.memory_space<vmem>>, vector<32x32xf32>,
    } else {
    }
    %c0 = arith.constant 0 : index
    %c0_1 = arith.constant 0 : index
    %3 = vector.load %arg9[%c0, %c0_1] : memref<32x32xf32, #tpu.memory_space<vmem>>, vector<32x32xf32>
    %c0_2 = arith.constant 0 : index
    %c0_3 = arith.constant 0 : index
    %4 = vector.load %arg2[%c0_2, %c0_3] : memref<32x32xf32, #tpu.memory_space<vmem>>, vector<32x32xf32>
    %5 = arith.truncf %4 : vector<32x32xf32> to vector<32x32xbf16>
    %c0_4 = arith.constant 0 : index
    %c0_5 = arith.constant 0 : index
    %6 = vector.load %arg3[%c0_4, %c0_5] : memref<32x32xbf16, #tpu.memory_space<vmem>>, vector<32x32xbf16>
    %cst = arith.constant dense<0.000000e+00> : vector<32x32xf32>
    %7 = tpu.matmul %5, %6, %cst {dimension_numbers = #tpu.dot_dimension_numbers<[1], [0], [0], [1], [0, 0, 1, 1], [], []>} : vector<32x32xbf16>, vector<32x32xbf16>, vector<32x32xf32> -> vector<32x32xf32>
    %8 = arith.addf %3, %7 : vector<32x32xf32>
    %c0_6 = arith.constant 0 : index
    %c0_7 = arith.constant 0 : index
    %9 = vector.load %arg9[%c0_6, %c0_7] : memref<32x32xf32, #tpu.memory_space<vmem>>, vector<32x32xf32>
    tpu.vector_store %arg9[%c0_6, %c0_7], %8 {strides = array<i32>} : memref<32x32xf32, #tpu.memory_space<vmem>>, vector<32x32xf32>,
    %c0_i32_8 = arith.constant 0 : i32
    %10 = arith.cmpi eq, %arg1, %c0_i32_8 : i32
    %11 = arith.extui %10 : i1 to i32
    %c0_i32_9 = arith.constant 0 : i32
    %12 = arith.cmpi ne, %11, %c0_i32_9 : i32
    scf.if %12 {
      %c0_10 = arith.constant 0 : index
      %c0_11 = arith.constant 0 : index
      %13 = vector.load %arg9[%c0_10, %c0_11] : memref<32x32xf32, #tpu.memory_space<vmem>>, vector<32x32xf32>
      %c0_12 = arith.constant 0 : index
      %c0_13 = arith.constant 0 : index
      %14 = vector.load %arg4[%c0_12, %c0_13] : memref<1x32xf32, #tpu.memory_space<vmem>>, vector<1x32xf32>
      %15 = vector.broadcast %14 : vector<1x32xf32> to vector<32x32xf32>
      %16 = arith.addf %13, %15 : vector<32x32xf32>
      %c0_14 = arith.constant 0 : index
      %c0_15 = arith.constant 0 : index
      %17 = vector.load %arg5[%c0_14, %c0_15] : memref<32x32xf32, #tpu.memory_space<vmem>>, vector<32x32xf32>
      %18 = arith.addf %16, %17 : vector<32x32xf32>
      %cst_16 = arith.constant dense<0.000000e+00> : vector<32xf32>
      %19 = vector.multi_reduction <add>, %18, %cst_16 [1] : vector<32x32xf32> to vector<32xf32>
      %20 = vector.shape_cast %19 : vector<32xf32> to vector<32x1xf32>
      %cst_17 = arith.constant 3.200000e+01 : f32
      %21 = vector.broadcast %cst_17 : f32 to vector<32x1xf32>
      %22 = arith.divf %20, %21 : vector<32x1xf32>
      %23 = vector.broadcast %22 : vector<32x1xf32> to vector<32x32xf32>
      %24 = arith.subf %18, %23 : vector<32x32xf32>
      %25 = arith.mulf %24, %24 : vector<32x32xf32>
      %cst_18 = arith.constant dense<0.000000e+00> : vector<32xf32>
      %26 = vector.multi_reduction <add>, %25, %cst_18 [1] : vector<32x32xf32> to vector<32xf32>
      %27 = vector.shape_cast %26 : vector<32xf32> to vector<32x1xf32>
      %cst_19 = arith.constant 3.200000e+01 : f32
      %28 = vector.broadcast %cst_19 : f32 to vector<32x1xf32>
      %29 = arith.divf %27, %28 : vector<32x1xf32>
      %30 = vector.broadcast %22 : vector<32x1xf32> to vector<32x32xf32>
      %31 = arith.subf %18, %30 : vector<32x32xf32>
      %cst_20 = arith.constant 9.99999996E-13 : f32
      %32 = vector.broadcast %cst_20 : f32 to vector<32x1xf32>
      %33 = arith.addf %29, %32 : vector<32x1xf32>
      %34 = math.rsqrt %33 : vector<32x1xf32>
      %35 = vector.broadcast %34 : vector<32x1xf32> to vector<32x32xf32>
      %36 = arith.mulf %31, %35 : vector<32x32xf32>
      %c0_21 = arith.constant 0 : index
      %c0_22 = arith.constant 0 : index
      %37 = vector.load %arg6[%c0_21, %c0_22] : memref<1x32xf32, #tpu.memory_space<vmem>>, vector<1x32xf32>
      %38 = vector.broadcast %37 : vector<1x32xf32> to vector<32x32xf32>
      %39 = arith.mulf %36, %38 : vector<32x32xf32>
      %c0_23 = arith.constant 0 : index
      %c0_24 = arith.constant 0 : index
      %40 = vector.load %arg7[%c0_23, %c0_24] : memref<1x32xf32, #tpu.memory_space<vmem>>, vector<1x32xf32>
      %41 = vector.broadcast %40 : vector<1x32xf32> to vector<32x32xf32>
      %42 = arith.addf %39, %41 : vector<32x32xf32>
      %c0_25 = arith.constant 0 : index
      %c0_26 = arith.constant 0 : index
      %43 = vector.load %arg8[%c0_25, %c0_26] : memref<32x32xf32, #tpu.memory_space<vmem>>, vector<32x32xf32>
      tpu.vector_store %arg8[%c0_25, %c0_26], %42 {strides = array<i32>} : memref<32x32xf32, #tpu.memory_space<vmem>>, vector<32x32xf32>,
    } else {
    }
    return
  }
  func.func @transform_0(%arg0: i32, %arg1: i32) -> (i32, i32) {
    %c0_i32 = arith.constant 0 : i32
    return %arg0, %arg1 : i32, i32
  }
  func.func @transform_1(%arg0: i32, %arg1: i32) -> (i32, i32) {
    %c0_i32 = arith.constant 0 : i32
    %c0_i32_0 = arith.constant 0 : i32
    return %arg1, %c0_i32 : i32, i32
  }
  func.func @transform_2(%arg0: i32, %arg1: i32) -> (i32, i32) {
    %c0_i32 = arith.constant 0 : i32
    %c0_i32_0 = arith.constant 0 : i32
    %c0_i32_1 = arith.constant 0 : i32
    return %c0_i32, %c0_i32_0 : i32, i32
  }
  func.func @transform_3(%arg0: i32, %arg1: i32) -> (i32, i32) {
    %c0_i32 = arith.constant 0 : i32
    %c0_i32_0 = arith.constant 0 : i32
    return %arg0, %c0_i32 : i32, i32
  }
  func.func @transform_4(%arg0: i32, %arg1: i32) -> (i32, i32) {
    %c0_i32 = arith.constant 0 : i32
    %c0_i32_0 = arith.constant 0 : i32
    %c0_i32_1 = arith.constant 0 : i32
    return %c0_i32, %c0_i32_0 : i32, i32
  }
  func.func @transform_5(%arg0: i32, %arg1: i32) -> (i32, i32) {
    %c0_i32 = arith.constant 0 : i32
    %c0_i32_0 = arith.constant 0 : i32
    %c0_i32_1 = arith.constant 0 : i32
    return %c0_i32, %c0_i32_0 : i32, i32
  }
  func.func @transform_6(%arg0: i32, %arg1: i32) -> (i32, i32) {
    %c0_i32 = arith.constant 0 : i32
    %c0_i32_0 = arith.constant 0 : i32
    return %arg0, %c0_i32 : i32, i32
  }
}

module attributes {stable_mosaic.version = 11 : i64} {
  func.func @_linear_kernel(%arg0: i32, %arg1: i32, %arg2: i32, %arg3: memref<32x32xf32, #tpu.memory_space<vmem>>, %arg4: memref<32x64xbf16, #tpu.memory_space<vmem>>, %arg5: memref<1x64xf32, #tpu.memory_space<vmem>>, %arg6: memref<32x64xf32, #tpu.memory_space<vmem>>, %arg7: memref<32x64xf32, #tpu.memory_space<vmem>>) attributes {dimension_semantics = [#tpu.dimension_semantics<parallel>, #tpu.dimension_semantics<parallel>, #tpu.dimension_semantics<arbitrary>], iteration_bounds = array<i64: 1, 1, 1>, scalar_prefetch = 0 : i64, scratch_operands = 1 : i64, tpu.core_type = #tpu.core_type<tc>, window_params = [{transform_indices = @transform_0, window_bounds = array<i64: 32, 32>}, {transform_indices = @transform_1, window_bounds = array<i64: 32, 64>}, {transform_indices = @transform_2, window_bounds = array<i64: 1, 64>}, {transform_indices = @transform_3, window_bounds = array<i64: 32, 64>}]} {
    %c0_i32 = arith.constant 0 : i32
    %0 = arith.cmpi eq, %arg2, %c0_i32 : i32
    %1 = arith.extui %0 : i1 to i32
    %c0_i32_0 = arith.constant 0 : i32
    %2 = arith.cmpi ne, %1, %c0_i32_0 : i32
    scf.if %2 {
      %cst_10 = arith.constant 0.000000e+00 : f32
      %13 = vector.broadcast %cst_10 : f32 to vector<32x64xf32>
      %c0_11 = arith.constant 0 : index
      %c0_12 = arith.constant 0 : index
      %14 = vector.load %arg7[%c0_11, %c0_12] : memref<32x64xf32, #tpu.memory_space<vmem>>, vector<32x64xf32>
      tpu.vector_store %arg7[%c0_11, %c0_12], %13 {strides = array<i32>} : memref<32x64xf32, #tpu.memory_space<vmem>>, vector<32x64xf32>,
    } else {
    }
    %c0 = arith.constant 0 : index
    %c0_1 = arith.constant 0 : index
    %3 = vector.load %arg7[%c0, %c0_1] : memref<32x64xf32, #tpu.memory_space<vmem>>, vector<32x64xf32>
    %c0_2 = arith.constant 0 : index
    %c0_3 = arith.constant 0 : index
    %4 = vector.load %arg3[%c0_2, %c0_3] : memref<32x32xf32, #tpu.memory_space<vmem>>, vector<32x32xf32>
    %5 = arith.truncf %4 : vector<32x32xf32> to vector<32x32xbf16>
    %c0_4 = arith.constant 0 : index
    %c0_5 = arith.constant 0 : index
    %6 = vector.load %arg4[%c0_4, %c0_5] : memref<32x64xbf16, #tpu.memory_space<vmem>>, vector<32x64xbf16>
    %cst = arith.constant dense<0.000000e+00> : vector<32x64xf32>
    %7 = tpu.matmul %5, %6, %cst {dimension_numbers = #tpu.dot_dimension_numbers<[1], [0], [0], [1], [0, 0, 1, 1], [], []>} : vector<32x32xbf16>, vector<32x64xbf16>, vector<32x64xf32> -> vector<32x64xf32>
    %8 = arith.addf %3, %7 : vector<32x64xf32>
    %c0_6 = arith.constant 0 : index
    %c0_7 = arith.constant 0 : index
    %9 = vector.load %arg7[%c0_6, %c0_7] : memref<32x64xf32, #tpu.memory_space<vmem>>, vector<32x64xf32>
    tpu.vector_store %arg7[%c0_6, %c0_7], %8 {strides = array<i32>} : memref<32x64xf32, #tpu.memory_space<vmem>>, vector<32x64xf32>,
    %c0_i32_8 = arith.constant 0 : i32
    %10 = arith.cmpi eq, %arg2, %c0_i32_8 : i32
    %11 = arith.extui %10 : i1 to i32
    %c0_i32_9 = arith.constant 0 : i32
    %12 = arith.cmpi ne, %11, %c0_i32_9 : i32
    scf.if %12 {
      %c0_10 = arith.constant 0 : index
      %c0_11 = arith.constant 0 : index
      %13 = vector.load %arg7[%c0_10, %c0_11] : memref<32x64xf32, #tpu.memory_space<vmem>>, vector<32x64xf32>
      %c0_12 = arith.constant 0 : index
      %c0_13 = arith.constant 0 : index
      %14 = vector.load %arg5[%c0_12, %c0_13] : memref<1x64xf32, #tpu.memory_space<vmem>>, vector<1x64xf32>
      %15 = vector.broadcast %14 : vector<1x64xf32> to vector<32x64xf32>
      %16 = arith.addf %13, %15 : vector<32x64xf32>
      %cst_14 = arith.constant 5.000000e-01 : f32
      %17 = vector.broadcast %cst_14 : f32 to vector<32x64xf32>
      %18 = arith.mulf %17, %16 : vector<32x64xf32>
      %cst_15 = arith.constant 4.471500e-02 : f32
      %19 = vector.broadcast %cst_15 : f32 to vector<32x64xf32>
      %20 = arith.mulf %19, %16 : vector<32x64xf32>
      %21 = arith.mulf %20, %16 : vector<32x64xf32>
      %22 = arith.mulf %21, %16 : vector<32x64xf32>
      %23 = arith.addf %16, %22 : vector<32x64xf32>
      %cst_16 = arith.constant 0.797884583 : f32
      %24 = vector.broadcast %cst_16 : f32 to vector<32x64xf32>
      %25 = arith.mulf %24, %23 : vector<32x64xf32>
      %26 = math.tanh %25 : vector<32x64xf32>
      %cst_17 = arith.constant 1.000000e+00 : f32
      %27 = vector.broadcast %cst_17 : f32 to vector<32x64xf32>
      %28 = arith.addf %27, %26 : vector<32x64xf32>
      %29 = arith.mulf %18, %28 : vector<32x64xf32>
      %c0_18 = arith.constant 0 : index
      %c0_19 = arith.constant 0 : index
      %30 = vector.load %arg6[%c0_18, %c0_19] : memref<32x64xf32, #tpu.memory_space<vmem>>, vector<32x64xf32>
      tpu.vector_store %arg6[%c0_18, %c0_19], %29 {strides = array<i32>} : memref<32x64xf32, #tpu.memory_space<vmem>>, vector<32x64xf32>,
    } else {
    }
    return
  }
  func.func @transform_0(%arg0: i32, %arg1: i32, %arg2: i32) -> (i32, i32) {
    %c0_i32 = arith.constant 0 : i32
    return %arg0, %arg2 : i32, i32
  }
  func.func @transform_1(%arg0: i32, %arg1: i32, %arg2: i32) -> (i32, i32) {
    %c0_i32 = arith.constant 0 : i32
    return %arg2, %arg1 : i32, i32
  }
  func.func @transform_2(%arg0: i32, %arg1: i32, %arg2: i32) -> (i32, i32) {
    %c0_i32 = arith.constant 0 : i32
    %c0_i32_0 = arith.constant 0 : i32
    return %c0_i32, %arg1 : i32, i32
  }
  func.func @transform_3(%arg0: i32, %arg1: i32, %arg2: i32) -> (i32, i32) {
    %c0_i32 = arith.constant 0 : i32
    return %arg0, %arg1 : i32, i32
  }
}

module attributes {stable_mosaic.version = 11 : i64} {
  func.func @_linear_add_ln_kernel(%arg0: i32, %arg1: i32, %arg2: memref<32x64xf32, #tpu.memory_space<vmem>>, %arg3: memref<64x32xbf16, #tpu.memory_space<vmem>>, %arg4: memref<1x32xf32, #tpu.memory_space<vmem>>, %arg5: memref<32x32xf32, #tpu.memory_space<vmem>>, %arg6: memref<1x32xf32, #tpu.memory_space<vmem>>, %arg7: memref<1x32xf32, #tpu.memory_space<vmem>>, %arg8: memref<32x32xf32, #tpu.memory_space<vmem>>, %arg9: memref<32x32xf32, #tpu.memory_space<vmem>>) attributes {dimension_semantics = [#tpu.dimension_semantics<parallel>, #tpu.dimension_semantics<arbitrary>], iteration_bounds = array<i64: 1, 1>, scalar_prefetch = 0 : i64, scratch_operands = 1 : i64, tpu.core_type = #tpu.core_type<tc>, window_params = [{transform_indices = @transform_0, window_bounds = array<i64: 32, 64>}, {transform_indices = @transform_1, window_bounds = array<i64: 64, 32>}, {pipeline_mode = #tpu.pipeline_mode<synchronous>, transform_indices = @transform_2, window_bounds = array<i64: 1, 32>}, {transform_indices = @transform_3, window_bounds = array<i64: 32, 32>}, {pipeline_mode = #tpu.pipeline_mode<synchronous>, transform_indices = @transform_4, window_bounds = array<i64: 1, 32>}, {pipeline_mode = #tpu.pipeline_mode<synchronous>, transform_indices = @transform_5, window_bounds = array<i64: 1, 32>}, {transform_indices = @transform_6, window_bounds = array<i64: 32, 32>}]} {
    %c0_i32 = arith.constant 0 : i32
    %0 = arith.cmpi eq, %arg1, %c0_i32 : i32
    %1 = arith.extui %0 : i1 to i32
    %c0_i32_0 = arith.constant 0 : i32
    %2 = arith.cmpi ne, %1, %c0_i32_0 : i32
    scf.if %2 {
      %cst_10 = arith.constant 0.000000e+00 : f32
      %13 = vector.broadcast %cst_10 : f32 to vector<32x32xf32>
      %c0_11 = arith.constant 0 : index
      %c0_12 = arith.constant 0 : index
      %14 = vector.load %arg9[%c0_11, %c0_12] : memref<32x32xf32, #tpu.memory_space<vmem>>, vector<32x32xf32>
      tpu.vector_store %arg9[%c0_11, %c0_12], %13 {strides = array<i32>} : memref<32x32xf32, #tpu.memory_space<vmem>>, vector<32x32xf32>,
    } else {
    }
    %c0 = arith.constant 0 : index
    %c0_1 = arith.constant 0 : index
    %3 = vector.load %arg9[%c0, %c0_1] : memref<32x32xf32, #tpu.memory_space<vmem>>, vector<32x32xf32>
    %c0_2 = arith.constant 0 : index
    %c0_3 = arith.constant 0 : index
    %4 = vector.load %arg2[%c0_2, %c0_3] : memref<32x64xf32, #tpu.memory_space<vmem>>, vector<32x64xf32>
    %5 = arith.truncf %4 : vector<32x64xf32> to vector<32x64xbf16>
    %c0_4 = arith.constant 0 : index
    %c0_5 = arith.constant 0 : index
    %6 = vector.load %arg3[%c0_4, %c0_5] : memref<64x32xbf16, #tpu.memory_space<vmem>>, vector<64x32xbf16>
    %cst = arith.constant dense<0.000000e+00> : vector<32x32xf32>
    %7 = tpu.matmul %5, %6, %cst {dimension_numbers = #tpu.dot_dimension_numbers<[1], [0], [0], [1], [0, 0, 1, 1], [], []>} : vector<32x64xbf16>, vector<64x32xbf16>, vector<32x32xf32> -> vector<32x32xf32>
    %8 = arith.addf %3, %7 : vector<32x32xf32>
    %c0_6 = arith.constant 0 : index
    %c0_7 = arith.constant 0 : index
    %9 = vector.load %arg9[%c0_6, %c0_7] : memref<32x32xf32, #tpu.memory_space<vmem>>, vector<32x32xf32>
    tpu.vector_store %arg9[%c0_6, %c0_7], %8 {strides = array<i32>} : memref<32x32xf32, #tpu.memory_space<vmem>>, vector<32x32xf32>,
    %c0_i32_8 = arith.constant 0 : i32
    %10 = arith.cmpi eq, %arg1, %c0_i32_8 : i32
    %11 = arith.extui %10 : i1 to i32
    %c0_i32_9 = arith.constant 0 : i32
    %12 = arith.cmpi ne, %11, %c0_i32_9 : i32
    scf.if %12 {
      %c0_10 = arith.constant 0 : index
      %c0_11 = arith.constant 0 : index
      %13 = vector.load %arg9[%c0_10, %c0_11] : memref<32x32xf32, #tpu.memory_space<vmem>>, vector<32x32xf32>
      %c0_12 = arith.constant 0 : index
      %c0_13 = arith.constant 0 : index
      %14 = vector.load %arg4[%c0_12, %c0_13] : memref<1x32xf32, #tpu.memory_space<vmem>>, vector<1x32xf32>
      %15 = vector.broadcast %14 : vector<1x32xf32> to vector<32x32xf32>
      %16 = arith.addf %13, %15 : vector<32x32xf32>
      %c0_14 = arith.constant 0 : index
      %c0_15 = arith.constant 0 : index
      %17 = vector.load %arg5[%c0_14, %c0_15] : memref<32x32xf32, #tpu.memory_space<vmem>>, vector<32x32xf32>
      %18 = arith.addf %16, %17 : vector<32x32xf32>
      %cst_16 = arith.constant dense<0.000000e+00> : vector<32xf32>
      %19 = vector.multi_reduction <add>, %18, %cst_16 [1] : vector<32x32xf32> to vector<32xf32>
      %20 = vector.shape_cast %19 : vector<32xf32> to vector<32x1xf32>
      %cst_17 = arith.constant 3.200000e+01 : f32
      %21 = vector.broadcast %cst_17 : f32 to vector<32x1xf32>
      %22 = arith.divf %20, %21 : vector<32x1xf32>
      %23 = vector.broadcast %22 : vector<32x1xf32> to vector<32x32xf32>
      %24 = arith.subf %18, %23 : vector<32x32xf32>
      %25 = arith.mulf %24, %24 : vector<32x32xf32>
      %cst_18 = arith.constant dense<0.000000e+00> : vector<32xf32>
      %26 = vector.multi_reduction <add>, %25, %cst_18 [1] : vector<32x32xf32> to vector<32xf32>
      %27 = vector.shape_cast %26 : vector<32xf32> to vector<32x1xf32>
      %cst_19 = arith.constant 3.200000e+01 : f32
      %28 = vector.broadcast %cst_19 : f32 to vector<32x1xf32>
      %29 = arith.divf %27, %28 : vector<32x1xf32>
      %30 = vector.broadcast %22 : vector<32x1xf32> to vector<32x32xf32>
      %31 = arith.subf %18, %30 : vector<32x32xf32>
      %cst_20 = arith.constant 9.99999996E-13 : f32
      %32 = vector.broadcast %cst_20 : f32 to vector<32x1xf32>
      %33 = arith.addf %29, %32 : vector<32x1xf32>
      %34 = math.rsqrt %33 : vector<32x1xf32>
      %35 = vector.broadcast %34 : vector<32x1xf32> to vector<32x32xf32>
      %36 = arith.mulf %31, %35 : vector<32x32xf32>
      %c0_21 = arith.constant 0 : index
      %c0_22 = arith.constant 0 : index
      %37 = vector.load %arg6[%c0_21, %c0_22] : memref<1x32xf32, #tpu.memory_space<vmem>>, vector<1x32xf32>
      %38 = vector.broadcast %37 : vector<1x32xf32> to vector<32x32xf32>
      %39 = arith.mulf %36, %38 : vector<32x32xf32>
      %c0_23 = arith.constant 0 : index
      %c0_24 = arith.constant 0 : index
      %40 = vector.load %arg7[%c0_23, %c0_24] : memref<1x32xf32, #tpu.memory_space<vmem>>, vector<1x32xf32>
      %41 = vector.broadcast %40 : vector<1x32xf32> to vector<32x32xf32>
      %42 = arith.addf %39, %41 : vector<32x32xf32>
      %c0_25 = arith.constant 0 : index
      %c0_26 = arith.constant 0 : index
      %43 = vector.load %arg8[%c0_25, %c0_26] : memref<32x32xf32, #tpu.memory_space<vmem>>, vector<32x32xf32>
      tpu.vector_store %arg8[%c0_25, %c0_26], %42 {strides = array<i32>} : memref<32x32xf32, #tpu.memory_space<vmem>>, vector<32x32xf32>,
    } else {
    }
    return
  }
  func.func @transform_0(%arg0: i32, %arg1: i32) -> (i32, i32) {
    %c0_i32 = arith.constant 0 : i32
    return %arg0, %arg1 : i32, i32
  }
  func.func @transform_1(%arg0: i32, %arg1: i32) -> (i32, i32) {
    %c0_i32 = arith.constant 0 : i32
    %c0_i32_0 = arith.constant 0 : i32
    return %arg1, %c0_i32 : i32, i32
  }
  func.func @transform_2(%arg0: i32, %arg1: i32) -> (i32, i32) {
    %c0_i32 = arith.constant 0 : i32
    %c0_i32_0 = arith.constant 0 : i32
    %c0_i32_1 = arith.constant 0 : i32
    return %c0_i32, %c0_i32_0 : i32, i32
  }
  func.func @transform_3(%arg0: i32, %arg1: i32) -> (i32, i32) {
    %c0_i32 = arith.constant 0 : i32
    %c0_i32_0 = arith.constant 0 : i32
    return %arg0, %c0_i32 : i32, i32
  }
  func.func @transform_4(%arg0: i32, %arg1: i32) -> (i32, i32) {
    %c0_i32 = arith.constant 0 : i32
    %c0_i32_0 = arith.constant 0 : i32
    %c0_i32_1 = arith.constant 0 : i32
    return %c0_i32, %c0_i32_0 : i32, i32
  }
  func.func @transform_5(%arg0: i32, %arg1: i32) -> (i32, i32) {
    %c0_i32 = arith.constant 0 : i32
    %c0_i32_0 = arith.constant 0 : i32
    %c0_i32_1 = arith.constant 0 : i32
    return %c0_i32, %c0_i32_0 : i32, i32
  }
  func.func @transform_6(%arg0: i32, %arg1: i32) -> (i32, i32) {
    %c0_i32 = arith.constant 0 : i32
    %c0_i32_0 = arith.constant 0 : i32
    return %arg0, %c0_i32 : i32, i32
  }
}

</mosaic_0001>

<bundles_post_ra>
// kernel: bert_connect_layer.11
= control target key start
LH: loop header
LB: loop body
LE: loop exit
PB: predicated region body
PF: predicated region fallthrough
CT: control target
= control target key end

     0   :  { %vm19_vm0 = vcmask 785408   ;;  %v132_v0 = vmov 0.0   ;;  %vm133_vm1 = vmmov 0   ;;  %vm43_vm2 = vcmask 261120   ;;  %s181_s1 = inlined_call_operand.vmem [shape: bf16[32,96], index: 1, kind: input, shape index: {}]   ;;  %s182_s0 = inlined_call_operand.vmem [shape: f32[16,32], index: 0, kind: input, shape index: {}]   ;;  %s183_s2 = inlined_call_operand.vmem [shape: f32[1,96], index: 2, kind: input, shape index: {}]   ;;  %s184_s3 = inlined_call_operand.vmem [shape: f32[16,96], index: 3, kind: output, shape index: {}]  }
   0x1   :  { %120 = vmatprep.subr.bf16.mxu0 %v132_v0  ;;  %v130_v1 = vld [vmem:[%s181_s1] sm:$0xff]   ;;  %124 = vmatprep.mubr.msk.bf16.mxu0 %vm133_vm1, %v132_v0  ;;  %20 = vst.msk [vmem:[#allocation2] sm:$0xff] %vm19_vm0, %v132_v0  ;;  %21 = vst.msk [vmem:[#allocation2 + $0x8] sm:$0xff] %vm19_vm0, %v132_v0  ;;  %v131_v2 = vld [vmem:[%s181_s1 + $0x8] sm:$0xff]  }
   0x2   :  { %121 = vmatpush3.bf16.msra.mxu0 %v130_v1  ;;  %v24_v3 = vld [vmem:[%s182_s0] sm:$0xff]  ;;  %v25_v4 = vld [vmem:[%s182_s0 + $0x8] sm:$0xff] }
   0x3   :  { %122 = vmatprep.subr.bf16.mxu0 %v132_v0  ;;  %v26_v5 = vpack.c.bf16 %v25_v4, %v24_v3  ;;  %v116_v14 = vld [vmem:[%s183_s2] ss:$0 sm:$0xff] }
   0x6   :  { %123 = vmatpush3.bf16.msra.mxu0 %v131_v2 }
   0x8   :  { %v22_v6 = vld [vmem:[#allocation2] sm:$0xff]  ;;  %v23_v8 = vld [vmem:[#allocation2 + $0x8] sm:$0xff] }
   0x9   :  { %125 = vmatmul.mubr.msk.bf16.vlgmr.msra.gmra.mrb[0].mxu0 %vm43_vm2, %v26_v5 }
  0xdc   :  { %v81_v7 = vpop.f32.mrb[0].mxu0 }
  0xdd   :  { %v88_v9 = vadd.f32 %v81_v7, %v22_v6  ;;  %v126_v10 = vpop.f32.mrb[1].mxu0 }
  0xde   :  { %v84_v11 = vpop.f32.mrb[2].mxu0 }
  0xdf   :  { %91 = vst.msk [vmem:[#allocation2] sm:$0xff] %vm19_vm0, %v88_v9  ;;  %v89_v12 = vadd.f32 %v84_v11, %v23_v8  ;;  %v127_v13 = vpop.f32.mrb[3].mxu0 }
  0xe1   :  { %92 = vst.msk [vmem:[#allocation2 + $0x8] sm:$0xff] %vm19_vm0, %v89_v12 }
  0xe6   :  { %v96_v15 = vld [vmem:[#allocation2] sm:$0xff] }
  0xe7   :  { %v105_v16 = vadd.f32 %v116_v14, %v96_v15 }
  0xe8   :  { %v97_v17 = vld [vmem:[#allocation2 + $0x8] sm:$0xff] }
  0xe9   :  { %107 = vst.msk [vmem:[%s184_s3] sm:$0xff] %vm19_vm0, %v105_v16  ;;  %v106_v18 = vadd.f32 %v116_v14, %v97_v17 }
  0xeb   :  { %108 = vst.msk [vmem:[%s184_s3 + $0x8] sm:$0xff] %vm19_vm0, %v106_v18 }

// kernel: bert_connect_layer.10
= control target key start
LH: loop header
LB: loop body
LE: loop exit
PB: predicated region body
PF: predicated region fallthrough
CT: control target
= control target key end

     0   :  { %vm19_vm0 = vcmask 785408   ;;  %v161_v1 = vmov 0.0   ;;  %vm50_vm1 = vcmask 261120   ;;  %s227_s1 = inlined_call_operand.vmem [shape: bf16[32,96], index: 1, kind: input, shape index: {}]   ;;  %s228_s0 = inlined_call_operand.vmem [shape: f32[32,32], index: 0, kind: input, shape index: {}]   ;;  %s229_s2 = inlined_call_operand.vmem [shape: f32[1,96], index: 2, kind: input, shape index: {}]   ;;  %s230_s3 = inlined_call_operand.vmem [shape: f32[32,96], index: 3, kind: output, shape index: {}]  }
   0x1   :  { %v159_v0 = vld [vmem:[%s227_s1] sm:$0xff]   ;;  %22 = vst.msk [vmem:[#allocation2 + $0x10] sm:$0xff] %vm19_vm0, %v161_v1  ;;  %20 = vst.msk [vmem:[#allocation2] sm:$0xff] %vm19_vm0, %v161_v1  ;;  %v160_v2 = vld [vmem:[%s227_s1 + $0x8] sm:$0xff]  }
   0x2   :  { %21 = vst.msk [vmem:[#allocation2 + $0x8] sm:$0xff] %vm19_vm0, %v161_v1  ;;  %23 = vst.msk [vmem:[#allocation2 + $0x18] sm:$0xff] %vm19_vm0, %v161_v1  ;;  %150 = vmatprep.subr.bf16.mxu0 %v159_v0  ;;  %v28_v3 = vld [vmem:[%s228_s0] sm:$0xff]  ;;  %v29_v4 = vld [vmem:[%s228_s0 + $0x8] sm:$0xff] }
   0x3   :  { %151 = vmatpush3.bf16.msra.mxu0 %v159_v0  ;;  %v32_v5 = vpack.c.bf16 %v29_v4, %v28_v3  ;;  %v30_v6 = vld [vmem:[%s228_s0 + $0x10] sm:$0xff]  ;;  %v31_v7 = vld [vmem:[%s228_s0 + $0x18] sm:$0xff]  ;;  %v145_v21 = vld [vmem:[%s229_s2] ss:$0 sm:$0xff] }
   0x4   :  { %152 = vmatprep.subr.bf16.mxu0 %v160_v2  ;;  %v33_v8 = vpack.c.bf16 %v31_v7, %v30_v6 }
   0x5   :  { %154 = vmatprep.mubr.msk.bf16.mxu0 %vm50_vm1, %v32_v5 }
   0x7   :  { %153 = vmatpush3.bf16.msra.mxu0 %v160_v2 }
   0x8   :  { %v26_v9 = vld [vmem:[#allocation2 + $0x10] sm:$0xff]  ;;  %v24_v10 = vld [vmem:[#allocation2] sm:$0xff] }
   0x9   :  { %v27_v12 = vld [vmem:[#allocation2 + $0x18] sm:$0xff]  ;;  %v25_v15 = vld [vmem:[#allocation2 + $0x8] sm:$0xff] }
   0xa   :  { %155 = vmatmul.mubr.msk.bf16.vlgmr.msra.gmra.mrb[0].mxu0 %vm50_vm1, %v33_v8 }
  0xdd   :  { %v156_v11 = vpop.f32.mrb[0].mxu0 }
  0xde   :  { %v108_v13 = vadd.f32 %v156_v11, %v26_v9  ;;  %v91_v14 = vpop.f32.mrb[1].mxu0 }
  0xdf   :  { %v106_v16 = vadd.f32 %v91_v14, %v24_v10  ;;  %v157_v17 = vpop.f32.mrb[2].mxu0 }
  0xe0   :  { %113 = vst.msk [vmem:[#allocation2 + $0x10] sm:$0xff] %vm19_vm0, %v108_v13  ;;  %v109_v18 = vadd.f32 %v157_v17, %v27_v12  ;;  %v94_v19 = vpop.f32.mrb[3].mxu0 }
  0xe1   :  { %111 = vst.msk [vmem:[#allocation2] sm:$0xff] %vm19_vm0, %v106_v16  ;;  %v107_v20 = vadd.f32 %v94_v19, %v25_v15 }
  0xe2   :  { %114 = vst.msk [vmem:[#allocation2 + $0x18] sm:$0xff] %vm19_vm0, %v109_v18 }
  0xe3   :  { %112 = vst.msk [vmem:[#allocation2 + $0x8] sm:$0xff] %vm19_vm0, %v107_v20 }
  0xe7   :  { %v120_v22 = vld [vmem:[#allocation2 + $0x10] sm:$0xff] }
  0xe8   :  { %v131_v23 = vadd.f32 %v145_v21, %v120_v22  ;;  %v118_v24 = vld [vmem:[#allocation2] sm:$0xff] }
  0xe9   :  { %v129_v25 = vadd.f32 %v145_v21, %v118_v24  ;;  %v121_v26 = vld [vmem:[#allocation2 + $0x18] sm:$0xff] }
  0xea   :  { %135 = vst.msk [vmem:[%s230_s3 + $0x10] sm:$0xff] %vm19_vm0, %v131_v23  ;;  %v132_v27 = vadd.f32 %v145_v21, %v121_v26  ;;  %v119_v28 = vld [vmem:[#allocation2 + $0x8] sm:$0xff] }
  0xeb   :  { %133 = vst.msk [vmem:[%s230_s3] sm:$0xff] %vm19_vm0, %v129_v25  ;;  %v130_v29 = vadd.f32 %v145_v21, %v119_v28 }
  0xec   :  { %136 = vst.msk [vmem:[%s230_s3 + $0x18] sm:$0xff] %vm19_vm0, %v132_v27 }
  0xed   :  { %134 = vst.msk [vmem:[%s230_s3 + $0x8] sm:$0xff] %vm19_vm0, %v130_v29 }

// kernel: bert_connect_layer.15
= control target key start
LH: loop header
LB: loop body
LE: loop exit
PB: predicated region body
PF: predicated region fallthrough
CT: control target
= control target key end

     0   :  { %vm28_vm0 = vcmask 261120   ;;  %v195_v0 = vmov 0.0   ;;  %vm196_vm1 = vmmov 0   ;;  %s276_s1 = inlined_call_operand.vmem [shape: bf16[32,32], index: 1, kind: input, shape index: {}]   ;;  %s277_s0 = inlined_call_operand.vmem [shape: f32[16,32], index: 0, kind: input, shape index: {}]   ;;  %s278_s2 = inlined_call_operand.vmem [shape: f32[1,32], index: 2, kind: input, shape index: {}]   ;;  %s279_s3 = inlined_call_operand.vmem [shape: f32[16,32], index: 3, kind: input, shape index: {}]   ;;  %s280_s4 = inlined_call_operand.vmem [shape: f32[1,32], index: 4, kind: input, shape index: {}]   ;;  %s281_s5 = inlined_call_operand.vmem [shape: f32[1,32], index: 5, kind: input, shape index: {}]   ;;  %s282_s6 = inlined_call_operand.vmem [shape: f32[16,32], index: 6, kind: output, shape index: {}]  }
   0x1   :  { %179 = vmatprep.subr.bf16.mxu0 %v195_v0  ;;  %v189_v1 = vld [vmem:[%s276_s1] sm:$0xff]   ;;  %183 = vmatprep.mubr.msk.bf16.mxu0 %vm196_vm1, %v195_v0  ;;  %29 = vst.msk [vmem:[#allocation2] sm:$0xff] %vm28_vm0, %v195_v0  ;;  %30 = vst.msk [vmem:[#allocation2 + $0x8] sm:$0xff] %vm28_vm0, %v195_v0  ;;  %v190_v2 = vld [vmem:[%s276_s1 + $0x8] sm:$0xff]  }
   0x2   :  { %180 = vmatpush3.bf16.msra.mxu0 %v189_v1  ;;  %v33_v3 = vld [vmem:[%s277_s0] sm:$0xff]  ;;  %v34_v4 = vld [vmem:[%s277_s0 + $0x8] sm:$0xff] }
   0x3   :  { %181 = vmatprep.subr.bf16.mxu0 %v195_v0  ;;  %v35_v5 = vpack.c.bf16 %v34_v4, %v33_v3  ;;  %v173_v14 = vld [vmem:[%s278_s2] ss:$0 sm:$0xff]  ;;  %v116_v19 = vld [vmem:[%s279_s3 + $0x8] sm:$0xff] }
   0x4   :  { %v115_v16 = vld [vmem:[%s279_s3] sm:$0xff] }
   0x5   :  { %v174_v42 = vld [vmem:[%s280_s4] ss:$0 sm:$0xff] }
   0x6   :  { %182 = vmatpush3.bf16.msra.mxu0 %v190_v2  ;;  %v175_v44 = vld [vmem:[%s281_s5] ss:$0 sm:$0xff] }
   0x8   :  { %v31_v6 = vld [vmem:[#allocation2] sm:$0xff]  ;;  %v32_v8 = vld [vmem:[#allocation2 + $0x8] sm:$0xff] }
   0x9   :  { %184 = vmatmul.mubr.msk.bf16.vlgmr.msra.gmra.mrb[0].mxu0 %vm28_vm0, %v35_v5 }
  0xdc   :  { %v90_v7 = vpop.f32.mrb[0].mxu0 }
  0xdd   :  { %v97_v9 = vadd.f32 %v90_v7, %v31_v6  ;;  %v185_v10 = vpop.f32.mrb[1].mxu0 }
  0xde   :  { %v93_v11 = vpop.f32.mrb[2].mxu0 }
  0xdf   :  { %99 = vst.msk [vmem:[#allocation2] sm:$0xff] %vm28_vm0, %v97_v9  ;;  %v98_v12 = vadd.f32 %v93_v11, %v32_v8  ;;  %v186_v13 = vpop.f32.mrb[3].mxu0 }
  0xe1   :  { %100 = vst.msk [vmem:[#allocation2 + $0x8] sm:$0xff] %vm28_vm0, %v98_v12 }
  0xe6   :  { %v104_v15 = vld [vmem:[#allocation2] sm:$0xff] }
  0xe7   :  { %v113_v17 = vadd.f32 %v173_v14, %v104_v15 }
  0xe8   :  { %v105_v18 = vld [vmem:[#allocation2 + $0x8] sm:$0xff] }
  0xe9   :  { %v117_v20 = vadd.f32 %v115_v16, %v113_v17  ;;  %v114_v21 = vadd.f32 %v173_v14, %v105_v18 }
  0xeb   :  { %v119_v22 = vsel %vm28_vm0, %v117_v20, 0.0  ;;  %v118_v23 = vadd.f32 %v116_v19, %v114_v21 }
  0xec   :  { %120 = vadd.xlane.f32.xlu0 %v119_v22 }
  0xed   :  { %v122_v24 = vsel %vm28_vm0, %v118_v23, 0.0 }
  0xf0   :  { %123 = vadd.xlane.f32.xlu0 %v122_v24 }
 0x179   :  { %v121_v25 = vpop.xlane.xlu0 %120 }
 0x17a   :  { %v126_v26 = vmul.f32 0.03125, %v121_v25 }
 0x17c   :  { %v128_v27 = vsub.f32 %v117_v20, %v126_v26 }
 0x17d   :  { %v124_v28 = vpop.xlane.xlu0 %123 }
 0x17e   :  { %v127_v29 = vmul.f32 0.03125, %v124_v28  ;;  %v130_v30 = vmul.f32 %v128_v27, %v128_v27 }
 0x180   :  { %v129_v31 = vsub.f32 %v118_v23, %v127_v29  ;;  %v132_v32 = vsel %vm28_vm0, %v130_v30, 0.0 }
 0x181   :  { %133 = vadd.xlane.f32.xlu1 %v132_v32 }
 0x182   :  { %v131_v33 = vmul.f32 %v129_v31, %v129_v31 }
 0x184   :  { %v135_v34 = vsel %vm28_vm0, %v131_v33, 0.0 }
 0x185   :  { %136 = vadd.xlane.f32.xlu1 %v135_v34 }
 0x20e   :  { %v134_v35 = vpop.xlane.xlu1 %133 }
 0x20f   :  { %v138_v36 = vmul.f32 0.03125, %v134_v35 }
 0x211   :  { %v140_v37 = vadd.f32 1e-12, %v138_v36 }
 0x212   :  { %v137_v38 = vpop.xlane.xlu1 %136 }
 0x213   :  { %191 = vrsqrt.f32 %v140_v37  ;;  %v139_v39 = vmul.f32 0.03125, %v137_v38 }
 0x215   :  { %v141_v40 = vadd.f32 1e-12, %v139_v39 }
 0x217   :  { %193 = vrsqrt.f32 %v141_v40 }
 0x21d   :  { %v192_v41 = vpop.eup %191 }
 0x21e   :  { %v144_v43 = vmul.f32 %v192_v41, %v128_v27 }
 0x220   :  { %v153_v45 = vmul.f32 %v174_v42, %v144_v43 }
 0x221   :  { %v194_v46 = vpop.eup %193 }
 0x222   :  { %v162_v47 = vadd.f32 %v175_v44, %v153_v45  ;;  %v145_v48 = vmul.f32 %v194_v46, %v129_v31 }
 0x224   :  { %164 = vst.msk [vmem:[%s282_s6] sm:$0xff] %vm28_vm0, %v162_v47  ;;  %v154_v49 = vmul.f32 %v174_v42, %v145_v48 }
 0x226   :  { %v163_v50 = vadd.f32 %v175_v44, %v154_v49 }
 0x228   :  { %165 = vst.msk [vmem:[%s282_s6 + $0x8] sm:$0xff] %vm28_vm0, %v163_v50 }

// kernel: bert_connect_layer.12
= control target key start
LH: loop header
LB: loop body
LE: loop exit
PB: predicated region body
PF: predicated region fallthrough
CT: control target
= control target key end

     0   :  { %11 = vsyncpa [#allocation3], 0  ;;  %s1385_s0 = inlined_call_operand.vmem [shape: f32[2,8,32], index: 0, kind: input, shape index: {}]   ;;  %s1386_s1 = inlined_call_operand.vmem [shape: f32[2,16,32], index: 1, kind: input, shape index: {}]   ;;  %s1387_s2 = inlined_call_operand.vmem [shape: f32[2,16,32], index: 2, kind: input, shape index: {}]   ;;  %s1388_s3 = inlined_call_operand.vmem [shape: f32[2,1,1,16], index: 3, kind: input, shape index: {}]   ;;  %s1389_s4 = inlined_call_operand.vmem [shape: f32[2,8,32], index: 4, kind: output, shape index: {0}]   ;;  %s1390_s5 = inlined_call_operand.hbm [shape: f32[2,4,8,16], index: 5, kind: output, shape index: {1}]  }
   0x1   :  { %13 = vsyncpa [#allocation3 + $0x1], 0  ;;  %s1168_s18 = smov 0   ;;  %s1170_s19 = smov 0  }
   0x2   :  { %s1172_s20 = smov 0   ;;  %s1174_s21 = smov 0  }
   0x3 LB: > { %s1189_s22 = sadd.s32 4294967295, %s1126_s21   ;;  %s905_s23 = sadd.s32 4294967294, %s1126_s21   ;;  %s1126_s21 = sphi %s1174_s21, %s1396_s21   ;;  %s1122_s20 = sphi %s1172_s20, %s1395_s20   ;;  %s1118_s19 = sphi %s1170_s19, %s1394_s19   ;;  %s1114_s18 = sphi %s1168_s18, %s1393_s18  }
   0x4   : > { %s1193_s24 = sadd.s32 1, %s1126_s21   ;;  %s156_s25 = sadd.s32 1, %s1122_s20 }
   0x5   : > { %s153_s26 = ssub.s32 %s1126_s21, %s1193_s24  ;;  %p166_p0 = scmp.ne.s32.totalorder %s1122_s20, %s1118_s19 }
   0x6   : > { %p154_p1 = scmp.eq.s32.totalorder %s153_s26, 0  ;;  %p167_p2 = scmp.eq.s32.totalorder %s1189_s22, 1 }
   0x7   : > { %p172_p3 = scmp.ne.s32.totalorder %s1118_s19, %s1114_s18  ;;  %p173_p4 = scmp.eq.s32.totalorder %s905_s23, 1 }
   0x8   : > { %s1204_s27 = scalar_select %p154_p1, %s1122_s20, %s156_s25  }
   0x9   : > { %p1206_p5 = por %p167_p2, %p166_p0  ;;  %p1210_p6 = por %p173_p4, %p172_p3 }
   0xa   : > { %p908_p7 = scmp.ge.s32.totalorder %s1126_s21, 1  ;;  %p220_p8 = scmp.lt.s32.totalorder %s1126_s21, 3 }
   0xc   : > { %p221_p9 = pnand %p908_p7, %p220_p8 }
   0xd   : > { %p264_p10 = scmp.lt.s32.totalorder (!%p221_p9), %s1189_s22, 1  ;;  %v1128_v0 = vmov (!%p221_p9), 0.0   ;;  %vm1129_vm0 = vmmov (!%p221_p9), 0   ;;  %vm295_vm1 = vcmask (!%p221_p9), 64512   ;;  %vm350_vm2 = vcmask (!%p221_p9), 130048   ;;  %s1130_s17 = smov (!%p221_p9), 120  }
   0xe   : > { %224 = sbr.rel (%p221_p9) target bundleno = 1489 (0x5d1), region = 36  ;;  %952 = vmatprep.subr.bf16.mxu0 (!%p221_p9), %v1128_v0  ;;  %954 = vmatprep.mubr.msk.bf16.mxu0 (!%p221_p9), %vm1129_vm0, %v1128_v0  ;;  %s1131_s23 = smov (!%p221_p9), 112  }
   0xf   : > { %958 = vmatprep.subr.bf16.mxu1 (!%p221_p9), %v1128_v0  ;;  %960 = vmatprep.mubr.msk.bf16.mxu1 (!%p221_p9), %vm1129_vm0, %v1128_v0  ;;  %s1132_s25 = smov (!%p221_p9), 104   ;;  %s935_s15 = sshll.u32 (!%p221_p9), %s1189_s22, 9 }
  0x15   : > { %s1221_s30 = scalar_select %p264_p10, %s1189_s22, 1 }
  0x16   : > { %s1135_s22 = smov [#allocation2]  }
  0x17   : > { %s933_s6 = sshll.u32 %s1221_s30, 4  ;;  %s910_s7 = sshll.u32 %s1221_s30, 3 }
  0x18   : > { %s272_s10 = scalar_lea.vmem %s1386_s1, %s933_s6  ;;  %s267_s13 = scalar_lea.vmem %s1385_s0, %s910_s7 }
  0x19   : > { %v288_v1 = vld [vmem:[%s272_s10] sm:$0xff]  ;;  %v289_v2 = vld [vmem:[%s272_s10 + $0x8] sm:$0xff]  ;;  %s280_s16 = scalar_lea.vmem %s1388_s3, %s1221_s30  ;;  %s277_s9 = scalar_lea.vmem %s1387_s2, %s933_s6 }
  0x1a   : > { %v290_v3 = vpack.c.bf16 %v289_v2, %v288_v1  ;;  %v286_v5 = vld [vmem:[%s267_s13] sm:$0xff]  ;;  %v292_v21 = vld [vmem:[%s277_s9 + $0x8] sm:$0xff]  ;;  %s261_s10 = sand.u32 1, %s1118_s19   ;;  %s1294_s14 = scalar_lea.vmem %s1389_s4, %s910_s7 }
  0x1b   : > { %v287_v6 = vpack.c.bf16 %v286_v5, %v286_v5  ;;  %v1247_v8 = vld [vmem:[%s280_s16] ss:$0 sm:$0xff]  ;;  %s909_s11 = sshll.u32 %s261_s10, 5  ;;  %s1133_s30 = smov 8  }
  0x1c   : > { %v300_v4 = vsel %vm295_vm1, %v290_v3, 0  ;;  %412 = vrot.lane.b32.xlu1 %v290_v3, %s1130_s17  ;;  %v291_v20 = vld [vmem:[%s277_s9] sm:$0xff]  ;;  %s1271_s6 = scalar_lea.vmem [#allocation2], %s909_s11  ;;  %s1134_s7 = smov 16  }
  0x1d   : > { %953 = vmatpush3.bf16.xpose.msra.mxu0 %v300_v4  ;;  %v1262_v22 = vpack.c.bf16 %v292_v21, %v291_v20  ;;  %s786_s16 = sshll.u32 %s1271_s6, 4  ;;  %s1340_s26 = scalar_lea.sflag [#allocation3], %s261_s10  ;;  %s1336_s16 = int_to_ptr.vmem [resolvable:$true] %s786_s16 }
  0x1e   : > { %970 = vmatprep.subr.bf16.mxu0 %v1128_v0  ;;  %s1064_s8 = scalar_lea.vmem %s1336_s16, 512  ;;  %s1068_s9 = sshll.u32 %s1135_s22, 4  ;;  %s1069_s9 = int_to_ptr.vmem [resolvable:$false] %s1068_s9 }
  0x1f   : > { %959 = vmatpush3.bf16.msra.mxu1 %v1262_v22  ;;  %p1065_p11 = scmp.ne.s32.totalorder %s1336_s16, %s1064_s8  ;;  %s1070_s11 = scalar_lea.vmem %s1069_s9, 1024 }
  0x20   : > { %409 = vrot.lane.b32.xlu1 %v287_v6, %s1130_s17  ;;  %964 = vmatprep.subr.bf16.mxu1 %v1128_v0  ;;  %p1071_p0 = scmp.lt.s32.totalorder %s1336_s16, %s1069_s9  ;;  %p1072_p1 = scmp.lt.s32.totalorder %s1070_s11, %s1064_s8 }
  0x21   : > { %p1066_p12 = pnand %p1065_p11, %p1206_p5 }
  0x22   : > { %p1073_p2 = por %p1072_p1, %p1071_p0 }
  0x23   : > { %p1067_p13 = pneg %p1066_p12 }
  0x24   : > { %955 = vmatmul.mubr.msk.bf16.vlgmr.msra.gmra.mrb[0].mxu0 %vm295_vm1, %v287_v6  ;;  %529 = vrot.lane.b32.xlu1 %v287_v6, %s1131_s23 }
  0x25   : > { %972 = vmatprep.mubr.msk.bf16.mxu0 %vm1129_vm0, %v1128_v0  ;;  %p1074_p3 = pnand %p1073_p2, %p1067_p13 }
  0x28   : > { %649 = vrot.lane.b32.xlu1 %v290_v3, %s1132_s25 }
  0x2c   : > { %647 = vrot.lane.b32.xlu1 %v287_v6, %s1132_s25 }
  0x8e   : > { %v413_v25 = vpop.permute.xlu1 %412 }
  0x8f   : > { %v418_v27 = vsel %vm295_vm1, %v413_v25, 0 }
  0x92   : > { %v410_v29 = vpop.permute.xlu1 %409 }
  0x96   : > { %v530_v31 = vpop.permute.xlu1 %529 }
  0x9a   : > { %v650_v33 = vpop.permute.xlu1 %649 }
  0x9b   : > { %v655_v34 = vsel %vm295_vm1, %v650_v33, 0 }
  0x9e   : > { %v648_v35 = vpop.permute.xlu1 %647 }
  0xf7   : > { %v336_v7 = vpop.f32.mrb[0].mxu0 }
  0xf8   : > { %v342_v9 = vmul.f32 0.35355338, %v336_v7  ;;  %v956_v10 = vpop.f32.mrb[1].mxu0 }
  0xf9   : > { %v339_v11 = vpop.f32.mrb[2].mxu0 }
  0xfa   : > { %v957_v12 = vpop.f32.mrb[3].mxu0  ;;  %v349_v13 = vadd.f32 %v1247_v8, %v342_v9 }
  0xfc   : > { %v351_v14 = vsel %vm350_vm2, %v349_v13, -inf }
  0xfd   : > { %352 = vmax.xlane.f32.xlu0 %v351_v14 }
 0x18a   : > { %v353_v15 = vpop.xlane.xlu0 %352 }
 0x18b   : > { %v354_v16 = vsub.f32 %v349_v13, %v353_v15 }
 0x18d   : > { %v355_v17 = vmul.f32 1.442695, %v354_v16 }
 0x18f   : > { %1048 = vpow2.f32 %v355_v17 }
 0x199   : > { %v1049_v18 = vpop.eup %1048 }
 0x19a   : > { %v357_v19 = vsel %vm350_vm2, %v1049_v18, 0.0 }
 0x19b   : > { %358 = vadd.xlane.f32.xlu0 %v357_v19 }
 0x1b1   : > { %531 = vrot.lane.b32.xlu0 %v290_v3, %s1131_s23 }
 0x228   : > { %v359_v23 = vpop.xlane.xlu0 %358 }
 0x229   : > { %1050 = vrcp.f32 %v359_v23 }
 0x22c   : > { %v532_v30 = vpop.permute.xlu0 %531 }
 0x22d   : > { %v537_v32 = vsel %vm295_vm1, %v532_v30, 0 }
 0x233   : > { %v1051_v24 = vpop.eup %1050 }
 0x234   : > { %v361_v26 = vmul.f32 %v1051_v24, %v1049_v18 }
 0x236   : > { %v362_v28 = vpack.c.bf16 %v361_v26, %v361_v26  ;;  %407 = vst.msk [vmem:[%s1271_s6] sm:$0xff] %vm350_vm2, %v361_v26 }
 0x238   : > { %961 = vmatmul.mubr.msk.bf16.vlgmr.msra.gmra.mrb[0].mxu1 %vm350_vm2, %v362_v28 }
 0x239   : > { %965 = vmatpush3.bf16.xpose.msra.mxu1 %v418_v27  ;;  %966 = vmatprep.mubr.msk.bf16.mxu1 %vm1129_vm0, %v1128_v0 }
 0x23a   : > { %976 = vmatprep.subr.bf16.mxu1 %v1128_v0 }
 0x240   : > { %967 = vmatmul.mubr.msk.bf16.vlgmr.msra.gmra.mrb[4].mxu1 %vm295_vm1, %v410_v29 }
 0x241   : > { %977 = vmatpush3.bf16.xpose.msra.mxu1 %v537_v32  ;;  %978 = vmatprep.mubr.msk.bf16.mxu1 %vm1129_vm0, %v1128_v0 }
 0x242   : > { %988 = vmatprep.subr.bf16.mxu1 %v1128_v0 }
 0x248   : > { %979 = vmatmul.mubr.msk.bf16.vlgmr.msra.gmra.mrb[8].mxu1 %vm295_vm1, %v530_v31 }
 0x249   : > { %989 = vmatpush3.bf16.xpose.msra.mxu1 %v655_v34  ;;  %990 = vmatprep.mubr.msk.bf16.mxu1 %vm1129_vm0, %v1128_v0 }
 0x250   : > { %991 = vmatmul.mubr.msk.bf16.vlgmr.msra.gmra.mrb[12].mxu1 %vm295_vm1, %v648_v35 }
 0x30b   : > { %v400_v36 = vpop.f32.mrb[0].mxu1 }
 0x30c   : > { %406 = vst.msk [vmem:[%s1294_s14] sm:$0xff] %vm295_vm1, %v400_v36  ;;  %v962_v37 = vpop.f32.mrb[1].mxu1 }
 0x30d   : > { %v403_v38 = vpop.f32.mrb[2].mxu1 }
 0x30e   : > { %v963_v39 = vpop.f32.mrb[3].mxu1 }
 0x313   : > { %v454_v40 = vpop.f32.mrb[4].mxu1 }
 0x314   : > { %v460_v41 = vmul.f32 0.35355338, %v454_v40  ;;  %v968_v42 = vpop.f32.mrb[5].mxu1 }
 0x315   : > { %v457_v43 = vpop.f32.mrb[6].mxu1 }
 0x316   : > { %v969_v44 = vpop.f32.mrb[7].mxu1  ;;  %v461_v45 = vadd.f32 %v1247_v8, %v460_v41 }
 0x318   : > { %v462_v46 = vsel %vm350_vm2, %v461_v45, -inf }
 0x319   : > { %463 = vmax.xlane.f32.xlu1 %v462_v46 }
 0x31b   : > { %v573_v47 = vpop.f32.mrb[8].mxu1 }
 0x31c   : > { %v579_v48 = vmul.f32 0.35355338, %v573_v47  ;;  %v980_v49 = vpop.f32.mrb[9].mxu1 }
 0x31d   : > { %v576_v50 = vpop.f32.mrb[10].mxu1 }
 0x31e   : > { %v580_v51 = vadd.f32 %v1247_v8, %v579_v48  ;;  %v981_v52 = vpop.f32.mrb[11].mxu1 }
 0x320   : > { %v581_v53 = vsel %vm350_vm2, %v580_v51, -inf }
 0x321   : > { %582 = vmax.xlane.f32.xlu0 %v581_v53 }
 0x323   : > { %v691_v54 = vpop.f32.mrb[12].mxu1 }
 0x324   : > { %v697_v55 = vmul.f32 0.35355338, %v691_v54  ;;  %v992_v56 = vpop.f32.mrb[13].mxu1 }
 0x325   : > { %v694_v57 = vpop.f32.mrb[14].mxu1 }
 0x326   : > { %v698_v58 = vadd.f32 %v1247_v8, %v697_v55  ;;  %v993_v59 = vpop.f32.mrb[15].mxu1 }
 0x328   : > { %v699_v60 = vsel %vm350_vm2, %v698_v58, -inf }
 0x329   : > { %700 = vmax.xlane.f32.xlu1 %v699_v60 }
 0x3a6   : > { %v464_v61 = vpop.xlane.xlu1 %463 }
 0x3a7   : > { %v465_v62 = vsub.f32 %v461_v45, %v464_v61 }
 0x3a9   : > { %v466_v63 = vmul.f32 1.442695, %v465_v62 }
 0x3ab   : > { %1052 = vpow2.f32 %v466_v63 }
 0x3ae   : > { %v583_v1 = vpop.xlane.xlu0 %582 }
 0x3af   : > { %v584_v2 = vsub.f32 %v580_v51, %v583_v1 }
 0x3b1   : > { %v585_v3 = vmul.f32 1.442695, %v584_v2 }
 0x3b3   : > { %1054 = vpow2.f32 %v585_v3 }
 0x3b5   : > { %v1053_v4 = vpop.eup %1052 }
 0x3b6   : > { %v468_v5 = vsel %vm350_vm2, %v1053_v4, 0.0  ;;  %v701_v8 = vpop.xlane.xlu1 %700 }
 0x3b7   : > { %469 = vadd.xlane.f32.xlu1 %v468_v5  ;;  %v702_v9 = vsub.f32 %v698_v58, %v701_v8 }
 0x3b9   : > { %v703_v10 = vmul.f32 1.442695, %v702_v9 }
 0x3bb   : > { %1056 = vpow2.f32 %v703_v10 }
 0x3bd   : > { %v1055_v6 = vpop.eup %1054 }
 0x3be   : > { %v587_v7 = vsel %vm350_vm2, %v1055_v6, 0.0 }
 0x3bf   : > { %588 = vadd.xlane.f32.xlu0 %v587_v7 }
 0x3c5   : > { %v1057_v11 = vpop.eup %1056 }
 0x3c6   : > { %v705_v12 = vsel %vm350_vm2, %v1057_v11, 0.0 }
 0x3c8   : > { %593 = vrot.lane.b32.xlu1 %v1262_v22, %s1131_s23 }
 0x3d5   : > { %475 = vrot.lane.b32.xlu0 %v1262_v22, %s1130_s17 }
 0x3ec   : > { %706 = vadd.xlane.f32.xlu1 %v705_v12 }
 0x3fd   : > { %711 = vrot.lane.b32.xlu1 %v1262_v22, %s1132_s25  ;;  %s1334_s25 = scalar_lea.hbm %s1390_s5, %s935_s15 }
 0x444   : > { %v470_v13 = vpop.xlane.xlu1 %469 }
 0x445   : > { %1058 = vrcp.f32 %v470_v13 }
 0x448   : > { %v594_v19 = vpop.permute.xlu1 %593 }
 0x44c   : > { %v589_v14 = vpop.xlane.xlu0 %588 }
 0x44d   : > { %1060 = vrcp.f32 %v589_v14 }
 0x44f   : > { %v1059_v15 = vpop.eup %1058 }
 0x450   : > { %v472_v16 = vmul.f32 %v1059_v15, %v1053_v4  ;;  %v476_v17 = vpop.permute.xlu0 %475 }
 0x451   : > { %971 = vmatpush3.bf16.msra.mxu0 %v476_v17 }
 0x452   : > { %921 = vst.msk [vmem:[%s1271_s6 + $0x8] sm:$0xff] %vm350_vm2, %v472_v16  ;;  %v473_v18 = vpack.c.bf16 %v472_v16, %v472_v16  ;;  %982 = vmatprep.subr.bf16.mxu0 %v1128_v0 }
 0x454   : > { %973 = vmatmul.mubr.msk.bf16.vlgmr.msra.gmra.mrb[4].mxu0 %vm350_vm2, %v473_v18 }
 0x455   : > { %983 = vmatpush3.bf16.msra.mxu0 %v594_v19  ;;  %984 = vmatprep.mubr.msk.bf16.mxu0 %vm1129_vm0, %v1128_v0 }
 0x456   : > { %994 = vmatprep.subr.bf16.mxu0 %v1128_v0 }
 0x457   : > { %v1061_v20 = vpop.eup %1060 }
 0x458   : > { %v591_v21 = vmul.f32 %v1061_v20, %v1055_v6 }
 0x45a   : > { %924 = vst.msk [vmem:[%s1271_s6 + $0x10] sm:$0xff] %vm350_vm2, %v591_v21  ;;  %v592_v22 = vpack.c.bf16 %v591_v21, %v591_v21 }
 0x45c   : > { %985 = vmatmul.mubr.msk.bf16.vlgmr.msra.gmra.mrb[8].mxu0 %vm350_vm2, %v592_v22 }
 0x45d   : > { %996 = vmatprep.mubr.msk.bf16.mxu0 %vm1129_vm0, %v1128_v0 }
 0x479   : > { %v707_v23 = vpop.xlane.xlu1 %706 }
 0x47a   : > { %1062 = vrcp.f32 %v707_v23 }
 0x47d   : > { %v712_v24 = vpop.permute.xlu1 %711 }
 0x47e   : > { %995 = vmatpush3.bf16.msra.mxu0 %v712_v24 }
 0x484   : > { %v1063_v25 = vpop.eup %1062 }
 0x485   : > { %v709_v26 = vmul.f32 %v1063_v25, %v1057_v11 }
 0x487   : > { %927 = vst.msk [vmem:[%s1271_s6 + $0x18] sm:$0xff] %vm350_vm2, %v709_v26  ;;  %v710_v27 = vpack.c.bf16 %v709_v26, %v709_v26 }
 0x489   : > { %997 = vmatmul.mubr.msk.bf16.vlgmr.msra.gmra.mrb[12].mxu0 %vm350_vm2, %v710_v27 }
 0x527   : > { %v515_v28 = vpop.f32.mrb[4].mxu0 }
 0x528   : > { %522 = vrot.lane.b32.xlu0 %v515_v28, %s1133_s30  ;;  %v974_v29 = vpop.f32.mrb[5].mxu0 }
 0x529   : > { %v518_v0 = vpop.f32.mrb[6].mxu0 }
 0x52a   : > { %v975_v30 = vpop.f32.mrb[7].mxu0 }
 0x52f   : > { %v633_v31 = vpop.f32.mrb[8].mxu0 }
 0x530   : > { %640 = vrot.lane.b32.xlu1 %v633_v31, %s1134_s7  ;;  %v986_v32 = vpop.f32.mrb[9].mxu0 }
 0x531   : > { %v636_v33 = vpop.f32.mrb[10].mxu0 }
 0x532   : > { %v987_v34 = vpop.f32.mrb[11].mxu0 }
 0x533   : > { %1077 = shalt.err (!%p1074_p3)
}
 0x534   : > { %s1078_s10 = scalar_lea.hbm %s1334_s25, 512  ;;  %s1082_s13 = scalar_lea.hbm %s1390_s5, 1024 }
 0x535   : > { %p1079_p4 = scmp.ne.s32.totalorder %s1334_s25, %s1078_s10  ;;  %p1083_p9 = scmp.lt.u32.totalorder %s1334_s25, %s1390_s5 }
 0x536   : > { %p1084_p10 = scmp.lt.u32.totalorder %s1082_s13, %s1078_s10  ;;  %p1086_p12 = scmp.lt.u32.totalorder %s1078_s10, %s1334_s25 }
 0x537   : > { %p1080_p7 = pnand %p1079_p4, %p1206_p5 }
 0x538   : > { %p1085_p11 = por %p1084_p10, %p1083_p9 }
 0x539   : > { %p1081_p8 = pneg %p1080_p7 }
 0x53a   : > { %p1087_p13 = por %p1086_p12, %p1085_p11 }
 0x53c   : > { %p1088_p0 = pnand %p1087_p13, %p1081_p8 }
 0x53e   : > { %1091 = shalt.err (!%p1088_p0)
}
 0x53f   : > { %s1136_s17 = smov 128   ;;  %s1137_s23 = smov 24   ;;  %vm525_vm3 = vcmask 130112   ;;  %vm643_vm4 = vcmask 195712   ;;  %vm761_vm5 = vcmask 261312  }
 0x540   : > { %1000 = dma.vmem_to_hbm [thread:$0]  (%p1206_p5), %s1336_s16, 512, %s1334_s25, %s1340_s26, %s1136_s17, %s1136_s17, %s1133_s30  }
 0x55c   : > { %v751_v35 = vpop.f32.mrb[12].mxu0 }
 0x55d   : > { %758 = vrot.lane.b32.xlu0 %v751_v35, %s1137_s23  ;;  %v998_v36 = vpop.f32.mrb[13].mxu0 }
 0x55e   : > { %v754_v37 = vpop.f32.mrb[14].mxu0 }
 0x55f   : > { %v999_v38 = vpop.f32.mrb[15].mxu0 }
 0x59a   : > { %v523_v39 = vpop.permute.xlu0 %522 }
 0x59b   : > { %526 = vst.msk [vmem:[%s1294_s14] sm:$0xff] %vm525_vm3, %v523_v39 }
 0x5a2   : > { %v641_v40 = vpop.permute.xlu1 %640 }
 0x5a3   : > { %644 = vst.msk [vmem:[%s1294_s14] sm:$0xff] %vm643_vm4, %v641_v40 }
 0x5cf   : > { %v759_v41 = vpop.permute.xlu0 %758 }
 0x5d0   : > { %762 = vst.msk [vmem:[%s1294_s14] sm:$0xff] %vm761_vm5, %v759_v41 }
 0x5d1 PF: > { %p1006_p5 = scmp.ge.s32.totalorder %s1126_s21, 2  ;;  %s808_s28 = sand.u32 1, %s1114_s18  }
 0x5d2   : > { %s809_s30 = scalar_lea.sflag [#allocation3], %s808_s28 }
 0x5d3   : > { %p1003_p1 = pnand %p1006_p5, %p1210_p6 }
 0x5d5   : > { %1109 = dma.done.wait (!%p1003_p1), %s809_s30, 512  }
 0x5d6   : > { %1111 = vsyncadd (!%p1003_p1), %s809_s30, 4294966784  ;;  %p16_p2 = scmp.ge.s32.totalorder %s1193_s24, 4   ;;  %s1393_s18 = smov %s1118_s19 }
 0x5d7   : > { %s1394_s19 = smov %s1122_s20  ;;  %s1395_s20 = smov %s1204_s27 }
 0x5d8   : > { %s1396_s21 = smov %s1193_s24  ;;  %18 = sbr.rel (!%p16_p2) target bundleno = 3 (0x3), region = 95 }
 0x5df   :  { %814 = vsyncpa [#allocation3], 1 }
 0x5e0   :  { %816 = vsyncpa [#allocation3 + $0x1], 1 }

// kernel: bert_connect_layer.18
= control target key start
LH: loop header
LB: loop body
LE: loop exit
PB: predicated region body
PF: predicated region fallthrough
CT: control target
= control target key end

     0   :  { %vm19_vm0 = vcmask 523264   ;;  %v154_v0 = vmov 0.0   ;;  %vm155_vm1 = vmmov 0   ;;  %vm43_vm2 = vcmask 261120   ;;  %s203_s1 = inlined_call_operand.vmem [shape: bf16[32,64], index: 1, kind: input, shape index: {}]   ;;  %s204_s0 = inlined_call_operand.vmem [shape: f32[16,32], index: 0, kind: input, shape index: {}]   ;;  %s205_s2 = inlined_call_operand.vmem [shape: f32[1,64], index: 2, kind: input, shape index: {}]   ;;  %s206_s3 = inlined_call_operand.vmem [shape: f32[16,64], index: 3, kind: output, shape index: {}]  }
   0x1   :  { %138 = vmatprep.subr.bf16.mxu0 %v154_v0  ;;  %v148_v1 = vld [vmem:[%s203_s1] sm:$0xff]   ;;  %142 = vmatprep.mubr.msk.bf16.mxu0 %vm155_vm1, %v154_v0  ;;  %20 = vst.msk [vmem:[#allocation2] sm:$0xff] %vm19_vm0, %v154_v0  ;;  %21 = vst.msk [vmem:[#allocation2 + $0x8] sm:$0xff] %vm19_vm0, %v154_v0  ;;  %v149_v2 = vld [vmem:[%s203_s1 + $0x8] sm:$0xff]  }
   0x2   :  { %139 = vmatpush3.bf16.msra.mxu0 %v148_v1  ;;  %v24_v3 = vld [vmem:[%s204_s0] sm:$0xff]  ;;  %v25_v4 = vld [vmem:[%s204_s0 + $0x8] sm:$0xff] }
   0x3   :  { %140 = vmatprep.subr.bf16.mxu0 %v154_v0  ;;  %v26_v5 = vpack.c.bf16 %v25_v4, %v24_v3  ;;  %v134_v14 = vld [vmem:[%s205_s2] ss:$0 sm:$0xff] }
   0x6   :  { %141 = vmatpush3.bf16.msra.mxu0 %v149_v2 }
   0x8   :  { %v22_v6 = vld [vmem:[#allocation2] sm:$0xff]  ;;  %v23_v8 = vld [vmem:[#allocation2 + $0x8] sm:$0xff] }
   0x9   :  { %143 = vmatmul.mubr.msk.bf16.vlgmr.msra.gmra.mrb[0].mxu0 %vm43_vm2, %v26_v5 }
  0xdc   :  { %v81_v7 = vpop.f32.mrb[0].mxu0 }
  0xdd   :  { %v88_v9 = vadd.f32 %v81_v7, %v22_v6  ;;  %v144_v10 = vpop.f32.mrb[1].mxu0 }
  0xde   :  { %v84_v11 = vpop.f32.mrb[2].mxu0 }
  0xdf   :  { %91 = vst.msk [vmem:[#allocation2] sm:$0xff] %vm19_vm0, %v88_v9  ;;  %v89_v12 = vadd.f32 %v84_v11, %v23_v8  ;;  %v145_v13 = vpop.f32.mrb[3].mxu0 }
  0xe1   :  { %92 = vst.msk [vmem:[#allocation2 + $0x8] sm:$0xff] %vm19_vm0, %v89_v12 }
  0xe6   :  { %v96_v15 = vld [vmem:[#allocation2] sm:$0xff] }
  0xe7   :  { %v105_v16 = vadd.f32 %v134_v14, %v96_v15 }
  0xe8   :  { %v97_v17 = vld [vmem:[#allocation2 + $0x8] sm:$0xff] }
  0xe9   :  { %v109_v18 = vmul.f32 0.044715, %v105_v16  ;;  %v106_v19 = vadd.f32 %v134_v14, %v97_v17  ;;  %v107_v30 = vmul.f32 0.5, %v105_v16 }
  0xeb   :  { %v111_v20 = vmul.f32 %v109_v18, %v105_v16  ;;  %v110_v21 = vmul.f32 0.044715, %v106_v19  ;;  %v108_v34 = vmul.f32 0.5, %v106_v19 }
  0xed   :  { %v113_v22 = vmul.f32 %v111_v20, %v105_v16  ;;  %v112_v23 = vmul.f32 %v110_v21, %v106_v19 }
  0xef   :  { %v115_v24 = vadd.f32 %v113_v22, %v105_v16  ;;  %v114_v25 = vmul.f32 %v112_v23, %v106_v19 }
  0xf1   :  { %v117_v26 = vmul.f32 0.7978846, %v115_v24  ;;  %v116_v27 = vadd.f32 %v114_v25, %v106_v19 }
  0xf3   :  { %150 = vtanh.f32 %v117_v26  ;;  %v118_v28 = vmul.f32 0.7978846, %v116_v27 }
  0xf5   :  { %152 = vtanh.f32 %v118_v28 }
  0xfd   :  { %v151_v29 = vpop.eup %150 }
  0xfe   :  { %v121_v31 = vadd.f32 1.0, %v151_v29 }
  0xff   :  { %v153_v32 = vpop.eup %152 }
 0x100   :  { %v123_v33 = vmul.f32 %v121_v31, %v107_v30  ;;  %v122_v35 = vadd.f32 1.0, %v153_v32 }
 0x102   :  { %125 = vst.msk [vmem:[%s206_s3] sm:$0xff] %vm19_vm0, %v123_v33  ;;  %v124_v36 = vmul.f32 %v122_v35, %v108_v34 }
 0x104   :  { %126 = vst.msk [vmem:[%s206_s3 + $0x8] sm:$0xff] %vm19_vm0, %v124_v36 }

// kernel: bert_connect_layer.19
= control target key start
LH: loop header
LB: loop body
LE: loop exit
PB: predicated region body
PF: predicated region fallthrough
CT: control target
= control target key end

     0   :  { %v262_v1 = vmov 0.0   ;;  %vm263_vm0 = vmmov 0   ;;  %vm29_vm1 = vcmask 261120   ;;  %s357_s0 = inlined_call_operand.vmem [shape: f32[16,64], index: 0, kind: input, shape index: {}]   ;;  %s358_s1 = inlined_call_operand.vmem [shape: bf16[64,32], index: 1, kind: input, shape index: {}]   ;;  %s359_s2 = inlined_call_operand.vmem [shape: f32[1,32], index: 2, kind: input, shape index: {}]   ;;  %s360_s3 = inlined_call_operand.vmem [shape: f32[16,32], index: 3, kind: input, shape index: {}]   ;;  %s361_s4 = inlined_call_operand.vmem [shape: f32[1,32], index: 4, kind: input, shape index: {}]   ;;  %s362_s5 = inlined_call_operand.vmem [shape: f32[1,32], index: 5, kind: input, shape index: {}]   ;;  %s363_s6 = inlined_call_operand.hbm [shape: f32[16,32], index: 6, kind: output, shape index: {}]  }
   0x1   :  { %v230_v0 = vld [vmem:[%s358_s1] sm:$0xff]   ;;  %213 = vmatprep.subr.bf16.mxu0 %v262_v1  ;;  %v231_v2 = vld [vmem:[%s358_s1 + $0x8] sm:$0xff]   ;;  %221 = vmatprep.mubr.msk.bf16.mxu0 %vm263_vm0, %v262_v1  ;;  %30 = vst.msk [vmem:[#allocation2] sm:$0xff] %vm29_vm1, %v262_v1  ;;  %31 = vst.msk [vmem:[#allocation2 + $0x8] sm:$0xff] %vm29_vm1, %v262_v1 }
   0x2   :  { %214 = vmatpush3.bf16.msra.mxu0 %v230_v0 }
   0x3   :  { %215 = vmatprep.subr.bf16.mxu0 %v262_v1 }
   0x4   :  { %11 = vsyncpa [#allocation4], 0  ;;  %v232_v3 = vld [vmem:[%s358_s1 + $0x10] sm:$0xff]   ;;  %v233_v4 = vld [vmem:[%s358_s1 + $0x18] sm:$0xff]   ;;  %vm69_vm2 = vcmask 523264   ;;  %s264_s15 = smov [#allocation3]  }
   0x5   :  { %v34_v5 = vld [vmem:[%s357_s0] sm:$0xff]  ;;  %v35_v6 = vld [vmem:[%s357_s0 + $0x8] sm:$0xff]  ;;  %s189_s16 = sshll.u32 %s264_s15, 4  ;;  %s190_s16 = int_to_ptr.vmem [resolvable:$true] %s189_s16 }
   0x6   :  { %216 = vmatpush3.bf16.msra.mxu0 %v231_v2  ;;  %v36_v7 = vpack.c.bf16 %v35_v6, %v34_v5  ;;  %v205_v16 = vld [vmem:[%s359_s2] ss:$0 sm:$0xff]  ;;  %v134_v21 = vld [vmem:[%s360_s3 + $0x8] sm:$0xff]  ;;  %s238_s17 = scalar_lea.vmem %s190_s16, 256  ;;  %p243_p1 = scmp.lt.s32.totalorder %s190_s16, %s190_s16 }
   0x7   :  { %217 = vmatprep.subr.bf16.mxu0 %v262_v1  ;;  %v133_v18 = vld [vmem:[%s360_s3] sm:$0xff]  ;;  %p239_p0 = scmp.ne.s32.totalorder %s190_s16, %s238_s17  ;;  %p244_p2 = scmp.lt.s32.totalorder %s238_s17, %s238_s17 }
   0x8   :  { %v32_v8 = vld [vmem:[#allocation2] sm:$0xff]  ;;  %v33_v10 = vld [vmem:[#allocation2 + $0x8] sm:$0xff] }
   0x9   :  { %v206_v44 = vld [vmem:[%s361_s4] ss:$0 sm:$0xff]  ;;  %p245_p3 = por %p244_p2, %p243_p1 }
   0xa   :  { %218 = vmatpush3.bf16.msra.mxu0 %v232_v3  ;;  %v207_v46 = vld [vmem:[%s362_s5] ss:$0 sm:$0xff] }
   0xb   :  { %219 = vmatprep.subr.bf16.mxu0 %v262_v1  ;;  %p246_p4 = pnand %p245_p3, %p239_p0 }
   0xe   :  { %220 = vmatpush3.bf16.msra.mxu0 %v233_v4 }
  0x11   :  { %222 = vmatmul.mubr.msk.bf16.vlgmr.msra.gmra.mrb[0].mxu0 %vm69_vm2, %v36_v7 }
  0xe4   :  { %v107_v9 = vpop.f32.mrb[0].mxu0 }
  0xe5   :  { %v114_v11 = vadd.f32 %v107_v9, %v32_v8  ;;  %v223_v12 = vpop.f32.mrb[1].mxu0 }
  0xe6   :  { %v110_v13 = vpop.f32.mrb[2].mxu0 }
  0xe7   :  { %117 = vst.msk [vmem:[#allocation2] sm:$0xff] %vm29_vm1, %v114_v11  ;;  %v115_v14 = vadd.f32 %v110_v13, %v33_v10  ;;  %v224_v15 = vpop.f32.mrb[3].mxu0 }
  0xe9   :  { %118 = vst.msk [vmem:[#allocation2 + $0x8] sm:$0xff] %vm29_vm1, %v115_v14 }
  0xee   :  { %v122_v17 = vld [vmem:[#allocation2] sm:$0xff] }
  0xef   :  { %v131_v19 = vadd.f32 %v205_v16, %v122_v17 }
  0xf0   :  { %v123_v20 = vld [vmem:[#allocation2 + $0x8] sm:$0xff] }
  0xf1   :  { %v135_v22 = vadd.f32 %v133_v18, %v131_v19  ;;  %v132_v23 = vadd.f32 %v205_v16, %v123_v20 }
  0xf3   :  { %v137_v24 = vsel %vm29_vm1, %v135_v22, 0.0  ;;  %v136_v25 = vadd.f32 %v134_v21, %v132_v23 }
  0xf4   :  { %138 = vadd.xlane.f32.xlu0 %v137_v24 }
  0xf5   :  { %v140_v26 = vsel %vm29_vm1, %v136_v25, 0.0 }
  0xf8   :  { %141 = vadd.xlane.f32.xlu0 %v140_v26 }
 0x181   :  { %v139_v27 = vpop.xlane.xlu0 %138 }
 0x182   :  { %v144_v28 = vmul.f32 0.03125, %v139_v27 }
 0x184   :  { %v146_v29 = vsub.f32 %v135_v22, %v144_v28 }
 0x185   :  { %v142_v30 = vpop.xlane.xlu0 %141 }
 0x186   :  { %v145_v31 = vmul.f32 0.03125, %v142_v30  ;;  %v148_v32 = vmul.f32 %v146_v29, %v146_v29 }
 0x188   :  { %v147_v33 = vsub.f32 %v136_v25, %v145_v31  ;;  %v150_v34 = vsel %vm29_vm1, %v148_v32, 0.0 }
 0x189   :  { %151 = vadd.xlane.f32.xlu1 %v150_v34 }
 0x18a   :  { %v149_v35 = vmul.f32 %v147_v33, %v147_v33 }
 0x18c   :  { %v153_v36 = vsel %vm29_vm1, %v149_v35, 0.0 }
 0x18d   :  { %154 = vadd.xlane.f32.xlu1 %v153_v36 }
 0x216   :  { %v152_v37 = vpop.xlane.xlu1 %151 }
 0x217   :  { %v156_v38 = vmul.f32 0.03125, %v152_v37 }
 0x219   :  { %v158_v39 = vadd.f32 1e-12, %v156_v38 }
 0x21a   :  { %v155_v40 = vpop.xlane.xlu1 %154 }
 0x21b   :  { %234 = vrsqrt.f32 %v158_v39  ;;  %v157_v41 = vmul.f32 0.03125, %v155_v40 }
 0x21d   :  { %v159_v42 = vadd.f32 1e-12, %v157_v41 }
 0x21f   :  { %236 = vrsqrt.f32 %v159_v42 }
 0x225   :  { %v235_v43 = vpop.eup %234 }
 0x226   :  { %v162_v45 = vmul.f32 %v235_v43, %v146_v29 }
 0x228   :  { %v171_v47 = vmul.f32 %v206_v44, %v162_v45 }
 0x229   :  { %v237_v48 = vpop.eup %236 }
 0x22a   :  { %v163_v49 = vmul.f32 %v237_v48, %v147_v33  ;;  %v180_v50 = vadd.f32 %v207_v46, %v171_v47 }
 0x22c   :  { %v172_v51 = vmul.f32 %v206_v44, %v163_v49  ;;  %182 = vst.msk [vmem:[#allocation3] sm:$0xff] %vm29_vm1, %v180_v50 }
 0x22e   :  { %v181_v52 = vadd.f32 %v207_v46, %v172_v51 }
 0x230   :  { %183 = vst.msk [vmem:[#allocation3 + $0x8] sm:$0xff] %vm29_vm1, %v181_v52 }
 0x231   :  { %249 = shalt.err (!%p246_p4)
}
 0x232   :  { %s250_s18 = scalar_lea.hbm %s363_s6, 256 }
 0x233   :  { %p251_p5 = scmp.ne.s32.totalorder %s363_s6, %s250_s18  ;;  %p254_p6 = scmp.lt.u32.totalorder %s250_s18, %s363_s6 }
 0x235   :  { %p256_p7 = pnand %p254_p6, %p251_p5 }
 0x237   :  { %259 = shalt.err (!%p256_p7)
}
 0x238   :  { %s265_s23 = smov 128   ;;  %s266_s24 = smov 8  }
 0x239   :  { %195 = dma.vmem_to_hbm [thread:$0]  %s190_s16, 256, %s363_s6, [#allocation4], %s265_s23, %s265_s23, %s266_s24  }
 0x23a   :  { %260 = dma.done.wait [#allocation4], 256  }
 0x23b   :  { %261 = vsyncadd [#allocation4], 4294967040 }
 0x23c   :  { %199 = vsyncpa [#allocation4], 1 }

// kernel: bert_connect_layer.13
= control target key start
LH: loop header
LB: loop body
LE: loop exit
PB: predicated region body
PF: predicated region fallthrough
CT: control target
= control target key end

     0   :  { %s1166_s18 = smov 0   ;;  %s1320_s0 = inlined_call_operand.vmem [shape: f32[2,16,32], index: 0, kind: input, shape index: {}]   ;;  %s1321_s1 = inlined_call_operand.vmem [shape: f32[2,8,32], index: 1, kind: input, shape index: {}]   ;;  %s1322_s2 = inlined_call_operand.vmem [shape: f32[2,8,32], index: 2, kind: input, shape index: {}]   ;;  %s1323_s3 = inlined_call_operand.vmem [shape: f32[2,1,1,8], index: 3, kind: input, shape index: {}]   ;;  %s1324_s4 = inlined_call_operand.vmem [shape: f32[2,16,32], index: 4, kind: output, shape index: {0}]   ;;  %s1325_s5 = inlined_call_operand.vmem [shape: f32[2,4,16,8], index: 5, kind: output, shape index: {1}]  }
   0x1 LB: > { %s975_s19 = sadd.s32 4294967295, %s1126_s18   ;;  %p979_p0 = scmp.ge.s32.totalorder %s1126_s18, 1  ;;  %s1126_s18 = sphi %s1166_s18, %s16_s18  }
   0x2   : > { %p216_p1 = scmp.lt.s32.totalorder %s1126_s18, 3 }
   0x4   : > { %p217_p2 = pnand %p979_p0, %p216_p1 }
   0x5   : > { %p260_p3 = scmp.lt.s32.totalorder (!%p217_p2), %s975_s19, 1  ;;  %v1128_v0 = vmov (!%p217_p2), 0.0   ;;  %vm1129_vm0 = vmmov (!%p217_p2), 0   ;;  %vm295_vm1 = vcmask (!%p217_p2), 64512   ;;  %s1130_s6 = smov (!%p217_p2), 120   ;;  %vm379_vm2 = vcmask (!%p217_p2), 1043456  }
   0x6   : > { %220 = sbr.rel (%p217_p2) target bundleno = 1498 (0x5da), region = 36  ;;  %1024 = vmatprep.subr.bf16.mxu0 (!%p217_p2), %v1128_v0  ;;  %1026 = vmatprep.mubr.msk.bf16.mxu0 (!%p217_p2), %vm1129_vm0, %v1128_v0  ;;  %s1131_s7 = smov (!%p217_p2), 104   ;;  %vm566_vm3 = vcmask (!%p217_p2), 130112   ;;  %vm707_vm4 = vcmask (!%p217_p2), 195712   ;;  %vm848_vm5 = vcmask (!%p217_p2), 261312  }
   0x7   : > { %1030 = vmatprep.subr.bf16.mxu1 (!%p217_p2), %v1128_v0  ;;  %1032 = vmatprep.mubr.msk.bf16.mxu1 (!%p217_p2), %vm1129_vm0, %v1128_v0  ;;  %s1132_s11 = smov (!%p217_p2), 112   ;;  %s1134_s21 = smov (!%p217_p2), 16  }
   0x8   : > { %s1135_s22 = smov (!%p217_p2), 24  }
   0xd   : > { %s1327_s19 = smov (!%p260_p3, %s975_s19), 1 }
   0xe   : > { %s982_s20 = sshll.u32 %s1327_s19, 3  ;;  %s1005_s24 = sshll.u32 %s1327_s19, 4 }
   0xf   : > { %s268_s23 = scalar_lea.vmem %s1321_s1, %s982_s20  ;;  %s264_s27 = scalar_lea.vmem %s1320_s0, %s1005_s24 }
  0x10   : > { %v290_v1 = vld [vmem:[%s268_s23] sm:$0xff]  ;;  %v288_v5 = vld [vmem:[%s264_s27 + $0x8] sm:$0xff]  ;;  %s275_s30 = scalar_lea.vmem %s1323_s3, %s1327_s19  ;;  %s272_s10 = scalar_lea.vmem %s1322_s2, %s982_s20 }
  0x11   : > { %v291_v2 = vpack.c.bf16 %v290_v1, %v290_v1  ;;  %v287_v4 = vld [vmem:[%s264_s27] sm:$0xff]  ;;  %s1007_s12 = sshll.u32 %s1327_s19, 6  ;;  %s1257_s20 = scalar_lea.vmem %s1324_s4, %s1005_s24 }
  0x12   : > { %v289_v6 = vpack.c.bf16 %v288_v5, %v287_v4  ;;  %v1203_v8 = vld [vmem:[%s275_s30] ss:$0 sm:$0xff]  ;;  %s1231_s15 = scalar_lea.vmem %s1325_s5, %s1007_s12  ;;  %s1133_s19 = smov 8  }
  0x13   : > { %v300_v3 = vsel %vm295_vm1, %v291_v2, 0  ;;  %v292_v28 = vld [vmem:[%s272_s10] sm:$0xff] }
  0x14   : > { %1025 = vmatpush3.bf16.xpose.msra.mxu0 %v300_v3  ;;  %v1218_v29 = vpack.c.bf16 %v292_v28, %v292_v28 }
  0x15   : > { %1042 = vmatprep.subr.bf16.mxu0 %v1128_v0 }
  0x16   : > { %v381_v30 = vsel %vm379_vm2, %v1218_v29, 0 }
  0x17   : > { %1031 = vmatpush3.bf16.msra.mxu1 %v381_v30 }
  0x18   : > { %1036 = vmatprep.subr.bf16.mxu1 %v1128_v0 }
  0x1b   : > { %1027 = vmatmul.mubr.msk.bf16.vlgmr.msra.gmra.mrb[0].mxu0 %vm295_vm1, %v289_v6 }
  0x1c   : > { %1044 = vmatprep.mubr.msk.bf16.mxu0 %vm1129_vm0, %v1128_v0 }
  0xee   : > { %v336_v7 = vpop.f32.mrb[0].mxu0 }
  0xef   : > { %v343_v9 = vmul.f32 0.35355338, %v336_v7  ;;  %v1028_v10 = vpop.f32.mrb[1].mxu0 }
  0xf0   : > { %v339_v11 = vpop.f32.mrb[2].mxu0 }
  0xf1   : > { %v344_v12 = vmul.f32 0.35355338, %v339_v11  ;;  %v1029_v13 = vpop.f32.mrb[3].mxu0  ;;  %v351_v14 = vadd.f32 %v1203_v8, %v343_v9 }
  0xf3   : > { %v353_v15 = vsel %vm295_vm1, %v351_v14, -inf  ;;  %v352_v16 = vadd.f32 %v1203_v8, %v344_v12 }
  0xf4   : > { %354 = vmax.xlane.f32.xlu0 %v353_v15 }
  0xf5   : > { %v356_v17 = vsel %vm295_vm1, %v352_v16, -inf }
  0xf8   : > { %357 = vmax.xlane.f32.xlu0 %v356_v17 }
 0x10e   : > { %432 = vrot.lane.b32.xlu0 %v291_v2, %s1130_s6 }
 0x112   : > { %715 = vrot.lane.b32.xlu0 %v291_v2, %s1131_s7 }
 0x181   : > { %v355_v18 = vpop.xlane.xlu0 %354 }
 0x182   : > { %v359_v19 = vsub.f32 %v351_v14, %v355_v18 }
 0x184   : > { %v361_v20 = vmul.f32 1.442695, %v359_v19 }
 0x185   : > { %v358_v21 = vpop.xlane.xlu0 %357 }
 0x186   : > { %1088 = vpow2.f32 %v361_v20  ;;  %v360_v22 = vsub.f32 %v352_v16, %v358_v21 }
 0x188   : > { %v363_v23 = vmul.f32 1.442695, %v360_v22 }
 0x189   : > { %v433_v36 = vpop.permute.xlu0 %432 }
 0x18a   : > { %1090 = vpow2.f32 %v363_v23  ;;  %v438_v39 = vsel %vm295_vm1, %v433_v36, 0 }
 0x18d   : > { %v716_v43 = vpop.permute.xlu0 %715 }
 0x18e   : > { %v721_v45 = vsel %vm295_vm1, %v716_v43, 0 }
 0x190   : > { %v1089_v24 = vpop.eup %1088 }
 0x191   : > { %v365_v25 = vsel %vm295_vm1, %v1089_v24, 0.0 }
 0x192   : > { %366 = vadd.xlane.f32.xlu1 %v365_v25 }
 0x194   : > { %v1091_v26 = vpop.eup %1090 }
 0x195   : > { %v368_v27 = vsel %vm295_vm1, %v1091_v26, 0.0 }
 0x196   : > { %369 = vadd.xlane.f32.xlu1 %v368_v27 }
 0x1a7   : > { %429 = vrot.lane.b32.xlu1 %v289_v6, %s1130_s6 }
 0x1ab   : > { %574 = vrot.lane.b32.xlu1 %v291_v2, %s1132_s11 }
 0x1af   : > { %572 = vrot.lane.b32.xlu1 %v289_v6, %s1132_s11 }
 0x1b3   : > { %713 = vrot.lane.b32.xlu1 %v289_v6, %s1131_s7 }
 0x21f   : > { %v367_v31 = vpop.xlane.xlu1 %366 }
 0x220   : > { %1092 = vrcp.f32 %v367_v31 }
 0x223   : > { %v370_v32 = vpop.xlane.xlu1 %369 }
 0x224   : > { %1094 = vrcp.f32 %v370_v32 }
 0x227   : > { %v430_v38 = vpop.permute.xlu1 %429 }
 0x22a   : > { %v1093_v33 = vpop.eup %1092 }
 0x22b   : > { %v373_v34 = vmul.f32 %v1093_v33, %v1089_v24  ;;  %v575_v41 = vpop.permute.xlu1 %574 }
 0x22c   : > { %v580_v42 = vsel %vm295_vm1, %v575_v41, 0 }
 0x22d   : > { %426 = vst.msk [vmem:[%s1231_s15] sm:$0xff] %vm295_vm1, %v373_v34 }
 0x22e   : > { %v1095_v35 = vpop.eup %1094 }
 0x22f   : > { %v374_v37 = vmul.f32 %v1095_v35, %v1091_v26  ;;  %v573_v44 = vpop.permute.xlu1 %572 }
 0x231   : > { %v375_v40 = vpack.c.bf16 %v374_v37, %v373_v34  ;;  %427 = vst.msk [vmem:[%s1231_s15 + $0x8] sm:$0xff] %vm295_vm1, %v374_v37 }
 0x233   : > { %1033 = vmatmul.mubr.msk.bf16.vlgmr.msra.gmra.mrb[0].mxu1 %vm295_vm1, %v375_v40  ;;  %v714_v46 = vpop.permute.xlu1 %713 }
 0x234   : > { %1037 = vmatpush3.bf16.xpose.msra.mxu1 %v438_v39  ;;  %1038 = vmatprep.mubr.msk.bf16.mxu1 %vm1129_vm0, %v1128_v0 }
 0x235   : > { %1048 = vmatprep.subr.bf16.mxu1 %v1128_v0 }
 0x23b   : > { %1039 = vmatmul.mubr.msk.bf16.vlgmr.msra.gmra.mrb[4].mxu1 %vm295_vm1, %v430_v38 }
 0x23c   : > { %1049 = vmatpush3.bf16.xpose.msra.mxu1 %v580_v42  ;;  %1050 = vmatprep.mubr.msk.bf16.mxu1 %vm1129_vm0, %v1128_v0 }
 0x23d   : > { %1060 = vmatprep.subr.bf16.mxu1 %v1128_v0 }
 0x243   : > { %1051 = vmatmul.mubr.msk.bf16.vlgmr.msra.gmra.mrb[8].mxu1 %vm295_vm1, %v573_v44 }
 0x244   : > { %1061 = vmatpush3.bf16.xpose.msra.mxu1 %v721_v45  ;;  %1062 = vmatprep.mubr.msk.bf16.mxu1 %vm1129_vm0, %v1128_v0 }
 0x24b   : > { %1063 = vmatmul.mubr.msk.bf16.vlgmr.msra.gmra.mrb[12].mxu1 %vm295_vm1, %v714_v46 }
 0x306   : > { %v417_v47 = vpop.f32.mrb[0].mxu1 }
 0x307   : > { %424 = vst.msk [vmem:[%s1257_s20] sm:$0xff] %vm295_vm1, %v417_v47  ;;  %v1034_v48 = vpop.f32.mrb[1].mxu1 }
 0x308   : > { %v420_v49 = vpop.f32.mrb[2].mxu1 }
 0x309   : > { %425 = vst.msk [vmem:[%s1257_s20 + $0x8] sm:$0xff] %vm295_vm1, %v420_v49  ;;  %v1035_v50 = vpop.f32.mrb[3].mxu1 }
 0x30e   : > { %v474_v51 = vpop.f32.mrb[4].mxu1 }
 0x30f   : > { %v481_v52 = vmul.f32 0.35355338, %v474_v51  ;;  %v1040_v53 = vpop.f32.mrb[5].mxu1 }
 0x310   : > { %v477_v54 = vpop.f32.mrb[6].mxu1 }
 0x311   : > { %v482_v55 = vmul.f32 0.35355338, %v477_v54  ;;  %v1041_v56 = vpop.f32.mrb[7].mxu1  ;;  %v483_v57 = vadd.f32 %v1203_v8, %v481_v52 }
 0x313   : > { %v485_v58 = vsel %vm295_vm1, %v483_v57, -inf  ;;  %v484_v59 = vadd.f32 %v1203_v8, %v482_v55 }
 0x314   : > { %486 = vmax.xlane.f32.xlu0 %v485_v58 }
 0x315   : > { %v488_v60 = vsel %vm295_vm1, %v484_v59, -inf }
 0x316   : > { %489 = vmax.xlane.f32.xlu1 %v488_v60  ;;  %v616_v61 = vpop.f32.mrb[8].mxu1 }
 0x317   : > { %v623_v62 = vmul.f32 0.35355338, %v616_v61  ;;  %v1052_v63 = vpop.f32.mrb[9].mxu1 }
 0x318   : > { %v619_v1 = vpop.f32.mrb[10].mxu1 }
 0x319   : > { %v624_v2 = vmul.f32 0.35355338, %v619_v1  ;;  %v1053_v3 = vpop.f32.mrb[11].mxu1  ;;  %v625_v4 = vadd.f32 %v1203_v8, %v623_v62 }
 0x31b   : > { %v627_v5 = vsel %vm295_vm1, %v625_v4, -inf  ;;  %v626_v6 = vadd.f32 %v1203_v8, %v624_v2 }
 0x31c   : > { %628 = vmax.xlane.f32.xlu0 %v627_v5 }
 0x31d   : > { %v630_v11 = vsel %vm295_vm1, %v626_v6, -inf }
 0x31e   : > { %v757_v7 = vpop.f32.mrb[12].mxu1 }
 0x31f   : > { %v764_v9 = vmul.f32 0.35355338, %v757_v7  ;;  %v1064_v10 = vpop.f32.mrb[13].mxu1 }
 0x320   : > { %631 = vmax.xlane.f32.xlu0 %v630_v11  ;;  %v760_v12 = vpop.f32.mrb[14].mxu1 }
 0x321   : > { %v765_v13 = vmul.f32 0.35355338, %v760_v12  ;;  %v766_v14 = vadd.f32 %v1203_v8, %v764_v9  ;;  %v1065_v15 = vpop.f32.mrb[15].mxu1 }
 0x323   : > { %v768_v16 = vsel %vm295_vm1, %v766_v14, -inf  ;;  %v767_v17 = vadd.f32 %v1203_v8, %v765_v13 }
 0x324   : > { %769 = vmax.xlane.f32.xlu0 %v768_v16 }
 0x325   : > { %v771_v18 = vsel %vm295_vm1, %v767_v17, -inf }
 0x326   : > { %772 = vmax.xlane.f32.xlu1 %v771_v18 }
 0x3a1   : > { %v487_v19 = vpop.xlane.xlu0 %486 }
 0x3a2   : > { %v491_v20 = vsub.f32 %v483_v57, %v487_v19 }
 0x3a3   : > { %v490_v21 = vpop.xlane.xlu1 %489 }
 0x3a4   : > { %v493_v22 = vmul.f32 1.442695, %v491_v20  ;;  %v492_v23 = vsub.f32 %v484_v59, %v490_v21 }
 0x3a6   : > { %1096 = vpow2.f32 %v493_v22  ;;  %v495_v24 = vmul.f32 1.442695, %v492_v23 }
 0x3a8   : > { %1098 = vpow2.f32 %v495_v24 }
 0x3a9   : > { %v629_v25 = vpop.xlane.xlu0 %628 }
 0x3aa   : > { %v633_v26 = vsub.f32 %v625_v4, %v629_v25 }
 0x3ac   : > { %v635_v27 = vmul.f32 1.442695, %v633_v26 }
 0x3ad   : > { %v632_v28 = vpop.xlane.xlu0 %631 }
 0x3ae   : > { %1100 = vpow2.f32 %v635_v27  ;;  %v634_v30 = vsub.f32 %v626_v6, %v632_v28 }
 0x3b0   : > { %v1097_v31 = vpop.eup %1096  ;;  %v637_v8 = vmul.f32 1.442695, %v634_v30 }
 0x3b1   : > { %v770_v32 = vpop.xlane.xlu0 %769  ;;  %v497_v33 = vsel %vm295_vm1, %v1097_v31, 0.0 }
 0x3b2   : > { %v1099_v34 = vpop.eup %1098  ;;  %1102 = vpow2.f32 %v637_v8  ;;  %v774_v35 = vsub.f32 %v766_v14, %v770_v32  ;;  %498 = vadd.xlane.f32.xlu0 %v497_v33 }
 0x3b3   : > { %v500_v36 = vsel %vm295_vm1, %v1099_v34, 0.0  ;;  %v773_v44 = vpop.xlane.xlu1 %772 }
 0x3b4   : > { %v776_v37 = vmul.f32 1.442695, %v774_v35  ;;  %501 = vadd.xlane.f32.xlu1 %v500_v36  ;;  %v775_v45 = vsub.f32 %v767_v17, %v773_v44 }
 0x3b6   : > { %1104 = vpow2.f32 %v776_v37  ;;  %v778_v46 = vmul.f32 1.442695, %v775_v45 }
 0x3b8   : > { %v1101_v38 = vpop.eup %1100  ;;  %1106 = vpow2.f32 %v778_v46 }
 0x3b9   : > { %v639_v39 = vsel %vm295_vm1, %v1101_v38, 0.0 }
 0x3ba   : > { %640 = vadd.xlane.f32.xlu0 %v639_v39 }
 0x3bc   : > { %v1103_v40 = vpop.eup %1102 }
 0x3bd   : > { %v642_v41 = vsel %vm295_vm1, %v1103_v40, 0.0 }
 0x3be   : > { %643 = vadd.xlane.f32.xlu1 %v642_v41 }
 0x3c0   : > { %v1105_v42 = vpop.eup %1104 }
 0x3c1   : > { %v780_v43 = vsel %vm295_vm1, %v1105_v42, 0.0 }
 0x3c2   : > { %781 = vadd.xlane.f32.xlu0 %v780_v43  ;;  %v1107_v47 = vpop.eup %1106 }
 0x3c3   : > { %v783_v48 = vsel %vm295_vm1, %v1107_v47, 0.0 }
 0x3cf   : > { %650 = vrot.lane.b32.xlu1 %v1218_v29, %s1132_s11 }
 0x3d8   : > { %509 = vrot.lane.b32.xlu0 %v1218_v29, %s1130_s6 }
 0x3f3   : > { %784 = vadd.xlane.f32.xlu1 %v783_v48 }
 0x404   : > { %791 = vrot.lane.b32.xlu1 %v1218_v29, %s1131_s7 }
 0x43f   : > { %v499_v49 = vpop.xlane.xlu0 %498 }
 0x440   : > { %1108 = vrcp.f32 %v499_v49 }
 0x441   : > { %v502_v50 = vpop.xlane.xlu1 %501 }
 0x442   : > { %1110 = vrcp.f32 %v502_v50 }
 0x447   : > { %v641_v51 = vpop.xlane.xlu0 %640 }
 0x448   : > { %1112 = vrcp.f32 %v641_v51 }
 0x44a   : > { %v1109_v52 = vpop.eup %1108 }
 0x44b   : > { %v505_v53 = vmul.f32 %v1109_v52, %v1097_v31  ;;  %v644_v54 = vpop.xlane.xlu1 %643 }
 0x44c   : > { %v1111_v55 = vpop.eup %1110  ;;  %1114 = vrcp.f32 %v644_v54 }
 0x44d   : > { %993 = vst.msk [vmem:[%s1231_s15 + $0x10] sm:$0xff] %vm295_vm1, %v505_v53  ;;  %v506_v56 = vmul.f32 %v1111_v55, %v1099_v34 }
 0x44f   : > { %994 = vst.msk [vmem:[%s1231_s15 + $0x18] sm:$0xff] %vm295_vm1, %v506_v56  ;;  %v782_v57 = vpop.xlane.xlu0 %781  ;;  %v651_v61 = vpop.permute.xlu1 %650  ;;  %v507_v63 = vpack.c.bf16 %v506_v56, %v505_v53 }
 0x450   : > { %1116 = vrcp.f32 %v782_v57  ;;  %v656_v2 = vsel %vm379_vm2, %v651_v61, 0 }
 0x452   : > { %v1113_v29 = vpop.eup %1112 }
 0x453   : > { %v647_v58 = vmul.f32 %v1113_v29, %v1101_v38  ;;  %v510_v59 = vpop.permute.xlu0 %509 }
 0x454   : > { %v515_v60 = vsel %vm379_vm2, %v510_v59, 0 }
 0x455   : > { %997 = vst.msk [vmem:[%s1231_s15 + $0x20] sm:$0xff] %vm295_vm1, %v647_v58  ;;  %1043 = vmatpush3.bf16.msra.mxu0 %v515_v60 }
 0x456   : > { %v1115_v62 = vpop.eup %1114  ;;  %1054 = vmatprep.subr.bf16.mxu0 %v1128_v0 }
 0x457   : > { %v648_v1 = vmul.f32 %v1115_v62, %v1103_v40 }
 0x458   : > { %1045 = vmatmul.mubr.msk.bf16.vlgmr.msra.gmra.mrb[4].mxu0 %vm295_vm1, %v507_v63 }
 0x459   : > { %998 = vst.msk [vmem:[%s1231_s15 + $0x28] sm:$0xff] %vm295_vm1, %v648_v1  ;;  %1055 = vmatpush3.bf16.msra.mxu0 %v656_v2  ;;  %1056 = vmatprep.mubr.msk.bf16.mxu0 %vm1129_vm0, %v1128_v0  ;;  %v649_v5 = vpack.c.bf16 %v648_v1, %v647_v58 }
 0x45a   : > { %v1117_v3 = vpop.eup %1116  ;;  %1066 = vmatprep.subr.bf16.mxu0 %v1128_v0 }
 0x45b   : > { %v788_v4 = vmul.f32 %v1117_v3, %v1105_v42 }
 0x45d   : > { %1001 = vst.msk [vmem:[%s1231_s15 + $0x30] sm:$0xff] %vm295_vm1, %v788_v4 }
 0x460   : > { %1057 = vmatmul.mubr.msk.bf16.vlgmr.msra.gmra.mrb[8].mxu0 %vm295_vm1, %v649_v5 }
 0x461   : > { %1068 = vmatprep.mubr.msk.bf16.mxu0 %vm1129_vm0, %v1128_v0 }
 0x480   : > { %v785_v6 = vpop.xlane.xlu1 %784 }
 0x481   : > { %1118 = vrcp.f32 %v785_v6 }
 0x484   : > { %v792_v7 = vpop.permute.xlu1 %791 }
 0x485   : > { %v797_v9 = vsel %vm379_vm2, %v792_v7, 0 }
 0x486   : > { %1067 = vmatpush3.bf16.msra.mxu0 %v797_v9 }
 0x48b   : > { %v1119_v10 = vpop.eup %1118 }
 0x48c   : > { %v789_v11 = vmul.f32 %v1119_v10, %v1107_v47 }
 0x48e   : > { %1002 = vst.msk [vmem:[%s1231_s15 + $0x38] sm:$0xff] %vm295_vm1, %v789_v11  ;;  %v790_v12 = vpack.c.bf16 %v789_v11, %v788_v4 }
 0x490   : > { %1069 = vmatmul.mubr.msk.bf16.vlgmr.msra.gmra.mrb[12].mxu0 %vm295_vm1, %v790_v12 }
 0x52b   : > { %v551_v13 = vpop.f32.mrb[4].mxu0 }
 0x52c   : > { %560 = vrot.lane.b32.xlu1 %v551_v13, %s1133_s19  ;;  %v1046_v14 = vpop.f32.mrb[5].mxu0 }
 0x52d   : > { %v554_v15 = vpop.f32.mrb[6].mxu0 }
 0x52e   : > { %562 = vrot.lane.b32.xlu0 %v554_v15, %s1133_s19  ;;  %v1047_v0 = vpop.f32.mrb[7].mxu0 }
 0x533   : > { %v692_v16 = vpop.f32.mrb[8].mxu0 }
 0x534   : > { %701 = vrot.lane.b32.xlu1 %v692_v16, %s1134_s21  ;;  %v1058_v17 = vpop.f32.mrb[9].mxu0 }
 0x535   : > { %v695_v18 = vpop.f32.mrb[10].mxu0 }
 0x536   : > { %703 = vrot.lane.b32.xlu0 %v695_v18, %s1134_s21  ;;  %v1059_v19 = vpop.f32.mrb[11].mxu0 }
 0x563   : > { %v833_v20 = vpop.f32.mrb[12].mxu0 }
 0x564   : > { %842 = vrot.lane.b32.xlu1 %v833_v20, %s1135_s22  ;;  %v1070_v21 = vpop.f32.mrb[13].mxu0 }
 0x565   : > { %v836_v22 = vpop.f32.mrb[14].mxu0 }
 0x566   : > { %844 = vrot.lane.b32.xlu0 %v836_v22, %s1135_s22  ;;  %v1071_v23 = vpop.f32.mrb[15].mxu0 }
 0x59e   : > { %v561_v24 = vpop.permute.xlu1 %560 }
 0x59f   : > { %567 = vst.msk [vmem:[%s1257_s20] sm:$0xff] %vm566_vm3, %v561_v24 }
 0x5a0   : > { %v563_v25 = vpop.permute.xlu0 %562 }
 0x5a1   : > { %568 = vst.msk [vmem:[%s1257_s20 + $0x8] sm:$0xff] %vm566_vm3, %v563_v25 }
 0x5a6   : > { %v702_v26 = vpop.permute.xlu1 %701 }
 0x5a7   : > { %708 = vst.msk [vmem:[%s1257_s20] sm:$0xff] %vm707_vm4, %v702_v26 }
 0x5a8   : > { %v704_v27 = vpop.permute.xlu0 %703 }
 0x5a9   : > { %709 = vst.msk [vmem:[%s1257_s20 + $0x8] sm:$0xff] %vm707_vm4, %v704_v27 }
 0x5d6   : > { %v843_v28 = vpop.permute.xlu1 %842 }
 0x5d7   : > { %849 = vst.msk [vmem:[%s1257_s20] sm:$0xff] %vm848_vm5, %v843_v28 }
 0x5d8   : > { %v845_v30 = vpop.permute.xlu0 %844 }
 0x5d9   : > { %850 = vst.msk [vmem:[%s1257_s20 + $0x8] sm:$0xff] %vm848_vm5, %v845_v30 }
 0x5da PF: > { %s16_s18 = sadd.s32 1, %s1126_s18  }
 0x5db   : > { %p13_p4 = scmp.ge.s32.totalorder %s16_s18, 4  }
 0x5dd   :  { %15 = sbr.rel (!%p13_p4) target bundleno = 1 (0x1), region = 90 }

// kernel: bert_connect_layer.14
= control target key start
LH: loop header
LB: loop body
LE: loop exit
PB: predicated region body
PF: predicated region fallthrough
CT: control target
= control target key end

     0   :  { %vm28_vm0 = vcmask 261120   ;;  %v262_v1 = vmov 0.0   ;;  %s371_s1 = inlined_call_operand.vmem [shape: bf16[32,32], index: 1, kind: input, shape index: {}]   ;;  %s372_s0 = inlined_call_operand.vmem [shape: f32[32,32], index: 0, kind: input, shape index: {}]   ;;  %s373_s2 = inlined_call_operand.vmem [shape: f32[1,32], index: 2, kind: input, shape index: {}]   ;;  %s374_s3 = inlined_call_operand.vmem [shape: f32[32,32], index: 3, kind: input, shape index: {}]   ;;  %s375_s4 = inlined_call_operand.vmem [shape: f32[1,32], index: 4, kind: input, shape index: {}]   ;;  %s376_s5 = inlined_call_operand.vmem [shape: f32[1,32], index: 5, kind: input, shape index: {}]   ;;  %s377_s6 = inlined_call_operand.vmem [shape: f32[32,32], index: 6, kind: output, shape index: {}]  }
   0x1   :  { %v252_v0 = vld [vmem:[%s371_s1] sm:$0xff]   ;;  %31 = vst.msk [vmem:[#allocation2 + $0x10] sm:$0xff] %vm28_vm0, %v262_v1  ;;  %29 = vst.msk [vmem:[#allocation2] sm:$0xff] %vm28_vm0, %v262_v1  ;;  %v253_v2 = vld [vmem:[%s371_s1 + $0x8] sm:$0xff]  }
   0x2   :  { %30 = vst.msk [vmem:[#allocation2 + $0x8] sm:$0xff] %vm28_vm0, %v262_v1  ;;  %32 = vst.msk [vmem:[#allocation2 + $0x18] sm:$0xff] %vm28_vm0, %v262_v1  ;;  %243 = vmatprep.subr.bf16.mxu0 %v252_v0  ;;  %v37_v3 = vld [vmem:[%s372_s0] sm:$0xff]  ;;  %v38_v4 = vld [vmem:[%s372_s0 + $0x8] sm:$0xff] }
   0x3   :  { %244 = vmatpush3.bf16.msra.mxu0 %v252_v0  ;;  %v41_v5 = vpack.c.bf16 %v38_v4, %v37_v3  ;;  %v39_v6 = vld [vmem:[%s372_s0 + $0x10] sm:$0xff]  ;;  %v40_v7 = vld [vmem:[%s372_s0 + $0x18] sm:$0xff]  ;;  %v236_v21 = vld [vmem:[%s373_s2] ss:$0 sm:$0xff] }
   0x4   :  { %245 = vmatprep.subr.bf16.mxu0 %v253_v2  ;;  %v42_v8 = vpack.c.bf16 %v40_v7, %v39_v6  ;;  %v143_v23 = vld [vmem:[%s374_s3 + $0x10] sm:$0xff]  ;;  %v141_v26 = vld [vmem:[%s374_s3] sm:$0xff]  ;;  %v144_v29 = vld [vmem:[%s374_s3 + $0x18] sm:$0xff] }
   0x5   :  { %247 = vmatprep.mubr.msk.bf16.mxu0 %vm28_vm0, %v41_v5  ;;  %v142_v33 = vld [vmem:[%s374_s3 + $0x8] sm:$0xff] }
   0x7   :  { %246 = vmatpush3.bf16.msra.mxu0 %v253_v2 }
   0x8   :  { %v35_v9 = vld [vmem:[#allocation2 + $0x10] sm:$0xff]  ;;  %v33_v10 = vld [vmem:[#allocation2] sm:$0xff] }
   0x9   :  { %v36_v12 = vld [vmem:[#allocation2 + $0x18] sm:$0xff]  ;;  %v34_v15 = vld [vmem:[#allocation2 + $0x8] sm:$0xff] }
   0xa   :  { %248 = vmatmul.mubr.msk.bf16.vlgmr.msra.gmra.mrb[0].mxu0 %vm28_vm0, %v42_v8 }
  0xdd   :  { %v249_v11 = vpop.f32.mrb[0].mxu0 }
  0xde   :  { %v117_v13 = vadd.f32 %v249_v11, %v35_v9  ;;  %v100_v14 = vpop.f32.mrb[1].mxu0  ;;  %v237_v11 = vld [vmem:[%s375_s4] ss:$0 sm:$0xff] }
  0xdf   :  { %v115_v16 = vadd.f32 %v100_v14, %v33_v10  ;;  %v250_v17 = vpop.f32.mrb[2].mxu0 }
  0xe0   :  { %121 = vst.msk [vmem:[#allocation2 + $0x10] sm:$0xff] %vm28_vm0, %v117_v13  ;;  %v118_v18 = vadd.f32 %v250_v17, %v36_v12  ;;  %v103_v19 = vpop.f32.mrb[3].mxu0  ;;  %v238_v13 = vld [vmem:[%s376_s5] ss:$0 sm:$0xff] }
  0xe1   :  { %119 = vst.msk [vmem:[#allocation2] sm:$0xff] %vm28_vm0, %v115_v16  ;;  %v116_v20 = vadd.f32 %v103_v19, %v34_v15 }
  0xe2   :  { %122 = vst.msk [vmem:[#allocation2 + $0x18] sm:$0xff] %vm28_vm0, %v118_v18 }
  0xe3   :  { %120 = vst.msk [vmem:[#allocation2 + $0x8] sm:$0xff] %vm28_vm0, %v116_v20 }
  0xe7   :  { %v128_v22 = vld [vmem:[#allocation2 + $0x10] sm:$0xff] }
  0xe8   :  { %v139_v24 = vadd.f32 %v236_v21, %v128_v22  ;;  %v126_v25 = vld [vmem:[#allocation2] sm:$0xff] }
  0xe9   :  { %v137_v27 = vadd.f32 %v236_v21, %v126_v25  ;;  %v129_v28 = vld [vmem:[#allocation2 + $0x18] sm:$0xff] }
  0xea   :  { %v147_v30 = vadd.f32 %v143_v23, %v139_v24  ;;  %v140_v31 = vadd.f32 %v236_v21, %v129_v28  ;;  %v127_v32 = vld [vmem:[#allocation2 + $0x8] sm:$0xff] }
  0xeb   :  { %v145_v34 = vadd.f32 %v141_v26, %v137_v27  ;;  %v138_v35 = vadd.f32 %v236_v21, %v127_v32 }
  0xec   :  { %v155_v36 = vsel %vm28_vm0, %v147_v30, 0.0  ;;  %v148_v37 = vadd.f32 %v144_v29, %v140_v31 }
  0xed   :  { %156 = vadd.xlane.f32.xlu1 %v155_v36  ;;  %v149_v38 = vsel %vm28_vm0, %v145_v34, 0.0  ;;  %v146_v39 = vadd.f32 %v142_v33, %v138_v35 }
  0xee   :  { %150 = vadd.xlane.f32.xlu0 %v149_v38  ;;  %v158_v40 = vsel %vm28_vm0, %v148_v37, 0.0 }
  0xef   :  { %v152_v41 = vsel %vm28_vm0, %v146_v39, 0.0 }
  0xf1   :  { %159 = vadd.xlane.f32.xlu1 %v158_v40 }
  0xf2   :  { %153 = vadd.xlane.f32.xlu0 %v152_v41 }
 0x17a   :  { %v157_v42 = vpop.xlane.xlu1 %156 }
 0x17b   :  { %v164_v43 = vmul.f32 0.03125, %v157_v42  ;;  %v151_v44 = vpop.xlane.xlu0 %150 }
 0x17c   :  { %v162_v45 = vmul.f32 0.03125, %v151_v44 }
 0x17d   :  { %v168_v46 = vsub.f32 %v147_v30, %v164_v43 }
 0x17e   :  { %v166_v47 = vsub.f32 %v145_v34, %v162_v45  ;;  %v160_v48 = vpop.xlane.xlu1 %159 }
 0x17f   :  { %v165_v49 = vmul.f32 0.03125, %v160_v48  ;;  %v154_v50 = vpop.xlane.xlu0 %153  ;;  %v172_v56 = vmul.f32 %v168_v46, %v168_v46 }
 0x180   :  { %v163_v51 = vmul.f32 0.03125, %v154_v50  ;;  %v170_v52 = vmul.f32 %v166_v47, %v166_v47 }
 0x181   :  { %v169_v53 = vsub.f32 %v148_v37, %v165_v49  ;;  %v180_v58 = vsel %vm28_vm0, %v172_v56, 0.0 }
 0x182   :  { %v167_v54 = vsub.f32 %v146_v39, %v163_v51  ;;  %v174_v55 = vsel %vm28_vm0, %v170_v52, 0.0 }
 0x183   :  { %175 = vadd.xlane.f32.xlu0 %v174_v55  ;;  %v173_v60 = vmul.f32 %v169_v53, %v169_v53 }
 0x184   :  { %v171_v57 = vmul.f32 %v167_v54, %v167_v54 }
 0x185   :  { %v183_v61 = vsel %vm28_vm0, %v173_v60, 0.0 }
 0x186   :  { %v177_v59 = vsel %vm28_vm0, %v171_v57, 0.0 }
 0x187   :  { %181 = vadd.xlane.f32.xlu0 %v180_v58  ;;  %178 = vadd.xlane.f32.xlu1 %v177_v59 }
 0x18b   :  { %184 = vadd.xlane.f32.xlu1 %v183_v61 }
 0x210   :  { %v176_v62 = vpop.xlane.xlu0 %175 }
 0x211   :  { %v186_v63 = vmul.f32 0.03125, %v176_v62 }
 0x213   :  { %v190_v0 = vadd.f32 1e-12, %v186_v63 }
 0x214   :  { %v179_v1 = vpop.xlane.xlu1 %178  ;;  %v182_v2 = vpop.xlane.xlu0 %181 }
 0x215   :  { %254 = vrsqrt.f32 %v190_v0  ;;  %v187_v3 = vmul.f32 0.03125, %v179_v1  ;;  %v188_v4 = vmul.f32 0.03125, %v182_v2 }
 0x217   :  { %v191_v5 = vadd.f32 1e-12, %v187_v3  ;;  %v192_v6 = vadd.f32 1e-12, %v188_v4 }
 0x218   :  { %v185_v7 = vpop.xlane.xlu1 %184 }
 0x219   :  { %256 = vrsqrt.f32 %v191_v5  ;;  %v189_v8 = vmul.f32 0.03125, %v185_v7 }
 0x21a   :  { %258 = vrsqrt.f32 %v192_v6 }
 0x21b   :  { %v193_v9 = vadd.f32 1e-12, %v189_v8 }
 0x21d   :  { %260 = vrsqrt.f32 %v193_v9 }
 0x21f   :  { %v255_v10 = vpop.eup %254 }
 0x220   :  { %v198_v12 = vmul.f32 %v255_v10, %v166_v47 }
 0x222   :  { %v209_v14 = vmul.f32 %v237_v11, %v198_v12 }
 0x223   :  { %v257_v15 = vpop.eup %256 }
 0x224   :  { %v259_v16 = vpop.eup %258  ;;  %v220_v17 = vadd.f32 %v238_v13, %v209_v14  ;;  %v199_v18 = vmul.f32 %v257_v15, %v167_v54 }
 0x225   :  { %v200_v19 = vmul.f32 %v259_v16, %v168_v46 }
 0x226   :  { %224 = vst.msk [vmem:[%s377_s6] sm:$0xff] %vm28_vm0, %v220_v17  ;;  %v210_v20 = vmul.f32 %v237_v11, %v199_v18 }
 0x227   :  { %v261_v21 = vpop.eup %260  ;;  %v211_v22 = vmul.f32 %v237_v11, %v200_v19 }
 0x228   :  { %v221_v23 = vadd.f32 %v238_v13, %v210_v20  ;;  %v201_v24 = vmul.f32 %v261_v21, %v169_v53 }
 0x229   :  { %v222_v25 = vadd.f32 %v238_v13, %v211_v22 }
 0x22a   :  { %225 = vst.msk [vmem:[%s377_s6 + $0x8] sm:$0xff] %vm28_vm0, %v221_v23  ;;  %v212_v26 = vmul.f32 %v237_v11, %v201_v24 }
 0x22b   :  { %226 = vst.msk [vmem:[%s377_s6 + $0x10] sm:$0xff] %vm28_vm0, %v222_v25 }
 0x22c   :  { %v223_v27 = vadd.f32 %v238_v13, %v212_v26 }
 0x22e   :  { %227 = vst.msk [vmem:[%s377_s6 + $0x18] sm:$0xff] %vm28_vm0, %v223_v27 }

// kernel: bert_connect_layer.16
= control target key start
LH: loop header
LB: loop body
LE: loop exit
PB: predicated region body
PF: predicated region fallthrough
CT: control target
= control target key end

     0   :  { %vm19_vm0 = vcmask 523264   ;;  %v205_v1 = vmov 0.0   ;;  %vm50_vm1 = vcmask 261120   ;;  %s271_s1 = inlined_call_operand.vmem [shape: bf16[32,64], index: 1, kind: input, shape index: {}]   ;;  %s272_s0 = inlined_call_operand.vmem [shape: f32[32,32], index: 0, kind: input, shape index: {}]   ;;  %s273_s2 = inlined_call_operand.vmem [shape: f32[1,64], index: 2, kind: input, shape index: {}]   ;;  %s274_s3 = inlined_call_operand.vmem [shape: f32[32,64], index: 3, kind: output, shape index: {}]  }
   0x1   :  { %v195_v0 = vld [vmem:[%s271_s1] sm:$0xff]   ;;  %22 = vst.msk [vmem:[#allocation2 + $0x10] sm:$0xff] %vm19_vm0, %v205_v1  ;;  %20 = vst.msk [vmem:[#allocation2] sm:$0xff] %vm19_vm0, %v205_v1  ;;  %v196_v2 = vld [vmem:[%s271_s1 + $0x8] sm:$0xff]  }
   0x2   :  { %21 = vst.msk [vmem:[#allocation2 + $0x8] sm:$0xff] %vm19_vm0, %v205_v1  ;;  %23 = vst.msk [vmem:[#allocation2 + $0x18] sm:$0xff] %vm19_vm0, %v205_v1  ;;  %186 = vmatprep.subr.bf16.mxu0 %v195_v0  ;;  %v28_v3 = vld [vmem:[%s272_s0] sm:$0xff]  ;;  %v29_v4 = vld [vmem:[%s272_s0 + $0x8] sm:$0xff] }
   0x3   :  { %187 = vmatpush3.bf16.msra.mxu0 %v195_v0  ;;  %v32_v5 = vpack.c.bf16 %v29_v4, %v28_v3  ;;  %v30_v6 = vld [vmem:[%s272_s0 + $0x10] sm:$0xff]  ;;  %v31_v7 = vld [vmem:[%s272_s0 + $0x18] sm:$0xff]  ;;  %v181_v21 = vld [vmem:[%s273_s2] ss:$0 sm:$0xff] }
   0x4   :  { %188 = vmatprep.subr.bf16.mxu0 %v196_v2  ;;  %v33_v8 = vpack.c.bf16 %v31_v7, %v30_v6 }
   0x5   :  { %190 = vmatprep.mubr.msk.bf16.mxu0 %vm50_vm1, %v32_v5 }
   0x7   :  { %189 = vmatpush3.bf16.msra.mxu0 %v196_v2 }
   0x8   :  { %v26_v9 = vld [vmem:[#allocation2 + $0x10] sm:$0xff]  ;;  %v24_v10 = vld [vmem:[#allocation2] sm:$0xff] }
   0x9   :  { %v27_v12 = vld [vmem:[#allocation2 + $0x18] sm:$0xff]  ;;  %v25_v15 = vld [vmem:[#allocation2 + $0x8] sm:$0xff] }
   0xa   :  { %191 = vmatmul.mubr.msk.bf16.vlgmr.msra.gmra.mrb[0].mxu0 %vm50_vm1, %v33_v8 }
  0xdd   :  { %v192_v11 = vpop.f32.mrb[0].mxu0 }
  0xde   :  { %v108_v13 = vadd.f32 %v192_v11, %v26_v9  ;;  %v91_v14 = vpop.f32.mrb[1].mxu0 }
  0xdf   :  { %v106_v16 = vadd.f32 %v91_v14, %v24_v10  ;;  %v193_v17 = vpop.f32.mrb[2].mxu0 }
  0xe0   :  { %113 = vst.msk [vmem:[#allocation2 + $0x10] sm:$0xff] %vm19_vm0, %v108_v13  ;;  %v109_v18 = vadd.f32 %v193_v17, %v27_v12  ;;  %v94_v19 = vpop.f32.mrb[3].mxu0 }
  0xe1   :  { %111 = vst.msk [vmem:[#allocation2] sm:$0xff] %vm19_vm0, %v106_v16  ;;  %v107_v20 = vadd.f32 %v94_v19, %v25_v15 }
  0xe2   :  { %114 = vst.msk [vmem:[#allocation2 + $0x18] sm:$0xff] %vm19_vm0, %v109_v18 }
  0xe3   :  { %112 = vst.msk [vmem:[#allocation2 + $0x8] sm:$0xff] %vm19_vm0, %v107_v20 }
  0xe7   :  { %v120_v22 = vld [vmem:[#allocation2 + $0x10] sm:$0xff] }
  0xe8   :  { %v131_v23 = vadd.f32 %v181_v21, %v120_v22  ;;  %v118_v24 = vld [vmem:[#allocation2] sm:$0xff] }
  0xe9   :  { %v129_v25 = vadd.f32 %v181_v21, %v118_v24  ;;  %v121_v26 = vld [vmem:[#allocation2 + $0x18] sm:$0xff] }
  0xea   :  { %v139_v27 = vmul.f32 0.044715, %v131_v23  ;;  %v132_v28 = vadd.f32 %v181_v21, %v121_v26  ;;  %v119_v29 = vld [vmem:[#allocation2 + $0x8] sm:$0xff]  ;;  %v135_v52 = vmul.f32 0.5, %v131_v23 }
  0xeb   :  { %v137_v30 = vmul.f32 0.044715, %v129_v25  ;;  %v130_v31 = vadd.f32 %v181_v21, %v119_v29  ;;  %v133_v55 = vmul.f32 0.5, %v129_v25 }
  0xec   :  { %v143_v32 = vmul.f32 %v139_v27, %v131_v23  ;;  %v140_v33 = vmul.f32 0.044715, %v132_v28  ;;  %v136_v59 = vmul.f32 0.5, %v132_v28 }
  0xed   :  { %v141_v34 = vmul.f32 %v137_v30, %v129_v25  ;;  %v138_v35 = vmul.f32 0.044715, %v130_v31  ;;  %v134_v62 = vmul.f32 0.5, %v130_v31 }
  0xee   :  { %v147_v36 = vmul.f32 %v143_v32, %v131_v23  ;;  %v144_v37 = vmul.f32 %v140_v33, %v132_v28 }
  0xef   :  { %v145_v38 = vmul.f32 %v141_v34, %v129_v25  ;;  %v142_v39 = vmul.f32 %v138_v35, %v130_v31 }
  0xf0   :  { %v151_v40 = vadd.f32 %v147_v36, %v131_v23  ;;  %v148_v41 = vmul.f32 %v144_v37, %v132_v28 }
  0xf1   :  { %v149_v42 = vadd.f32 %v145_v38, %v129_v25  ;;  %v146_v43 = vmul.f32 %v142_v39, %v130_v31 }
  0xf2   :  { %v155_v44 = vmul.f32 0.7978846, %v151_v40  ;;  %v152_v45 = vadd.f32 %v148_v41, %v132_v28 }
  0xf3   :  { %v153_v46 = vmul.f32 0.7978846, %v149_v42  ;;  %v150_v47 = vadd.f32 %v146_v43, %v130_v31 }
  0xf4   :  { %197 = vtanh.f32 %v155_v44  ;;  %v156_v48 = vmul.f32 0.7978846, %v152_v45 }
  0xf5   :  { %199 = vtanh.f32 %v153_v46  ;;  %v154_v49 = vmul.f32 0.7978846, %v150_v47 }
  0xf6   :  { %201 = vtanh.f32 %v156_v48 }
  0xf7   :  { %203 = vtanh.f32 %v154_v49 }
  0xfe   :  { %v198_v50 = vpop.eup %197 }
  0xff   :  { %v200_v51 = vpop.eup %199  ;;  %v163_v53 = vadd.f32 1.0, %v198_v50 }
 0x100   :  { %v202_v54 = vpop.eup %201  ;;  %v161_v56 = vadd.f32 1.0, %v200_v51 }
 0x101   :  { %v204_v57 = vpop.eup %203  ;;  %v167_v58 = vmul.f32 %v163_v53, %v135_v52  ;;  %v164_v60 = vadd.f32 1.0, %v202_v54 }
 0x102   :  { %v165_v61 = vmul.f32 %v161_v56, %v133_v55  ;;  %v162_v63 = vadd.f32 1.0, %v204_v57 }
 0x103   :  { %171 = vst.msk [vmem:[%s274_s3 + $0x10] sm:$0xff] %vm19_vm0, %v167_v58  ;;  %v168_v0 = vmul.f32 %v164_v60, %v136_v59 }
 0x104   :  { %169 = vst.msk [vmem:[%s274_s3] sm:$0xff] %vm19_vm0, %v165_v61  ;;  %v166_v1 = vmul.f32 %v162_v63, %v134_v62 }
 0x105   :  { %172 = vst.msk [vmem:[%s274_s3 + $0x18] sm:$0xff] %vm19_vm0, %v168_v0 }
 0x106   :  { %170 = vst.msk [vmem:[%s274_s3 + $0x8] sm:$0xff] %vm19_vm0, %v166_v1 }

// kernel: bert_connect_layer.17
= control target key start
LH: loop header
LB: loop body
LE: loop exit
PB: predicated region body
PF: predicated region fallthrough
CT: control target
= control target key end

     0   :  { %vm29_vm0 = vcmask 261120   ;;  %v329_v2 = vmov 0.0   ;;  %vm76_vm1 = vcmask 523264   ;;  %s445_s0 = inlined_call_operand.vmem [shape: f32[32,64], index: 0, kind: input, shape index: {}]   ;;  %s446_s1 = inlined_call_operand.vmem [shape: bf16[64,32], index: 1, kind: input, shape index: {}]   ;;  %s447_s2 = inlined_call_operand.vmem [shape: f32[1,32], index: 2, kind: input, shape index: {}]   ;;  %s448_s3 = inlined_call_operand.vmem [shape: f32[32,32], index: 3, kind: input, shape index: {}]   ;;  %s449_s4 = inlined_call_operand.vmem [shape: f32[1,32], index: 4, kind: input, shape index: {}]   ;;  %s450_s5 = inlined_call_operand.vmem [shape: f32[1,32], index: 5, kind: input, shape index: {}]   ;;  %s451_s6 = inlined_call_operand.hbm [shape: f32[32,32], index: 6, kind: output, shape index: {}]  }
   0x1   :  { %v293_v0 = vld [vmem:[%s446_s1] sm:$0xff]   ;;  %v294_v1 = vld [vmem:[%s446_s1 + $0x8] sm:$0xff]   ;;  %32 = vst.msk [vmem:[#allocation2 + $0x10] sm:$0xff] %vm29_vm0, %v329_v2  ;;  %30 = vst.msk [vmem:[#allocation2] sm:$0xff] %vm29_vm0, %v329_v2 }
   0x2   :  { %277 = vmatprep.subr.bf16.mxu0 %v293_v0  ;;  %31 = vst.msk [vmem:[#allocation2 + $0x8] sm:$0xff] %vm29_vm0, %v329_v2  ;;  %33 = vst.msk [vmem:[#allocation2 + $0x18] sm:$0xff] %vm29_vm0, %v329_v2  ;;  %v295_v3 = vld [vmem:[%s446_s1 + $0x10] sm:$0xff]   ;;  %v38_v4 = vld [vmem:[%s445_s0] sm:$0xff] }
   0x3   :  { %278 = vmatpush3.bf16.msra.mxu0 %v293_v0  ;;  %v39_v5 = vld [vmem:[%s445_s0 + $0x8] sm:$0xff] }
   0x4   :  { %279 = vmatprep.subr.bf16.mxu0 %v294_v1  ;;  %v42_v6 = vpack.c.bf16 %v39_v5, %v38_v4 }
   0x5   :  { %11 = vsyncpa [#allocation4], 0  ;;  %v296_v7 = vld [vmem:[%s446_s1 + $0x18] sm:$0xff]   ;;  %v40_v8 = vld [vmem:[%s445_s0 + $0x10] sm:$0xff] }
   0x6   :  { %285 = vmatprep.mubr.msk.bf16.mxu0 %vm76_vm1, %v42_v6  ;;  %v41_v9 = vld [vmem:[%s445_s0 + $0x18] sm:$0xff]  ;;  %v268_v23 = vld [vmem:[%s447_s2] ss:$0 sm:$0xff]  ;;  %v161_v25 = vld [vmem:[%s448_s3 + $0x10] sm:$0xff] }
   0x7   :  { %280 = vmatpush3.bf16.msra.mxu0 %v294_v1  ;;  %v43_v10 = vpack.c.bf16 %v41_v9, %v40_v8  ;;  %v159_v28 = vld [vmem:[%s448_s3] sm:$0xff]  ;;  %v162_v31 = vld [vmem:[%s448_s3 + $0x18] sm:$0xff]  ;;  %v160_v35 = vld [vmem:[%s448_s3 + $0x8] sm:$0xff] }
   0x8   :  { %281 = vmatprep.subr.bf16.mxu0 %v295_v3  ;;  %v36_v11 = vld [vmem:[#allocation2 + $0x10] sm:$0xff]  ;;  %v34_v12 = vld [vmem:[#allocation2] sm:$0xff] }
   0x9   :  { %v37_v14 = vld [vmem:[#allocation2 + $0x18] sm:$0xff]  ;;  %v35_v17 = vld [vmem:[#allocation2 + $0x8] sm:$0xff] }
   0xb   :  { %282 = vmatpush3.bf16.msra.mxu0 %v295_v3 }
   0xc   :  { %283 = vmatprep.subr.bf16.mxu0 %v296_v7 }
   0xf   :  { %284 = vmatpush3.bf16.msra.mxu0 %v296_v7 }
  0x12   :  { %286 = vmatmul.mubr.msk.bf16.vlgmr.msra.gmra.mrb[0].mxu0 %vm76_vm1, %v43_v10 }
  0xe5   :  { %v287_v13 = vpop.f32.mrb[0].mxu0 }
  0xe6   :  { %v134_v15 = vadd.f32 %v287_v13, %v36_v11  ;;  %v117_v16 = vpop.f32.mrb[1].mxu0  ;;  %v269_v13 = vld [vmem:[%s449_s4] ss:$0 sm:$0xff]  ;;  %s330_s4 = smov [#allocation3]  }
  0xe7   :  { %v132_v18 = vadd.f32 %v117_v16, %v34_v12  ;;  %v288_v19 = vpop.f32.mrb[2].mxu0  ;;  %s251_s23 = sshll.u32 %s330_s4, 4  ;;  %s252_s23 = int_to_ptr.vmem [resolvable:$true] %s251_s23 }
  0xe8   :  { %139 = vst.msk [vmem:[#allocation2 + $0x10] sm:$0xff] %vm29_vm0, %v134_v15  ;;  %v135_v20 = vadd.f32 %v288_v19, %v37_v14  ;;  %v120_v21 = vpop.f32.mrb[3].mxu0  ;;  %v270_v15 = vld [vmem:[%s450_s5] ss:$0 sm:$0xff]  ;;  %s305_s5 = scalar_lea.vmem %s252_s23, 512  ;;  %p310_p1 = scmp.lt.s32.totalorder %s252_s23, %s252_s23 }
  0xe9   :  { %137 = vst.msk [vmem:[#allocation2] sm:$0xff] %vm29_vm0, %v132_v18  ;;  %v133_v22 = vadd.f32 %v120_v21, %v35_v17  ;;  %p306_p0 = scmp.ne.s32.totalorder %s252_s23, %s305_s5  ;;  %p311_p2 = scmp.lt.s32.totalorder %s305_s5, %s305_s5 }
  0xea   :  { %140 = vst.msk [vmem:[#allocation2 + $0x18] sm:$0xff] %vm29_vm0, %v135_v20 }
  0xeb   :  { %138 = vst.msk [vmem:[#allocation2 + $0x8] sm:$0xff] %vm29_vm0, %v133_v22  ;;  %p312_p3 = por %p311_p2, %p310_p1 }
  0xed   :  { %p313_p4 = pnand %p312_p3, %p306_p0 }
  0xef   :  { %v146_v24 = vld [vmem:[#allocation2 + $0x10] sm:$0xff] }
  0xf0   :  { %v157_v26 = vadd.f32 %v268_v23, %v146_v24  ;;  %v144_v27 = vld [vmem:[#allocation2] sm:$0xff] }
  0xf1   :  { %v155_v29 = vadd.f32 %v268_v23, %v144_v27  ;;  %v147_v30 = vld [vmem:[#allocation2 + $0x18] sm:$0xff] }
  0xf2   :  { %v165_v32 = vadd.f32 %v161_v25, %v157_v26  ;;  %v158_v33 = vadd.f32 %v268_v23, %v147_v30  ;;  %v145_v34 = vld [vmem:[#allocation2 + $0x8] sm:$0xff] }
  0xf3   :  { %v163_v36 = vadd.f32 %v159_v28, %v155_v29  ;;  %v156_v37 = vadd.f32 %v268_v23, %v145_v34 }
  0xf4   :  { %v173_v38 = vsel %vm29_vm0, %v165_v32, 0.0  ;;  %v166_v39 = vadd.f32 %v162_v31, %v158_v33 }
  0xf5   :  { %174 = vadd.xlane.f32.xlu1 %v173_v38  ;;  %v167_v40 = vsel %vm29_vm0, %v163_v36, 0.0  ;;  %v164_v41 = vadd.f32 %v160_v35, %v156_v37 }
  0xf6   :  { %168 = vadd.xlane.f32.xlu0 %v167_v40  ;;  %v176_v42 = vsel %vm29_vm0, %v166_v39, 0.0 }
  0xf7   :  { %v170_v43 = vsel %vm29_vm0, %v164_v41, 0.0 }
  0xf9   :  { %177 = vadd.xlane.f32.xlu1 %v176_v42 }
  0xfa   :  { %171 = vadd.xlane.f32.xlu0 %v170_v43 }
 0x182   :  { %v175_v44 = vpop.xlane.xlu1 %174 }
 0x183   :  { %v182_v45 = vmul.f32 0.03125, %v175_v44  ;;  %v169_v46 = vpop.xlane.xlu0 %168 }
 0x184   :  { %v180_v47 = vmul.f32 0.03125, %v169_v46 }
 0x185   :  { %v186_v48 = vsub.f32 %v165_v32, %v182_v45 }
 0x186   :  { %v184_v49 = vsub.f32 %v163_v36, %v180_v47  ;;  %v178_v50 = vpop.xlane.xlu1 %177 }
 0x187   :  { %v183_v51 = vmul.f32 0.03125, %v178_v50  ;;  %v172_v52 = vpop.xlane.xlu0 %171  ;;  %v190_v58 = vmul.f32 %v186_v48, %v186_v48 }
 0x188   :  { %v181_v53 = vmul.f32 0.03125, %v172_v52  ;;  %v188_v54 = vmul.f32 %v184_v49, %v184_v49 }
 0x189   :  { %v187_v55 = vsub.f32 %v166_v39, %v183_v51  ;;  %v198_v60 = vsel %vm29_vm0, %v190_v58, 0.0 }
 0x18a   :  { %v185_v56 = vsub.f32 %v164_v41, %v181_v53  ;;  %v192_v57 = vsel %vm29_vm0, %v188_v54, 0.0 }
 0x18b   :  { %193 = vadd.xlane.f32.xlu0 %v192_v57  ;;  %v191_v62 = vmul.f32 %v187_v55, %v187_v55 }
 0x18c   :  { %v189_v59 = vmul.f32 %v185_v56, %v185_v56 }
 0x18d   :  { %v201_v63 = vsel %vm29_vm0, %v191_v62, 0.0 }
 0x18e   :  { %v195_v61 = vsel %vm29_vm0, %v189_v59, 0.0 }
 0x18f   :  { %199 = vadd.xlane.f32.xlu0 %v198_v60  ;;  %196 = vadd.xlane.f32.xlu1 %v195_v61 }
 0x193   :  { %202 = vadd.xlane.f32.xlu1 %v201_v63 }
 0x218   :  { %v194_v0 = vpop.xlane.xlu0 %193 }
 0x219   :  { %v204_v1 = vmul.f32 0.03125, %v194_v0 }
 0x21b   :  { %v208_v2 = vadd.f32 1e-12, %v204_v1 }
 0x21c   :  { %v197_v3 = vpop.xlane.xlu1 %196  ;;  %v200_v4 = vpop.xlane.xlu0 %199 }
 0x21d   :  { %297 = vrsqrt.f32 %v208_v2  ;;  %v205_v5 = vmul.f32 0.03125, %v197_v3  ;;  %v206_v6 = vmul.f32 0.03125, %v200_v4 }
 0x21f   :  { %v209_v7 = vadd.f32 1e-12, %v205_v5  ;;  %v210_v8 = vadd.f32 1e-12, %v206_v6 }
 0x220   :  { %v203_v9 = vpop.xlane.xlu1 %202 }
 0x221   :  { %299 = vrsqrt.f32 %v209_v7  ;;  %v207_v10 = vmul.f32 0.03125, %v203_v9 }
 0x222   :  { %301 = vrsqrt.f32 %v210_v8 }
 0x223   :  { %v211_v11 = vadd.f32 1e-12, %v207_v10 }
 0x225   :  { %303 = vrsqrt.f32 %v211_v11 }
 0x227   :  { %v298_v12 = vpop.eup %297 }
 0x228   :  { %v216_v14 = vmul.f32 %v298_v12, %v184_v49 }
 0x22a   :  { %v227_v16 = vmul.f32 %v269_v13, %v216_v14 }
 0x22b   :  { %v300_v17 = vpop.eup %299 }
 0x22c   :  { %v302_v18 = vpop.eup %301  ;;  %v238_v19 = vadd.f32 %v270_v15, %v227_v16  ;;  %v217_v20 = vmul.f32 %v300_v17, %v185_v56 }
 0x22d   :  { %v218_v21 = vmul.f32 %v302_v18, %v186_v48 }
 0x22e   :  { %242 = vst.msk [vmem:[#allocation3] sm:$0xff] %vm29_vm0, %v238_v19  ;;  %v228_v22 = vmul.f32 %v269_v13, %v217_v20 }
 0x22f   :  { %v304_v23 = vpop.eup %303  ;;  %v229_v24 = vmul.f32 %v269_v13, %v218_v21 }
 0x230   :  { %v239_v25 = vadd.f32 %v270_v15, %v228_v22  ;;  %v219_v26 = vmul.f32 %v304_v23, %v187_v55 }
 0x231   :  { %v240_v27 = vadd.f32 %v270_v15, %v229_v24 }
 0x232   :  { %243 = vst.msk [vmem:[#allocation3 + $0x8] sm:$0xff] %vm29_vm0, %v239_v25  ;;  %v230_v28 = vmul.f32 %v269_v13, %v219_v26 }
 0x233   :  { %244 = vst.msk [vmem:[#allocation3 + $0x10] sm:$0xff] %vm29_vm0, %v240_v27 }
 0x234   :  { %v241_v29 = vadd.f32 %v270_v15, %v230_v28 }
 0x236   :  { %245 = vst.msk [vmem:[#allocation3 + $0x18] sm:$0xff] %vm29_vm0, %v241_v29 }
 0x237   :  { %316 = shalt.err (!%p313_p4)
}
 0x238   :  { %s317_s26 = scalar_lea.hbm %s451_s6, 512 }
 0x239   :  { %p318_p5 = scmp.ne.s32.totalorder %s451_s6, %s317_s26  ;;  %p321_p6 = scmp.lt.u32.totalorder %s317_s26, %s451_s6 }
 0x23b   :  { %p323_p7 = pnand %p321_p6, %p318_p5 }
 0x23d   :  { %326 = shalt.err (!%p323_p7)
}
 0x23e   :  { %s331_s7 = smov 128   ;;  %s332_s8 = smov 8  }
 0x23f   :  { %257 = dma.vmem_to_hbm [thread:$0]  %s252_s23, 512, %s451_s6, [#allocation4], %s331_s7, %s331_s7, %s332_s8  }
 0x240   :  { %327 = dma.done.wait [#allocation4], 512  }
 0x241   :  { %328 = vsyncadd [#allocation4], 4294966784 }
 0x242   :  { %261 = vsyncpa [#allocation4], 1 }

</bundles_post_ra>
